<compile_context>
chip_gen: v7x
topology: tpu7x:2x2x1
jax: 0.10.0
libtpu: 0.0.40
codegen_flags: <defaults>
</compile_context>

<pallas_src>
import jax
import jax.numpy as jnp
from jax.experimental import pallas as pl
from jax.experimental.pallas import tpu as pltpu

EPS = 1e-5   # torch.nn.InstanceNorm1d default eps
C = 128      # lane-padded channel width used for every layer
K = 4        # conv kernel size


def _lengths(L):
    """Full-resolution (a-trous) lengths N_i and the real (strided) lengths n_i."""
    N1 = L - (K - 1)            # dilation 1
    N2 = N1 - (K - 1) * 2       # dilation 2
    N3 = N2 - (K - 1) * 4       # dilation 4
    N4 = N3 - (K - 1) * 8       # dilation 8
    n1 = (L - K) // 2 + 1
    n2 = (n1 - K) // 2 + 1
    n3 = (n2 - K) // 2 + 1
    n4 = (n3 - K) // 2 + 1
    return (N1, N2, N3, N4), (n1, n2, n3, n4)


# ---------------------------------------------------------------------------
# The fused Pallas kernel
# ---------------------------------------------------------------------------
def _make_fused_kernel(L):
    (N1, N2, N3, N4), (n1, _, _, _) = _lengths(L)

    def kernel(x_ref, w1_ref, wall_ref, ball_ref, wfc_ref, bfc_ref, o_ref,
               h1_ref, h2_ref, h3_ref):
        # ------------- Layer 1: InstanceNorm1d(1) -> Conv1d(1->16) -> ReLU -------------
        x = x_ref[0]                                              # (L, 1) f32
        mean0 = jnp.sum(x, axis=0, keepdims=True) / float(L)      # (1, 1)
        xc = x - mean0
        var0 = jnp.sum(xc * xc, axis=0, keepdims=True) / float(L)  # biased variance
        xn = xc * jax.lax.rsqrt(var0 + EPS)                       # (L, 1)

        # Cin == 1: 4-tap FIR as lane-broadcast multiplies on the VPU (no 2-lane matmul).
        acc = xn[0:N1, :] * w1_ref[0]                             # (N1,1)*(1,C) -> (N1,C)
        for k in range(1, K):
            acc = acc + xn[k:k + N1, :] * w1_ref[k]
        y1 = jnp.maximum(acc + ball_ref[0], 0.0)                  # (N1, C), full resolution

        # ---- InstanceNorm1d(16) feeding layer 2: stats over the n1 REAL (even) rows ----
        row = jax.lax.broadcasted_iota(jnp.int32, (N1, 1), 0)
        msk = jnp.where((row & 1) == 0, 1.0, 0.0).astype(jnp.float32)   # exactly n1 ones
        mean1 = jnp.sum(y1 * msk, axis=0, keepdims=True) / float(n1)    # (1, C)
        d1 = y1 - mean1
        var1 = jnp.sum(d1 * d1 * msk, axis=0, keepdims=True) / float(n1)
        h1_ref[...] = d1 * jax.lax.rsqrt(var1 + EPS)              # normalized, (N1, C)

        # -------- Layers 2..4: stride-2 convs evaluated a trous (dilation 2, 4, 8) -------
        # Each tap is a contiguous row slice of the previous full-res activation feeding a
        # lane-dense (Nout,128)@(128,128) MXU matmul.  Only rows that are multiples of the
        # dilation propagate to the real outputs; the rest are harmless filler.
        def dconv(hin_ref, layer, dil, n_out):
            a = jnp.dot(hin_ref[pl.ds(0, n_out), :], wall_ref[layer, 0],
                        preferred_element_type=jnp.float32)
            for k in range(1, K):
                a = a + jnp.dot(hin_ref[pl.ds(k * dil, n_out), :], wall_ref[layer, k],
                                preferred_element_type=jnp.float32)
            return jnp.maximum(a + ball_ref[layer + 1], 0.0)

        h2_ref[...] = dconv(h1_ref, 0, 2, N2)
        h3_ref[...] = dconv(h2_ref, 1, 4, N3)
        y4 = dconv(h3_ref, 2, 8, N4)          # (N4, C); real outputs sit at rows 16*t

        # ---- FC (spectral-norm Linear) fused as VPU multiply + reduce.  The 16-stride ----
        # ---- subsample and the (B,C,L) flatten order are baked into wfc (pack_params). ---
        prod = y4 * wfc_ref[...]                                  # (N4, C)
        s = jnp.sum(jnp.sum(prod, axis=1, keepdims=True), axis=0, keepdims=True)  # (1, 1)
        # Lane-dense output slab: broadcast the scalar across 128 lanes (unmasked store).
        o_ref[...] = (s + bfc_ref[...]).reshape(1, 1, C)

    return kernel


def discriminator_forward(x, packed):
    """x: (B, L) float32  (the x[0] element of the PyTorch input tuple; x[1] is an int)."""
    w1p, wall, ball, wfc, bfc = packed
    B, L = x.shape
    (N1, N2, N3, N4), _ = _lengths(L)
    assert wfc.shape == (N4, C)
    xr = x.astype(jnp.float32).reshape(B, L, 1)    # length on sublanes, 1 channel lane
    kernel = _make_fused_kernel(L)
    out = pl.pallas_call(
        kernel,
        out_shape=jax.ShapeDtypeStruct((B, 1, C), jnp.float32),
        grid=(B,),
        in_specs=[
            pl.BlockSpec((1, L, 1), lambda b: (b, 0, 0)),          # per-batch input
            pl.BlockSpec((K, 1, C), lambda b: (0, 0, 0)),          # layer-1 taps (padded)
            pl.BlockSpec((3, K, C, C), lambda b: (0, 0, 0, 0)),    # layers 2..4 taps (padded)
            pl.BlockSpec((4, 1, C), lambda b: (0, 0, 0)),          # biases (padded)
            pl.BlockSpec((N4, C), lambda b: (0, 0)),               # fused FC weight
            pl.BlockSpec((1, C), lambda b: (0, 0)),                # FC bias (lane-broadcast)
        ],
        out_specs=pl.BlockSpec((1, 1, C), lambda b: (b, 0, 0)),    # lane-dense output slab
        scratch_shapes=[
            pltpu.VMEM((N1, C), jnp.float32),   # VMEM-resident intermediate activations
            pltpu.VMEM((N2, C), jnp.float32),
            pltpu.VMEM((N3, C), jnp.float32),
        ],
        compiler_params=pltpu.CompilerParams(
            dimension_semantics=("parallel",),      # v7x: batch split across TensorCores
            vmem_limit_bytes=32 * 1024 * 1024,      # ~3 MB actually used; lots of headroom
        ),
    )(xr, w1p, wall, ball, wfc, bfc)
    return out[:, 0, :1]                            # (B, 1), matching the nn.Module output


# ---------------------------------------------------------------------------
# One-time parameter preprocessing (hoisted out of the forward pass)
# ---------------------------------------------------------------------------
def pack_params(conv_params, fc_params, L=192):
    """Pad channels to 128 lanes, transpose conv taps for matmul, and fold the spectral-norm
    scale + PyTorch (B,C,L) flatten order + 16-stride subsample into the FC weight."""
    (_, _, _, N4), (_, _, _, n4) = _lengths(L)

    (w1, b1) = conv_params[0]
    w1p = jnp.zeros((K, 1, C), jnp.float32).at[:, 0, :w1.shape[0]].set(w1[:, 0, :].T)

    def pad_w(w):                                  # (Cout, Cin, K) -> (K, C, C): [k, ci, co]
        cout, cin, _ = w.shape
        return jnp.zeros((K, C, C), jnp.float32).at[:, :cin, :cout].set(
            jnp.transpose(w, (2, 1, 0)))

    wall = jnp.stack([pad_w(conv_params[i][0]) for i in (1, 2, 3)], axis=0)   # (3,K,C,C)

    def pad_b(b):
        return jnp.zeros((1, C), jnp.float32).at[0, :b.shape[0]].set(b)

    ball = jnp.stack([pad_b(conv_params[i][1]) for i in range(4)], axis=0)    # (4,1,C)

    wf, bf = fc_params                              # (1, 128*n4), (1,)
    assert wf.shape == (1, C * n4)
    # spectral_norm(nn.Linear): for a (1, N) weight the spectral norm equals its L2 norm.
    sigma = jnp.sqrt(jnp.sum(wf * wf))
    wfn = (wf / sigma).reshape(C, n4)               # [c, t] since flatten index = c*n4 + t
    wfc = jnp.zeros((N4, C), jnp.float32).at[jnp.arange(n4) * 16, :].set(wfn.T)
    bfc = jnp.zeros((1, C), jnp.float32) + bf.reshape(1, 1).astype(jnp.float32)
    return w1p, wall, ball, wfc, bfc


def init_params(key):
    """Deterministic synthetic parameters matching the 'small' config shapes."""
    specs = [(1, 16), (16, 32), (32, 64), (64, 128)]
    keys = jax.random.split(key, 2 * len(specs) + 2)
    conv_params = []
    for i, (cin, cout) in enumerate(specs):
        w = jax.random.normal(keys[2 * i], (cout, cin, K), jnp.float32) / jnp.sqrt(cin * K)
        b = jax.random.normal(keys[2 * i + 1], (cout,), jnp.float32) * 0.01
        conv_params.append((w, b))
    wf = jax.random.normal(keys[-2], (1, 128 * 10), jnp.float32) / jnp.sqrt(1280.0)
    bf = jax.random.normal(keys[-1], (1,), jnp.float32) * 0.01
    return conv_params, (wf, bf)


NORMALIZES = [True, True, False, False]   # per the 'small' DBlock config


# ---------------------------------------------------------------------------
# Pure-JAX reference (mirrors the PyTorch forward exactly) for validation
# ---------------------------------------------------------------------------
def reference_forward(x, conv_params, fc_params):
    h = x[:, None, :].astype(jnp.float32)   # (B, 1, L)  NCL
    for (w, b), norm in zip(conv_params, NORMALIZES):
        if norm:
            mean = h.mean(axis=2, keepdims=True)
            var = h.var(axis=2, keepdims=True)
            h = (h - mean) / jnp.sqrt(var + EPS)
        h = jax.lax.conv_general_dilated(
            h, w, window_strides=(2,), padding="VALID",
            dimension_numbers=("NCH", "OIH", "NCH"),
        )
        h = h + b[None, :, None]
        h = jnp.maximum(h, 0.0)
    hf = h.reshape(h.shape[0], -1)
    wf, bf = fc_params
    wf_sn = wf / jnp.sqrt(jnp.sum(wf * wf))
    return hf @ wf_sn.T + bf


if __name__ == "__main__":
    key = jax.random.PRNGKey(0)
    kx, kp = jax.random.split(key)

    # L = 192: four (k=4, stride=2) valid convs give final length 10, matching fc = 128*10 -> 1.
    B, L = 4, 192
    x = jax.random.normal(kx, (B, L), jnp.float32)
    conv_params, fc_params = init_params(kp)
    packed = pack_params(conv_params, fc_params, L)

    fwd = jax.jit(discriminator_forward)
    out = jax.block_until_ready(fwd(x, packed))

    ref = reference_forward(x, conv_params, fc_params)
    assert out.shape == (B, 1), out.shape
    err = float(jnp.max(jnp.abs(out - ref)))
    assert err < 5e-3, (err, out, ref)
    print("KERNEL_OK")
</pallas_src>

<mosaic_0001>
module attributes {stable_mosaic.version = 11 : i64} {
  func.func @kernel(%arg0: i32, %arg1: memref<1x192x1xf32, #tpu.memory_space<vmem>>, %arg2: memref<4x1x128xf32, #tpu.memory_space<vmem>>, %arg3: memref<3x4x128x128xf32, #tpu.memory_space<vmem>>, %arg4: memref<4x1x128xf32, #tpu.memory_space<vmem>>, %arg5: memref<147x128xf32, #tpu.memory_space<vmem>>, %arg6: memref<1x128xf32, #tpu.memory_space<vmem>>, %arg7: memref<1x1x128xf32, #tpu.memory_space<vmem>>, %arg8: memref<189x128xf32, #tpu.memory_space<vmem>>, %arg9: memref<183x128xf32, #tpu.memory_space<vmem>>, %arg10: memref<171x128xf32, #tpu.memory_space<vmem>>) attributes {dimension_semantics = [#tpu.dimension_semantics<parallel>], iteration_bounds = array<i64: 4>, scalar_prefetch = 0 : i64, scratch_operands = 3 : i64, tpu.core_type = #tpu.core_type<tc>, window_params = [{transform_indices = @transform_0, window_bounds = array<i64: 1, 192, 1>}, {pipeline_mode = #tpu.pipeline_mode<synchronous>, transform_indices = @transform_1, window_bounds = array<i64: 4, 1, 128>}, {pipeline_mode = #tpu.pipeline_mode<synchronous>, transform_indices = @transform_2, window_bounds = array<i64: 3, 4, 128, 128>}, {pipeline_mode = #tpu.pipeline_mode<synchronous>, transform_indices = @transform_3, window_bounds = array<i64: 4, 1, 128>}, {pipeline_mode = #tpu.pipeline_mode<synchronous>, transform_indices = @transform_4, window_bounds = array<i64: 147, 128>}, {pipeline_mode = #tpu.pipeline_mode<synchronous>, transform_indices = @transform_5, window_bounds = array<i64: 1, 128>}, {transform_indices = @transform_6, window_bounds = array<i64: 1, 1, 128>}]} {
    %c0 = arith.constant 0 : index
    %c0_0 = arith.constant 0 : index
    %c0_1 = arith.constant 0 : index
    %0 = vector.load %arg1[%c0, %c0_0, %c0_1] : memref<1x192x1xf32, #tpu.memory_space<vmem>>, vector<1x192x1xf32>
    %1 = vector.shape_cast %0 : vector<1x192x1xf32> to vector<192x1xf32>
    %cst = arith.constant dense<0.000000e+00> : vector<1xf32>
    %2 = vector.multi_reduction <add>, %1, %cst [0] : vector<192x1xf32> to vector<1xf32>
    %3 = vector.shape_cast %2 : vector<1xf32> to vector<1x1xf32>
    %cst_2 = arith.constant 1.920000e+02 : f32
    %4 = vector.broadcast %cst_2 : f32 to vector<1x1xf32>
    %5 = arith.divf %3, %4 : vector<1x1xf32>
    %6 = vector.broadcast %5 : vector<1x1xf32> to vector<192x1xf32>
    %7 = arith.subf %1, %6 : vector<192x1xf32>
    %8 = arith.mulf %7, %7 : vector<192x1xf32>
    %cst_3 = arith.constant dense<0.000000e+00> : vector<1xf32>
    %9 = vector.multi_reduction <add>, %8, %cst_3 [0] : vector<192x1xf32> to vector<1xf32>
    %10 = vector.shape_cast %9 : vector<1xf32> to vector<1x1xf32>
    %cst_4 = arith.constant 1.920000e+02 : f32
    %11 = vector.broadcast %cst_4 : f32 to vector<1x1xf32>
    %12 = arith.divf %10, %11 : vector<1x1xf32>
    %cst_5 = arith.constant 9.99999974E-6 : f32
    %13 = vector.broadcast %cst_5 : f32 to vector<1x1xf32>
    %14 = arith.addf %12, %13 : vector<1x1xf32>
    %15 = math.rsqrt %14 : vector<1x1xf32>
    %16 = vector.broadcast %15 : vector<1x1xf32> to vector<192x1xf32>
    %17 = arith.mulf %7, %16 : vector<192x1xf32>
    %18 = vector.extract_strided_slice %17 {offsets = [0, 0], sizes = [189, 1], strides = [1, 1]} : vector<192x1xf32> to vector<189x1xf32>
    %c0_6 = arith.constant 0 : index
    %c0_7 = arith.constant 0 : index
    %c0_8 = arith.constant 0 : index
    %19 = vector.load %arg2[%c0_6, %c0_7, %c0_8] : memref<4x1x128xf32, #tpu.memory_space<vmem>>, vector<1x1x128xf32>
    %20 = vector.shape_cast %19 : vector<1x1x128xf32> to vector<1x128xf32>
    %21 = vector.broadcast %18 : vector<189x1xf32> to vector<189x128xf32>
    %22 = vector.broadcast %20 : vector<1x128xf32> to vector<189x128xf32>
    %23 = arith.mulf %21, %22 : vector<189x128xf32>
    %24 = vector.extract_strided_slice %17 {offsets = [1, 0], sizes = [189, 1], strides = [1, 1]} : vector<192x1xf32> to vector<189x1xf32>
    %c1 = arith.constant 1 : index
    %c0_9 = arith.constant 0 : index
    %c0_10 = arith.constant 0 : index
    %25 = vector.load %arg2[%c1, %c0_9, %c0_10] : memref<4x1x128xf32, #tpu.memory_space<vmem>>, vector<1x1x128xf32>
    %26 = vector.shape_cast %25 : vector<1x1x128xf32> to vector<1x128xf32>
    %27 = vector.broadcast %24 : vector<189x1xf32> to vector<189x128xf32>
    %28 = vector.broadcast %26 : vector<1x128xf32> to vector<189x128xf32>
    %29 = arith.mulf %27, %28 : vector<189x128xf32>
    %30 = arith.addf %23, %29 : vector<189x128xf32>
    %31 = vector.extract_strided_slice %17 {offsets = [2, 0], sizes = [189, 1], strides = [1, 1]} : vector<192x1xf32> to vector<189x1xf32>
    %c2 = arith.constant 2 : index
    %c0_11 = arith.constant 0 : index
    %c0_12 = arith.constant 0 : index
    %32 = vector.load %arg2[%c2, %c0_11, %c0_12] : memref<4x1x128xf32, #tpu.memory_space<vmem>>, vector<1x1x128xf32>
    %33 = vector.shape_cast %32 : vector<1x1x128xf32> to vector<1x128xf32>
    %34 = vector.broadcast %31 : vector<189x1xf32> to vector<189x128xf32>
    %35 = vector.broadcast %33 : vector<1x128xf32> to vector<189x128xf32>
    %36 = arith.mulf %34, %35 : vector<189x128xf32>
    %37 = arith.addf %30, %36 : vector<189x128xf32>
    %38 = vector.extract_strided_slice %17 {offsets = [3, 0], sizes = [189, 1], strides = [1, 1]} : vector<192x1xf32> to vector<189x1xf32>
    %c3 = arith.constant 3 : index
    %c0_13 = arith.constant 0 : index
    %c0_14 = arith.constant 0 : index
    %39 = vector.load %arg2[%c3, %c0_13, %c0_14] : memref<4x1x128xf32, #tpu.memory_space<vmem>>, vector<1x1x128xf32>
    %40 = vector.shape_cast %39 : vector<1x1x128xf32> to vector<1x128xf32>
    %41 = vector.broadcast %38 : vector<189x1xf32> to vector<189x128xf32>
    %42 = vector.broadcast %40 : vector<1x128xf32> to vector<189x128xf32>
    %43 = arith.mulf %41, %42 : vector<189x128xf32>
    %44 = arith.addf %37, %43 : vector<189x128xf32>
    %c0_15 = arith.constant 0 : index
    %c0_16 = arith.constant 0 : index
    %c0_17 = arith.constant 0 : index
    %45 = vector.load %arg4[%c0_15, %c0_16, %c0_17] : memref<4x1x128xf32, #tpu.memory_space<vmem>>, vector<1x1x128xf32>
    %46 = vector.shape_cast %45 : vector<1x1x128xf32> to vector<1x128xf32>
    %47 = vector.broadcast %46 : vector<1x128xf32> to vector<189x128xf32>
    %48 = arith.addf %44, %47 : vector<189x128xf32>
    %cst_18 = arith.constant 0.000000e+00 : f32
    %49 = vector.broadcast %cst_18 : f32 to vector<189x128xf32>
    %50 = arith.maximumf %48, %49 : vector<189x128xf32>
    %51 = tpu.iota {dimensions = array<i32: 0>} : vector<189x1xi32>
    %c1_i32 = arith.constant 1 : i32
    %52 = vector.broadcast %c1_i32 : i32 to vector<189x1xi32>
    %53 = arith.andi %51, %52 : vector<189x1xi32>
    %c0_i32 = arith.constant 0 : i32
    %54 = vector.broadcast %c0_i32 : i32 to vector<189x1xi32>
    %55 = arith.cmpi eq, %53, %54 : vector<189x1xi32>
    %cst_19 = arith.constant 1.000000e+00 : f32
    %cst_20 = arith.constant 0.000000e+00 : f32
    %56 = vector.broadcast %cst_19 : f32 to vector<189x1xf32>
    %57 = vector.broadcast %cst_20 : f32 to vector<189x1xf32>
    %58 = arith.select %55, %56, %57 : vector<189x1xi1>, vector<189x1xf32>
    %59 = vector.broadcast %58 : vector<189x1xf32> to vector<189x128xf32>
    %60 = arith.mulf %50, %59 : vector<189x128xf32>
    %cst_21 = arith.constant dense<0.000000e+00> : vector<128xf32>
    %61 = vector.multi_reduction <add>, %60, %cst_21 [0] : vector<189x128xf32> to vector<128xf32>
    %62 = vector.shape_cast %61 : vector<128xf32> to vector<1x128xf32>
    %cst_22 = arith.constant 9.500000e+01 : f32
    %63 = vector.broadcast %cst_22 : f32 to vector<1x128xf32>
    %64 = arith.divf %62, %63 : vector<1x128xf32>
    %65 = vector.broadcast %64 : vector<1x128xf32> to vector<189x128xf32>
    %66 = arith.subf %50, %65 : vector<189x128xf32>
    %67 = arith.mulf %66, %66 : vector<189x128xf32>
    %68 = vector.broadcast %58 : vector<189x1xf32> to vector<189x128xf32>
    %69 = arith.mulf %67, %68 : vector<189x128xf32>
    %cst_23 = arith.constant dense<0.000000e+00> : vector<128xf32>
    %70 = vector.multi_reduction <add>, %69, %cst_23 [0] : vector<189x128xf32> to vector<128xf32>
    %71 = vector.shape_cast %70 : vector<128xf32> to vector<1x128xf32>
    %cst_24 = arith.constant 9.500000e+01 : f32
    %72 = vector.broadcast %cst_24 : f32 to vector<1x128xf32>
    %73 = arith.divf %71, %72 : vector<1x128xf32>
    %cst_25 = arith.constant 9.99999974E-6 : f32
    %74 = vector.broadcast %cst_25 : f32 to vector<1x128xf32>
    %75 = arith.addf %73, %74 : vector<1x128xf32>
    %76 = math.rsqrt %75 : vector<1x128xf32>
    %77 = vector.broadcast %76 : vector<1x128xf32> to vector<189x128xf32>
    %78 = arith.mulf %66, %77 : vector<189x128xf32>
    %c0_26 = arith.constant 0 : index
    %c0_27 = arith.constant 0 : index
    %79 = vector.load %arg8[%c0_26, %c0_27] : memref<189x128xf32, #tpu.memory_space<vmem>>, vector<189x128xf32>
    tpu.vector_store %arg8[%c0_26, %c0_27], %78 {strides = array<i32>} : memref<189x128xf32, #tpu.memory_space<vmem>>, vector<189x128xf32>,
    %c0_28 = arith.constant 0 : index
    %c0_29 = arith.constant 0 : index
    %80 = vector.load %arg8[%c0_28, %c0_29] : memref<189x128xf32, #tpu.memory_space<vmem>>, vector<183x128xf32>
    %c0_30 = arith.constant 0 : index
    %c0_31 = arith.constant 0 : index
    %c0_32 = arith.constant 0 : index
    %c0_33 = arith.constant 0 : index
    %81 = vector.load %arg3[%c0_30, %c0_31, %c0_32, %c0_33] : memref<3x4x128x128xf32, #tpu.memory_space<vmem>>, vector<1x1x128x128xf32>
    %82 = vector.shape_cast %81 : vector<1x1x128x128xf32> to vector<128x128xf32>
    %cst_34 = arith.constant dense<0.000000e+00> : vector<183x128xf32>
    %83 = tpu.matmul %80, %82, %cst_34 {dimension_numbers = #tpu.dot_dimension_numbers<[1], [0], [0], [1], [0, 0, 1, 1], [], []>} : vector<183x128xf32>, vector<128x128xf32>, vector<183x128xf32> -> vector<183x128xf32>
    %c2_35 = arith.constant 2 : index
    %c0_36 = arith.constant 0 : index
    %84 = vector.load %arg8[%c2_35, %c0_36] : memref<189x128xf32, #tpu.memory_space<vmem>>, vector<183x128xf32>
    %c0_37 = arith.constant 0 : index
    %c1_38 = arith.constant 1 : index
    %c0_39 = arith.constant 0 : index
    %c0_40 = arith.constant 0 : index
    %85 = vector.load %arg3[%c0_37, %c1_38, %c0_39, %c0_40] : memref<3x4x128x128xf32, #tpu.memory_space<vmem>>, vector<1x1x128x128xf32>
    %86 = vector.shape_cast %85 : vector<1x1x128x128xf32> to vector<128x128xf32>
    %cst_41 = arith.constant dense<0.000000e+00> : vector<183x128xf32>
    %87 = tpu.matmul %84, %86, %cst_41 {dimension_numbers = #tpu.dot_dimension_numbers<[1], [0], [0], [1], [0, 0, 1, 1], [], []>} : vector<183x128xf32>, vector<128x128xf32>, vector<183x128xf32> -> vector<183x128xf32>
    %88 = arith.addf %83, %87 : vector<183x128xf32>
    %c4 = arith.constant 4 : index
    %c0_42 = arith.constant 0 : index
    %89 = vector.load %arg8[%c4, %c0_42] : memref<189x128xf32, #tpu.memory_space<vmem>>, vector<183x128xf32>
    %c0_43 = arith.constant 0 : index
    %c2_44 = arith.constant 2 : index
    %c0_45 = arith.constant 0 : index
    %c0_46 = arith.constant 0 : index
    %90 = vector.load %arg3[%c0_43, %c2_44, %c0_45, %c0_46] : memref<3x4x128x128xf32, #tpu.memory_space<vmem>>, vector<1x1x128x128xf32>
    %91 = vector.shape_cast %90 : vector<1x1x128x128xf32> to vector<128x128xf32>
    %cst_47 = arith.constant dense<0.000000e+00> : vector<183x128xf32>
    %92 = tpu.matmul %89, %91, %cst_47 {dimension_numbers = #tpu.dot_dimension_numbers<[1], [0], [0], [1], [0, 0, 1, 1], [], []>} : vector<183x128xf32>, vector<128x128xf32>, vector<183x128xf32> -> vector<183x128xf32>
    %93 = arith.addf %88, %92 : vector<183x128xf32>
    %c6 = arith.constant 6 : index
    %c0_48 = arith.constant 0 : index
    %94 = vector.load %arg8[%c6, %c0_48] : memref<189x128xf32, #tpu.memory_space<vmem>>, vector<183x128xf32>
    %c0_49 = arith.constant 0 : index
    %c3_50 = arith.constant 3 : index
    %c0_51 = arith.constant 0 : index
    %c0_52 = arith.constant 0 : index
    %95 = vector.load %arg3[%c0_49, %c3_50, %c0_51, %c0_52] : memref<3x4x128x128xf32, #tpu.memory_space<vmem>>, vector<1x1x128x128xf32>
    %96 = vector.shape_cast %95 : vector<1x1x128x128xf32> to vector<128x128xf32>
    %cst_53 = arith.constant dense<0.000000e+00> : vector<183x128xf32>
    %97 = tpu.matmul %94, %96, %cst_53 {dimension_numbers = #tpu.dot_dimension_numbers<[1], [0], [0], [1], [0, 0, 1, 1], [], []>} : vector<183x128xf32>, vector<128x128xf32>, vector<183x128xf32> -> vector<183x128xf32>
    %98 = arith.addf %93, %97 : vector<183x128xf32>
    %c1_54 = arith.constant 1 : index
    %c0_55 = arith.constant 0 : index
    %c0_56 = arith.constant 0 : index
    %99 = vector.load %arg4[%c1_54, %c0_55, %c0_56] : memref<4x1x128xf32, #tpu.memory_space<vmem>>, vector<1x1x128xf32>
    %100 = vector.shape_cast %99 : vector<1x1x128xf32> to vector<1x128xf32>
    %101 = vector.broadcast %100 : vector<1x128xf32> to vector<183x128xf32>
    %102 = arith.addf %98, %101 : vector<183x128xf32>
    %cst_57 = arith.constant 0.000000e+00 : f32
    %103 = vector.broadcast %cst_57 : f32 to vector<183x128xf32>
    %104 = arith.maximumf %102, %103 : vector<183x128xf32>
    %c0_58 = arith.constant 0 : index
    %c0_59 = arith.constant 0 : index
    %105 = vector.load %arg9[%c0_58, %c0_59] : memref<183x128xf32, #tpu.memory_space<vmem>>, vector<183x128xf32>
    tpu.vector_store %arg9[%c0_58, %c0_59], %104 {strides = array<i32>} : memref<183x128xf32, #tpu.memory_space<vmem>>, vector<183x128xf32>,
    %c0_60 = arith.constant 0 : index
    %c0_61 = arith.constant 0 : index
    %106 = vector.load %arg9[%c0_60, %c0_61] : memref<183x128xf32, #tpu.memory_space<vmem>>, vector<171x128xf32>
    %c1_62 = arith.constant 1 : index
    %c0_63 = arith.constant 0 : index
    %c0_64 = arith.constant 0 : index
    %c0_65 = arith.constant 0 : index
    %107 = vector.load %arg3[%c1_62, %c0_63, %c0_64, %c0_65] : memref<3x4x128x128xf32, #tpu.memory_space<vmem>>, vector<1x1x128x128xf32>
    %108 = vector.shape_cast %107 : vector<1x1x128x128xf32> to vector<128x128xf32>
    %cst_66 = arith.constant dense<0.000000e+00> : vector<171x128xf32>
    %109 = tpu.matmul %106, %108, %cst_66 {dimension_numbers = #tpu.dot_dimension_numbers<[1], [0], [0], [1], [0, 0, 1, 1], [], []>} : vector<171x128xf32>, vector<128x128xf32>, vector<171x128xf32> -> vector<171x128xf32>
    %c4_67 = arith.constant 4 : index
    %c0_68 = arith.constant 0 : index
    %110 = vector.load %arg9[%c4_67, %c0_68] : memref<183x128xf32, #tpu.memory_space<vmem>>, vector<171x128xf32>
    %c1_69 = arith.constant 1 : index
    %c1_70 = arith.constant 1 : index
    %c0_71 = arith.constant 0 : index
    %c0_72 = arith.constant 0 : index
    %111 = vector.load %arg3[%c1_69, %c1_70, %c0_71, %c0_72] : memref<3x4x128x128xf32, #tpu.memory_space<vmem>>, vector<1x1x128x128xf32>
    %112 = vector.shape_cast %111 : vector<1x1x128x128xf32> to vector<128x128xf32>
    %cst_73 = arith.constant dense<0.000000e+00> : vector<171x128xf32>
    %113 = tpu.matmul %110, %112, %cst_73 {dimension_numbers = #tpu.dot_dimension_numbers<[1], [0], [0], [1], [0, 0, 1, 1], [], []>} : vector<171x128xf32>, vector<128x128xf32>, vector<171x128xf32> -> vector<171x128xf32>
    %114 = arith.addf %109, %113 : vector<171x128xf32>
    %c8 = arith.constant 8 : index
    %c0_74 = arith.constant 0 : index
    %115 = vector.load %arg9[%c8, %c0_74] : memref<183x128xf32, #tpu.memory_space<vmem>>, vector<171x128xf32>
    %c1_75 = arith.constant 1 : index
    %c2_76 = arith.constant 2 : index
    %c0_77 = arith.constant 0 : index
    %c0_78 = arith.constant 0 : index
    %116 = vector.load %arg3[%c1_75, %c2_76, %c0_77, %c0_78] : memref<3x4x128x128xf32, #tpu.memory_space<vmem>>, vector<1x1x128x128xf32>
    %117 = vector.shape_cast %116 : vector<1x1x128x128xf32> to vector<128x128xf32>
    %cst_79 = arith.constant dense<0.000000e+00> : vector<171x128xf32>
    %118 = tpu.matmul %115, %117, %cst_79 {dimension_numbers = #tpu.dot_dimension_numbers<[1], [0], [0], [1], [0, 0, 1, 1], [], []>} : vector<171x128xf32>, vector<128x128xf32>, vector<171x128xf32> -> vector<171x128xf32>
    %119 = arith.addf %114, %118 : vector<171x128xf32>
    %c12 = arith.constant 12 : index
    %c0_80 = arith.constant 0 : index
    %120 = vector.load %arg9[%c12, %c0_80] : memref<183x128xf32, #tpu.memory_space<vmem>>, vector<171x128xf32>
    %c1_81 = arith.constant 1 : index
    %c3_82 = arith.constant 3 : index
    %c0_83 = arith.constant 0 : index
    %c0_84 = arith.constant 0 : index
    %121 = vector.load %arg3[%c1_81, %c3_82, %c0_83, %c0_84] : memref<3x4x128x128xf32, #tpu.memory_space<vmem>>, vector<1x1x128x128xf32>
    %122 = vector.shape_cast %121 : vector<1x1x128x128xf32> to vector<128x128xf32>
    %cst_85 = arith.constant dense<0.000000e+00> : vector<171x128xf32>
    %123 = tpu.matmul %120, %122, %cst_85 {dimension_numbers = #tpu.dot_dimension_numbers<[1], [0], [0], [1], [0, 0, 1, 1], [], []>} : vector<171x128xf32>, vector<128x128xf32>, vector<171x128xf32> -> vector<171x128xf32>
    %124 = arith.addf %119, %123 : vector<171x128xf32>
    %c2_86 = arith.constant 2 : index
    %c0_87 = arith.constant 0 : index
    %c0_88 = arith.constant 0 : index
    %125 = vector.load %arg4[%c2_86, %c0_87, %c0_88] : memref<4x1x128xf32, #tpu.memory_space<vmem>>, vector<1x1x128xf32>
    %126 = vector.shape_cast %125 : vector<1x1x128xf32> to vector<1x128xf32>
    %127 = vector.broadcast %126 : vector<1x128xf32> to vector<171x128xf32>
    %128 = arith.addf %124, %127 : vector<171x128xf32>
    %cst_89 = arith.constant 0.000000e+00 : f32
    %129 = vector.broadcast %cst_89 : f32 to vector<171x128xf32>
    %130 = arith.maximumf %128, %129 : vector<171x128xf32>
    %c0_90 = arith.constant 0 : index
    %c0_91 = arith.constant 0 : index
    %131 = vector.load %arg10[%c0_90, %c0_91] : memref<171x128xf32, #tpu.memory_space<vmem>>, vector<171x128xf32>
    tpu.vector_store %arg10[%c0_90, %c0_91], %130 {strides = array<i32>} : memref<171x128xf32, #tpu.memory_space<vmem>>, vector<171x128xf32>,
    %c0_92 = arith.constant 0 : index
    %c0_93 = arith.constant 0 : index
    %132 = vector.load %arg10[%c0_92, %c0_93] : memref<171x128xf32, #tpu.memory_space<vmem>>, vector<147x128xf32>
    %c2_94 = arith.constant 2 : index
    %c0_95 = arith.constant 0 : index
    %c0_96 = arith.constant 0 : index
    %c0_97 = arith.constant 0 : index
    %133 = vector.load %arg3[%c2_94, %c0_95, %c0_96, %c0_97] : memref<3x4x128x128xf32, #tpu.memory_space<vmem>>, vector<1x1x128x128xf32>
    %134 = vector.shape_cast %133 : vector<1x1x128x128xf32> to vector<128x128xf32>
    %cst_98 = arith.constant dense<0.000000e+00> : vector<147x128xf32>
    %135 = tpu.matmul %132, %134, %cst_98 {dimension_numbers = #tpu.dot_dimension_numbers<[1], [0], [0], [1], [0, 0, 1, 1], [], []>} : vector<147x128xf32>, vector<128x128xf32>, vector<147x128xf32> -> vector<147x128xf32>
    %c8_99 = arith.constant 8 : index
    %c0_100 = arith.constant 0 : index
    %136 = vector.load %arg10[%c8_99, %c0_100] : memref<171x128xf32, #tpu.memory_space<vmem>>, vector<147x128xf32>
    %c2_101 = arith.constant 2 : index
    %c1_102 = arith.constant 1 : index
    %c0_103 = arith.constant 0 : index
    %c0_104 = arith.constant 0 : index
    %137 = vector.load %arg3[%c2_101, %c1_102, %c0_103, %c0_104] : memref<3x4x128x128xf32, #tpu.memory_space<vmem>>, vector<1x1x128x128xf32>
    %138 = vector.shape_cast %137 : vector<1x1x128x128xf32> to vector<128x128xf32>
    %cst_105 = arith.constant dense<0.000000e+00> : vector<147x128xf32>
    %139 = tpu.matmul %136, %138, %cst_105 {dimension_numbers = #tpu.dot_dimension_numbers<[1], [0], [0], [1], [0, 0, 1, 1], [], []>} : vector<147x128xf32>, vector<128x128xf32>, vector<147x128xf32> -> vector<147x128xf32>
    %140 = arith.addf %135, %139 : vector<147x128xf32>
    %c16 = arith.constant 16 : index
    %c0_106 = arith.constant 0 : index
    %141 = vector.load %arg10[%c16, %c0_106] : memref<171x128xf32, #tpu.memory_space<vmem>>, vector<147x128xf32>
    %c2_107 = arith.constant 2 : index
    %c2_108 = arith.constant 2 : index
    %c0_109 = arith.constant 0 : index
    %c0_110 = arith.constant 0 : index
    %142 = vector.load %arg3[%c2_107, %c2_108, %c0_109, %c0_110] : memref<3x4x128x128xf32, #tpu.memory_space<vmem>>, vector<1x1x128x128xf32>
    %143 = vector.shape_cast %142 : vector<1x1x128x128xf32> to vector<128x128xf32>
    %cst_111 = arith.constant dense<0.000000e+00> : vector<147x128xf32>
    %144 = tpu.matmul %141, %143, %cst_111 {dimension_numbers = #tpu.dot_dimension_numbers<[1], [0], [0], [1], [0, 0, 1, 1], [], []>} : vector<147x128xf32>, vector<128x128xf32>, vector<147x128xf32> -> vector<147x128xf32>
    %145 = arith.addf %140, %144 : vector<147x128xf32>
    %c24 = arith.constant 24 : index
    %c0_112 = arith.constant 0 : index
    %146 = vector.load %arg10[%c24, %c0_112] : memref<171x128xf32, #tpu.memory_space<vmem>>, vector<147x128xf32>
    %c2_113 = arith.constant 2 : index
    %c3_114 = arith.constant 3 : index
    %c0_115 = arith.constant 0 : index
    %c0_116 = arith.constant 0 : index
    %147 = vector.load %arg3[%c2_113, %c3_114, %c0_115, %c0_116] : memref<3x4x128x128xf32, #tpu.memory_space<vmem>>, vector<1x1x128x128xf32>
    %148 = vector.shape_cast %147 : vector<1x1x128x128xf32> to vector<128x128xf32>
    %cst_117 = arith.constant dense<0.000000e+00> : vector<147x128xf32>
    %149 = tpu.matmul %146, %148, %cst_117 {dimension_numbers = #tpu.dot_dimension_numbers<[1], [0], [0], [1], [0, 0, 1, 1], [], []>} : vector<147x128xf32>, vector<128x128xf32>, vector<147x128xf32> -> vector<147x128xf32>
    %150 = arith.addf %145, %149 : vector<147x128xf32>
    %c3_118 = arith.constant 3 : index
    %c0_119 = arith.constant 0 : index
    %c0_120 = arith.constant 0 : index
    %151 = vector.load %arg4[%c3_118, %c0_119, %c0_120] : memref<4x1x128xf32, #tpu.memory_space<vmem>>, vector<1x1x128xf32>
    %152 = vector.shape_cast %151 : vector<1x1x128xf32> to vector<1x128xf32>
    %153 = vector.broadcast %152 : vector<1x128xf32> to vector<147x128xf32>
    %154 = arith.addf %150, %153 : vector<147x128xf32>
    %cst_121 = arith.constant 0.000000e+00 : f32
    %155 = vector.broadcast %cst_121 : f32 to vector<147x128xf32>
    %156 = arith.maximumf %154, %155 : vector<147x128xf32>
    %c0_122 = arith.constant 0 : index
    %c0_123 = arith.constant 0 : index
    %157 = vector.load %arg5[%c0_122, %c0_123] : memref<147x128xf32, #tpu.memory_space<vmem>>, vector<147x128xf32>
    %158 = arith.mulf %156, %157 : vector<147x128xf32>
    %cst_124 = arith.constant dense<0.000000e+00> : vector<147xf32>
    %159 = vector.multi_reduction <add>, %158, %cst_124 [1] : vector<147x128xf32> to vector<147xf32>
    %160 = vector.shape_cast %159 : vector<147xf32> to vector<147x1xf32>
    %cst_125 = arith.constant dense<0.000000e+00> : vector<1xf32>
    %161 = vector.multi_reduction <add>, %160, %cst_125 [0] : vector<147x1xf32> to vector<1xf32>
    %162 = vector.shape_cast %161 : vector<1xf32> to vector<1x1xf32>
    %c0_126 = arith.constant 0 : index
    %c0_127 = arith.constant 0 : index
    %163 = vector.load %arg6[%c0_126, %c0_127] : memref<1x128xf32, #tpu.memory_space<vmem>>, vector<1x128xf32>
    %164 = vector.broadcast %162 : vector<1x1xf32> to vector<1x128xf32>
    %165 = arith.addf %164, %163 : vector<1x128xf32>
    %166 = vector.shape_cast %165 : vector<1x128xf32> to vector<1x1x128xf32>
    %c0_128 = arith.constant 0 : index
    %c0_129 = arith.constant 0 : index
    %c0_130 = arith.constant 0 : index
    %167 = vector.load %arg7[%c0_128, %c0_129, %c0_130] : memref<1x1x128xf32, #tpu.memory_space<vmem>>, vector<1x1x128xf32>
    tpu.vector_store %arg7[%c0_128, %c0_129, %c0_130], %166 {strides = array<i32>} : memref<1x1x128xf32, #tpu.memory_space<vmem>>, vector<1x1x128xf32>,
    return
  }
  func.func @transform_0(%arg0: i32) -> (i32, i32, i32) {
    %c0_i32 = arith.constant 0 : i32
    %c0_i32_0 = arith.constant 0 : i32
    %c0_i32_1 = arith.constant 0 : i32
    return %arg0, %c0_i32, %c0_i32_0 : i32, i32, i32
  }
  func.func @transform_1(%arg0: i32) -> (i32, i32, i32) {
    %c0_i32 = arith.constant 0 : i32
    %c0_i32_0 = arith.constant 0 : i32
    %c0_i32_1 = arith.constant 0 : i32
    %c0_i32_2 = arith.constant 0 : i32
    return %c0_i32, %c0_i32_0, %c0_i32_1 : i32, i32, i32
  }
  func.func @transform_2(%arg0: i32) -> (i32, i32, i32, i32) {
    %c0_i32 = arith.constant 0 : i32
    %c0_i32_0 = arith.constant 0 : i32
    %c0_i32_1 = arith.constant 0 : i32
    %c0_i32_2 = arith.constant 0 : i32
    %c0_i32_3 = arith.constant 0 : i32
    return %c0_i32, %c0_i32_0, %c0_i32_1, %c0_i32_2 : i32, i32, i32, i32
  }
  func.func @transform_3(%arg0: i32) -> (i32, i32, i32) {
    %c0_i32 = arith.constant 0 : i32
    %c0_i32_0 = arith.constant 0 : i32
    %c0_i32_1 = arith.constant 0 : i32
    %c0_i32_2 = arith.constant 0 : i32
    return %c0_i32, %c0_i32_0, %c0_i32_1 : i32, i32, i32
  }
  func.func @transform_4(%arg0: i32) -> (i32, i32) {
    %c0_i32 = arith.constant 0 : i32
    %c0_i32_0 = arith.constant 0 : i32
    %c0_i32_1 = arith.constant 0 : i32
    return %c0_i32, %c0_i32_0 : i32, i32
  }
  func.func @transform_5(%arg0: i32) -> (i32, i32) {
    %c0_i32 = arith.constant 0 : i32
    %c0_i32_0 = arith.constant 0 : i32
    %c0_i32_1 = arith.constant 0 : i32
    return %c0_i32, %c0_i32_0 : i32, i32
  }
  func.func @transform_6(%arg0: i32) -> (i32, i32, i32) {
    %c0_i32 = arith.constant 0 : i32
    %c0_i32_0 = arith.constant 0 : i32
    %c0_i32_1 = arith.constant 0 : i32
    return %arg0, %c0_i32, %c0_i32_0 : i32, i32, i32
  }
}

</mosaic_0001>

<bundles_post_ra>
// kernel: discriminator_forward.1
= control target key start
LH: loop header
LB: loop body
LE: loop exit
PB: predicated region body
PF: predicated region fallthrough
CT: control target
= control target key end

     0   :  { %11 = vsyncpa [#allocation6], 0  ;;  %s6439_s21 = smov 0   ;;  %s8883_s0 = inlined_call_operand.vmem [shape: f32[4,192,1], index: 0, kind: input, shape index: {}]   ;;  %s8884_s1 = inlined_call_operand.vmem [shape: f32[4,1,128], index: 1, kind: input, shape index: {}]   ;;  %s8885_s2 = inlined_call_operand.hbm [shape: f32[3,4,128,128], index: 2, kind: input, shape index: {}]   ;;  %s8886_s3 = inlined_call_operand.vmem [shape: f32[4,1,128], index: 3, kind: input, shape index: {}]   ;;  %s8887_s4 = inlined_call_operand.vmem [shape: f32[147,128], index: 4, kind: input, shape index: {}]   ;;  %s8888_s5 = inlined_call_operand.vmem [shape: f32[1,128], index: 5, kind: input, shape index: {}]   ;;  %s8889_s6 = inlined_call_operand.vmem [shape: f32[4,1,128], index: 6, kind: output, shape index: {}]  }
   0x1 LB: > { %s6445_s22 = sadd.s32 4294967295, %s6395_s21   ;;  %p4433_p0 = scmp.ge.s32.totalorder %s6395_s21, 1  ;;  %s6395_s21 = sphi %s6439_s21, %s17_s21  }
   0x2   : > { %p179_p1 = scmp.lt.s32.totalorder %s6395_s21, 5  ;;  %s6397_s23 = smov [#allocation5]  }
   0x3   : > { %s194_s24 = sshll.u32 %s6397_s23, 4  ;;  %p8890_p3 = scmp.eq.s32.totalorder %s6445_s22, 0  ;;  %s195_s24 = int_to_ptr.vmem [resolvable:$true] %s194_s24 }
   0x4   : > { %p6449_p2 = pnand %p4433_p0, %p179_p1  ;;  %s6357_s29 = scalar_lea.hbm %s8885_s2, 24576 }
   0x5   : > { %p6358_p6 = scmp.ne.s32.totalorder %s8885_s2, %s6357_s29  ;;  %p6364_p10 = scmp.lt.u32.totalorder %s6357_s29, %s8885_s2 }
   0x6   : > { %s8926_s25 = scalar_select %p6449_p2, 1, 0 }
   0x7   : > { %p6330_p4 = pneg %p6449_p2 }
   0x9   : > { %p6458_p5 = pnand %p8890_p3, %p6330_p4 }
   0xb   : > { %p6359_p7 = pneg %p6458_p5 }
   0xd   : > { %p6360_p8 = pnand %p6359_p7, %p6358_p6 }
   0xf   : > { %p6361_p9 = pneg %p6360_p8 }
  0x11   : > { %p6366_p11 = pnand %p6364_p10, %p6361_p9 }
  0x13   : > { %6369 = shalt.err (!%p6366_p11)
}
  0x14   : > { %s6370_s10 = scalar_lea.vmem %s195_s24, 24576  ;;  %p6378_p1 = scmp.lt.s32.totalorder %s195_s24, %s195_s24 }
  0x15   : > { %p6371_p12 = scmp.ne.s32.totalorder %s195_s24, %s6370_s10  ;;  %p6379_p4 = scmp.lt.s32.totalorder %s6370_s10, %s6370_s10 }
  0x17   : > { %p6373_p13 = pnand %p6371_p12, %p6359_p7  ;;  %p6380_p3 = por %p6379_p4, %p6378_p1 }
  0x19   : > { %p6374_p0 = pneg %p6373_p13 }
  0x1b   : > { %p6381_p2 = pnand %p6380_p3, %p6374_p0 }
  0x1d   : > { %6384 = shalt.err (!%p6381_p2)
}
  0x1e   : > { %s6398_s11 = smov 128   ;;  %s6399_s12 = smov 8  }
  0x1f   : > { %6333 = dma.hbm_to_vmem [thread:$0]  (!%p6458_p5), %s8885_s2, 24576, %s195_s24, [#allocation6], %s6398_s11, %s6398_s11, %s6399_s12  }
  0x20   : > { %p8928_p6 = scmp.ne.s32.totalorder %s8926_s25, 0 }
  0x22   : > { %227 = sbr.rel (%p8928_p6) target bundleno = 1873 (0x751), region = 44 }
  0x29   : > { %p8929_p8 = scmp.eq.s32.totalorder %s6445_s22, 0 }
  0x2b   : > { %6390 = dma.done.wait (%p8929_p8), [#allocation6], 24576   ;;  %p8930_p7 = pmov %p8929_p8 }
  0x2c   : > { %p255_p2 = scmp.lt.s32.totalorder %s6445_s22, 3  ;;  %v6400_v0 = vmov 0   ;;  %vm287_vm0 = vcmask 7168  }
  0x2d   : > { %6392 = vsyncadd (%p8930_p7), [#allocation6], 4294942720  ;;  %6352 = vset.pattern.permute.xlu1 %v6400_v0  ;;  %6351 = vset.pattern.permute.xlu0 %v6400_v0 }
  0x2e   : > { %s9030_s22 = smov (!%p255_p2, %s6445_s22), 3 }
  0x2f   : > { %s6325_s15 = smul.u32 192, %s9030_s22  ;;  %s262_s11 = scalar_lea.vmem %s8889_s6, %s9030_s22 }
  0x31   : > { %s6492_s18 = scalar_lea.vmem %s8883_s0, %s6325_s15 }
  0x32   : > { %v6495_v1 = vld [vmem:[%s6492_s18] sm:$0xff]  ;;  %v6498_v2 = vld [vmem:[%s6492_s18 + $0x8] sm:$0xff]  ;;  %v6501_v3 = vld [vmem:[%s6492_s18 + $0x10] sm:$0xff] }
  0x33   : > { %v6504_v4 = vld [vmem:[%s6492_s18 + $0x18] sm:$0xff]  ;;  %v288_v5 = vsel %vm287_vm0, %v6495_v1, 0.0  ;;  %v289_v6 = vsel %vm287_vm0, %v6498_v2, 0.0  ;;  %v291_v7 = vsel %vm287_vm0, %v6501_v3, 0.0  ;;  %v6513_v8 = vld [vmem:[%s6492_s18 + $0x20] sm:$0xff]  ;;  %v6518_v11 = vld [vmem:[%s6492_s18 + $0x28] sm:$0xff] }
  0x34   : > { %v290_v9 = vadd.f32 %v289_v6, %v288_v5  ;;  %v293_v10 = vsel %vm287_vm0, %v6504_v4, 0.0  ;;  %v295_v13 = vsel %vm287_vm0, %v6513_v8, 0.0  ;;  %v6523_v14 = vld [vmem:[%s6492_s18 + $0x30] sm:$0xff]  ;;  %v297_v16 = vsel %vm287_vm0, %v6518_v11, 0.0  ;;  %v6528_v17 = vld [vmem:[%s6492_s18 + $0x38] sm:$0xff]  ;;  %v6533_v20 = vld [vmem:[%s6492_s18 + $0x40] sm:$0xff] }
  0x35   : > { %v299_v19 = vsel %vm287_vm0, %v6523_v14, 0.0  ;;  %v301_v22 = vsel %vm287_vm0, %v6528_v17, 0.0  ;;  %v6538_v23 = vld [vmem:[%s6492_s18 + $0x48] sm:$0xff]  ;;  %v303_v25 = vsel %vm287_vm0, %v6533_v20, 0.0  ;;  %v6543_v26 = vld [vmem:[%s6492_s18 + $0x50] sm:$0xff]  ;;  %v6548_v29 = vld [vmem:[%s6492_s18 + $0x58] sm:$0xff] }
  0x36   : > { %v292_v12 = vadd.f32 %v291_v7, %v290_v9  ;;  %v305_v28 = vsel %vm287_vm0, %v6538_v23, 0.0  ;;  %v307_v31 = vsel %vm287_vm0, %v6543_v26, 0.0  ;;  %v6553_v32 = vld [vmem:[%s6492_s18 + $0x60] sm:$0xff]  ;;  %v309_v34 = vsel %vm287_vm0, %v6548_v29, 0.0  ;;  %v6558_v35 = vld [vmem:[%s6492_s18 + $0x68] sm:$0xff]  ;;  %v6563_v38 = vld [vmem:[%s6492_s18 + $0x70] sm:$0xff] }
  0x37   : > { %v311_v37 = vsel %vm287_vm0, %v6553_v32, 0.0  ;;  %v313_v40 = vsel %vm287_vm0, %v6558_v35, 0.0  ;;  %v6568_v41 = vld [vmem:[%s6492_s18 + $0x78] sm:$0xff]  ;;  %v315_v43 = vsel %vm287_vm0, %v6563_v38, 0.0  ;;  %v6573_v44 = vld [vmem:[%s6492_s18 + $0x80] sm:$0xff]  ;;  %v6578_v47 = vld [vmem:[%s6492_s18 + $0x88] sm:$0xff] }
  0x38   : > { %v294_v15 = vadd.f32 %v293_v10, %v292_v12  ;;  %v317_v46 = vsel %vm287_vm0, %v6568_v41, 0.0  ;;  %v319_v49 = vsel %vm287_vm0, %v6573_v44, 0.0  ;;  %v6583_v50 = vld [vmem:[%s6492_s18 + $0x90] sm:$0xff]  ;;  %v321_v52 = vsel %vm287_vm0, %v6578_v47, 0.0  ;;  %v6588_v53 = vld [vmem:[%s6492_s18 + $0x98] sm:$0xff]  ;;  %v6593_v56 = vld [vmem:[%s6492_s18 + $0xa0] sm:$0xff] }
  0x39   : > { %v323_v55 = vsel %vm287_vm0, %v6583_v50, 0.0  ;;  %v325_v58 = vsel %vm287_vm0, %v6588_v53, 0.0  ;;  %v6598_v59 = vld [vmem:[%s6492_s18 + $0xa8] sm:$0xff]  ;;  %v327_v61 = vsel %vm287_vm0, %v6593_v56, 0.0  ;;  %v6603_v62 = vld [vmem:[%s6492_s18 + $0xb0] sm:$0xff]  ;;  %v6608_v5 = vld [vmem:[%s6492_s18 + $0xb8] sm:$0xff] }
  0x3a   : > { %v296_v18 = vadd.f32 %v295_v13, %v294_v15  ;;  %v329_v0 = vsel %vm287_vm0, %v6598_v59, 0.0  ;;  %v331_v7 = vsel %vm287_vm0, %v6603_v62, 0.0  ;;  %v333_v10 = vsel %vm287_vm0, %v6608_v5, 0.0 }
  0x3c   : > { %v298_v21 = vadd.f32 %v297_v16, %v296_v18 }
  0x3e   : > { %v300_v24 = vadd.f32 %v299_v19, %v298_v21 }
  0x40   : > { %v302_v27 = vadd.f32 %v301_v22, %v300_v24 }
  0x42   : > { %v304_v30 = vadd.f32 %v303_v25, %v302_v27 }
  0x44   : > { %v306_v33 = vadd.f32 %v305_v28, %v304_v30 }
  0x46   : > { %v308_v36 = vadd.f32 %v307_v31, %v306_v33 }
  0x48   : > { %v310_v39 = vadd.f32 %v309_v34, %v308_v36 }
  0x4a   : > { %v312_v42 = vadd.f32 %v311_v37, %v310_v39 }
  0x4c   : > { %v314_v45 = vadd.f32 %v313_v40, %v312_v42 }
  0x4e   : > { %v316_v48 = vadd.f32 %v315_v43, %v314_v45 }
  0x50   : > { %v318_v51 = vadd.f32 %v317_v46, %v316_v48 }
  0x52   : > { %v320_v54 = vadd.f32 %v319_v49, %v318_v51 }
  0x54   : > { %v322_v57 = vadd.f32 %v321_v52, %v320_v54 }
  0x56   : > { %v324_v60 = vadd.f32 %v323_v55, %v322_v57 }
  0x58   : > { %v326_v63 = vadd.f32 %v325_v58, %v324_v60 }
  0x5a   : > { %v328_v6 = vadd.f32 %v327_v61, %v326_v63 }
  0x5c   : > { %v330_v9 = vadd.f32 %v329_v0, %v328_v6 }
  0x5e   : > { %v332_v12 = vadd.f32 %v331_v7, %v330_v9 }
  0x60   : > { %v334_v13 = vadd.f32 %v333_v10, %v332_v12 }
  0x62   : > { %v335_v15 = vrot.slane %v334_v13, 4 }
  0x64   : > { %v336_v16 = vadd.f32 %v335_v15, %v334_v13 }
  0x66   : > { %v337_v18 = vrot.slane %v336_v16, 2 }
  0x68   : > { %v338_v19 = vadd.f32 %v337_v18, %v336_v16 }
  0x6a   : > { %v339_v21 = vrot.slane %v338_v19, 1 }
  0x6c   : > { %v340_v22 = vadd.f32 %v339_v21, %v338_v19 }
  0x6e   : > { %v6614_v24 = vmul.f32 0.0052083335, %v340_v22 }
  0x70   : > { %v6618_v25 = vsub.f32 %v6495_v1, %v6614_v24  ;;  %v6622_v27 = vsub.f32 %v6498_v2, %v6614_v24  ;;  %v6626_v28 = vsub.f32 %v6501_v3, %v6614_v24  ;;  %v6630_v30 = vsub.f32 %v6504_v4, %v6614_v24 }
  0x71   : > { %v6634_v31 = vsub.f32 %v6513_v8, %v6614_v24  ;;  %v6644_v3 = vsub.f32 %v6518_v11, %v6614_v24  ;;  %v6650_v8 = vsub.f32 %v6523_v14, %v6614_v24  ;;  %v6659_v11 = vsub.f32 %v6528_v17, %v6614_v24 }
  0x72   : > { %v367_v1 = vmul.f32 %v6618_v25, %v6618_v25  ;;  %v368_v33 = vmul.f32 %v6622_v27, %v6622_v27  ;;  %v369_v2 = vmul.f32 %v6626_v28, %v6626_v28  ;;  %v370_v4 = vmul.f32 %v6630_v30, %v6630_v30 }
  0x73   : > { %v371_v34 = vmul.f32 %v6634_v31, %v6634_v31  ;;  %v372_v42 = vmul.f32 %v6644_v3, %v6644_v3  ;;  %v6666_v45 = vsub.f32 %v6533_v20, %v6614_v24  ;;  %v373_v46 = vmul.f32 %v6650_v8, %v6650_v8 }
  0x74   : > { %v391_v36 = vsel %vm287_vm0, %v367_v1, 0.0  ;;  %v392_v37 = vsel %vm287_vm0, %v368_v33, 0.0  ;;  %v394_v39 = vsel %vm287_vm0, %v369_v2, 0.0  ;;  %v396_v14 = vsel %vm287_vm0, %v370_v4, 0.0 }
  0x75   : > { %v393_v40 = vadd.f32 %v392_v37, %v391_v36  ;;  %v398_v48 = vsel %vm287_vm0, %v371_v34, 0.0  ;;  %v6673_v17 = vsub.f32 %v6538_v23, %v6614_v24  ;;  %v374_v51 = vmul.f32 %v6659_v11, %v6659_v11 }
  0x76   : > { %v400_v52 = vsel %vm287_vm0, %v372_v42, 0.0  ;;  %v6680_v20 = vsub.f32 %v6543_v26, %v6614_v24  ;;  %v375_v55 = vmul.f32 %v6666_v45, %v6666_v45  ;;  %v402_v57 = vsel %vm287_vm0, %v373_v46, 0.0 }
  0x77   : > { %v395_v43 = vadd.f32 %v394_v39, %v393_v40  ;;  %v6687_v23 = vsub.f32 %v6548_v29, %v6614_v24  ;;  %v376_v60 = vmul.f32 %v6673_v17, %v6673_v17  ;;  %v404_v61 = vsel %vm287_vm0, %v374_v51, 0.0 }
  0x78   : > { %v6694_v26 = vsub.f32 %v6553_v32, %v6614_v24  ;;  %v377_v0 = vmul.f32 %v6680_v20, %v6680_v20  ;;  %v406_v6 = vsel %vm287_vm0, %v375_v55, 0.0  ;;  %v6701_v29 = vsub.f32 %v6558_v35, %v6614_v24 }
  0x79   : > { %v397_v49 = vadd.f32 %v396_v14, %v395_v43  ;;  %v378_v9 = vmul.f32 %v6687_v23, %v6687_v23  ;;  %v408_v10 = vsel %vm287_vm0, %v376_v60, 0.0  ;;  %v6708_v32 = vsub.f32 %v6563_v38, %v6614_v24 }
  0x7a   : > { %v379_v13 = vmul.f32 %v6694_v26, %v6694_v26  ;;  %v410_v15 = vsel %vm287_vm0, %v377_v0, 0.0  ;;  %v6715_v35 = vsub.f32 %v6568_v41, %v6614_v24  ;;  %v380_v18 = vmul.f32 %v6701_v29, %v6701_v29 }
  0x7b   : > { %v399_v54 = vadd.f32 %v398_v48, %v397_v49  ;;  %v412_v19 = vsel %vm287_vm0, %v378_v9, 0.0  ;;  %v6722_v38 = vsub.f32 %v6573_v44, %v6614_v24  ;;  %v381_v22 = vmul.f32 %v6708_v32, %v6708_v32 }
  0x7c   : > { %v414_v1 = vsel %vm287_vm0, %v379_v13, 0.0  ;;  %v6729_v41 = vsub.f32 %v6578_v47, %v6614_v24  ;;  %v382_v2 = vmul.f32 %v6715_v35, %v6715_v35  ;;  %v416_v4 = vsel %vm287_vm0, %v380_v18, 0.0 }
  0x7d   : > { %v401_v58 = vadd.f32 %v400_v52, %v399_v54  ;;  %v6736_v44 = vsub.f32 %v6583_v50, %v6614_v24  ;;  %v383_v36 = vmul.f32 %v6722_v38, %v6722_v38  ;;  %v418_v37 = vsel %vm287_vm0, %v381_v22, 0.0 }
  0x7e   : > { %v6743_v47 = vsub.f32 %v6588_v53, %v6614_v24  ;;  %v384_v40 = vmul.f32 %v6729_v41, %v6729_v41  ;;  %v420_v42 = vsel %vm287_vm0, %v382_v2, 0.0  ;;  %v6750_v50 = vsub.f32 %v6593_v56, %v6614_v24 }
  0x7f   : > { %v403_v63 = vadd.f32 %v402_v57, %v401_v58  ;;  %v385_v43 = vmul.f32 %v6736_v44, %v6736_v44  ;;  %v422_v46 = vsel %vm287_vm0, %v383_v36, 0.0  ;;  %v6757_v53 = vsub.f32 %v6598_v59, %v6614_v24 }
  0x80   : > { %v386_v49 = vmul.f32 %v6743_v47, %v6743_v47  ;;  %v424_v51 = vsel %vm287_vm0, %v384_v40, 0.0  ;;  %v6764_v56 = vsub.f32 %v6603_v62, %v6614_v24  ;;  %v387_v54 = vmul.f32 %v6750_v50, %v6750_v50 }
  0x81   : > { %v405_v7 = vadd.f32 %v404_v61, %v403_v63  ;;  %v426_v55 = vsel %vm287_vm0, %v385_v43, 0.0  ;;  %v6771_v59 = vsub.f32 %v6608_v5, %v6614_v24  ;;  %v388_v58 = vmul.f32 %v6757_v53, %v6757_v53 }
  0x82   : > { %v428_v60 = vsel %vm287_vm0, %v386_v49, 0.0  ;;  %v389_v62 = vmul.f32 %v6764_v56, %v6764_v56  ;;  %v430_v63 = vsel %vm287_vm0, %v387_v54, 0.0 }
  0x83   : > { %v407_v12 = vadd.f32 %v406_v6, %v405_v7  ;;  %v390_v6 = vmul.f32 %v6771_v59, %v6771_v59  ;;  %v432_v7 = vsel %vm287_vm0, %v388_v58, 0.0  ;;  %v8895_v58 = vmov 0.0  }
  0x84   : > { %v434_v5 = vsel %vm287_vm0, %v389_v62, 0.0 }
  0x85   : > { %v409_v16 = vadd.f32 %v408_v10, %v407_v12  ;;  %v436_v10 = vsel %vm287_vm0, %v390_v6, 0.0 }
  0x87   : > { %v411_v21 = vadd.f32 %v410_v15, %v409_v16 }
  0x89   : > { %v413_v33 = vadd.f32 %v412_v19, %v411_v21 }
  0x8b   : > { %v415_v34 = vadd.f32 %v414_v1, %v413_v33 }
  0x8d   : > { %v417_v39 = vadd.f32 %v416_v4, %v415_v34 }
  0x8f   : > { %v419_v14 = vadd.f32 %v418_v37, %v417_v39 }
  0x91   : > { %v421_v48 = vadd.f32 %v420_v42, %v419_v14 }
  0x93   : > { %v423_v52 = vadd.f32 %v422_v46, %v421_v48 }
  0x95   : > { %v425_v57 = vadd.f32 %v424_v51, %v423_v52 }
  0x97   : > { %v427_v61 = vadd.f32 %v426_v55, %v425_v57 }
  0x99   : > { %v429_v0 = vadd.f32 %v428_v60, %v427_v61 }
  0x9b   : > { %v431_v9 = vadd.f32 %v430_v63, %v429_v0 }
  0x9d   : > { %v433_v24 = vadd.f32 %v432_v7, %v431_v9 }
  0x9f   : > { %v435_v12 = vadd.f32 %v434_v5, %v433_v24 }
  0xa1   : > { %v437_v13 = vadd.f32 %v436_v10, %v435_v12 }
  0xa3   : > { %v438_v15 = vrot.slane %v437_v13, 4 }
  0xa5   : > { %v439_v16 = vadd.f32 %v438_v15, %v437_v13 }
  0xa7   : > { %v440_v18 = vrot.slane %v439_v16, 2 }
  0xa9   : > { %v441_v19 = vadd.f32 %v440_v18, %v439_v16 }
  0xab   : > { %v442_v21 = vrot.slane %v441_v19, 1 }
  0xad   : > { %v443_v22 = vadd.f32 %v442_v21, %v441_v19 }
  0xaf   : > { %v444_v1 = vmul.f32 0.0052083335, %v443_v22 }
  0xb1   : > { %v445_v33 = vadd.f32 1e-05, %v444_v1 }
  0xb3   : > { %6353 = vrsqrt.f32 %v445_v33 }
  0xbd   : > { %v6354_v2 = vpop.eup %6353 }
  0xbe   : > { %v449_v4 = vmul.f32 %v6354_v2, %v6626_v28  ;;  %v447_v34 = vmul.f32 %v6354_v2, %v6618_v25  ;;  %v450_v36 = vmul.f32 %v6354_v2, %v6630_v30  ;;  %v448_v37 = vmul.f32 %v6354_v2, %v6622_v27 }
  0xbf   : > { %v452_v39 = vmul.f32 %v6354_v2, %v6644_v3  ;;  %v451_v40 = vmul.f32 %v6354_v2, %v6634_v31  ;;  %v454_v42 = vmul.f32 %v6354_v2, %v6659_v11  ;;  %v453_v28 = vmul.f32 %v6354_v2, %v6650_v8 }
  0xc0   : > { %484 = vperm.xlu1 %6352, %v449_v4   ;;  %474 = vperm.xlu0 %6351, %v447_v34   ;;  %v456_v25 = vmul.f32 %v6354_v2, %v6673_v17  ;;  %v455_v30 = vmul.f32 %v6354_v2, %v6666_v45  ;;  %v458_v27 = vmul.f32 %v6354_v2, %v6687_v23 }
  0xc1   : > { %v457_v3 = vmul.f32 %v6354_v2, %v6680_v20  ;;  %v460_v31 = vmul.f32 %v6354_v2, %v6701_v29  ;;  %v459_v11 = vmul.f32 %v6354_v2, %v6694_v26  ;;  %v462_v8 = vmul.f32 %v6354_v2, %v6715_v35 }
  0xc2   : > { %v461_v17 = vmul.f32 %v6354_v2, %v6708_v32  ;;  %v464_v45 = vmul.f32 %v6354_v2, %v6729_v41  ;;  %v463_v23 = vmul.f32 %v6354_v2, %v6722_v38  ;;  %v466_v20 = vmul.f32 %v6354_v2, %v6743_v47 }
  0xc3   : > { %v465_v29 = vmul.f32 %v6354_v2, %v6736_v44  ;;  %v468_v26 = vmul.f32 %v6354_v2, %v6757_v53  ;;  %v467_v35 = vmul.f32 %v6354_v2, %v6750_v50  ;;  %v470_v32 = vmul.f32 %v6354_v2, %v6771_v59 }
  0xc4   : > { %489 = vperm.xlu1 %6352, %v450_v36   ;;  %479 = vperm.xlu0 %6351, %v448_v37   ;;  %v469_v41 = vmul.f32 %v6354_v2, %v6764_v56  ;;  %v1133_v38 = vlaneseq }
  0xc6   : > { %v6808_v14 = vshrl.u32 %v1133_v38, 7 }
  0xc8   : > { %499 = vperm.xlu1 %6352, %v452_v39   ;;  %494 = vperm.xlu0 %6351, %v451_v40   ;;  %v1136_v47 = vadd.s32 16, %v6808_v14  ;;  %v1135_v44 = vadd.s32 8, %v6808_v14  ;;  %v1137_v43 = vadd.s32 24, %v6808_v14  ;;  %v1138_v46 = vadd.s32 32, %v6808_v14 }
  0xc9   : > { %v1158_v48 = vand.u32 1, %v6808_v14  ;;  %v1139_v52 = vadd.s32 40, %v6808_v14  ;;  %v1140_v56 = vadd.s32 48, %v6808_v14  ;;  %v1141_v54 = vadd.s32 56, %v6808_v14 }
  0xca   : > { %v1160_v50 = vand.u32 1, %v1136_v47  ;;  %v1159_v53 = vand.u32 1, %v1135_v44  ;;  %v1161_v49 = vand.u32 1, %v1137_v43  ;;  %v1162_v51 = vand.u32 1, %v1138_v46  ;;  %v6919_v47 = vld [vmem:[%s8884_s1 + $0x1] ss:$0 sm:$0xff] }
  0xcb   : > { %vm1182_vm2 = vcmp.eq.s32.totalorder %v1158_v48, 0  ;;  %v1142_v55 = vadd.s32 64, %v6808_v14  ;;  %v1143_v57 = vadd.s32 72, %v6808_v14  ;;  %v1144_v59 = vadd.s32 80, %v6808_v14  ;;  %v6937_v48 = vld [vmem:[%s8884_s1 + $0x2] ss:$0 sm:$0xff] }
  0xcc   : > { %509 = vperm.xlu1 %6352, %v454_v42   ;;  %504 = vperm.xlu0 %6351, %v453_v28   ;;  %vm1184_vm1 = vcmp.eq.s32.totalorder %v1160_v50, 0  ;;  %vm1183_vm3 = vcmp.eq.s32.totalorder %v1159_v53, 0  ;;  %vm1185_vm4 = vcmp.eq.s32.totalorder %v1161_v49, 0  ;;  %vm1186_vm5 = vcmp.eq.s32.totalorder %v1162_v51, 0 }
  0xcd   : > { %v6822_v60 = vsel %vm1184_vm1, 1.0, %v8895_v58  ;;  %v6825_v61 = vsel %vm1182_vm2, 1.0, %v8895_v58  ;;  %v6828_v62 = vsel %vm1183_vm3, 1.0, %v8895_v58  ;;  %v6831_v63 = vsel %vm1185_vm4, 1.0, %v8895_v58 }
  0xce   : > { %8931 = vst [vmem:[#allocation8_spill] sm:$0xff] %v6822_v60  ;;  %v1163_v0 = vand.u32 1, %v1139_v52  ;;  %v1164_v6 = vand.u32 1, %v1140_v56  ;;  %v1165_v7 = vand.u32 1, %v1141_v54  ;;  %v6834_v9 = vsel %vm1186_vm5, 1.0, %v8895_v58 }
  0xcf   : > { %8932 = vst [vmem:[#allocation9_spill] sm:$0xff] %v6834_v9  ;;  %v1166_v5 = vand.u32 1, %v1142_v55  ;;  %v1145_v24 = vadd.s32 88, %v6808_v14  ;;  %v1146_v10 = vadd.s32 96, %v6808_v14  ;;  %v1167_v12 = vand.u32 1, %v1143_v57 }
  0xd0   : > { %519 = vperm.xlu1 %6352, %v456_v25   ;;  %514 = vperm.xlu0 %6351, %v455_v30   ;;  %v1168_v13 = vand.u32 1, %v1144_v59  ;;  %v1147_v15 = vadd.s32 104, %v6808_v14  ;;  %v1148_v16 = vadd.s32 112, %v6808_v14  ;;  %v1149_v18 = vadd.s32 120, %v6808_v14  ;;  %v6955_v56 = vld [vmem:[%s8884_s1 + $0x3] ss:$0 sm:$0xff] }
  0xd1   : > { %v1150_v19 = vadd.s32 128, %v6808_v14  ;;  %v1151_v21 = vadd.s32 136, %v6808_v14  ;;  %v1152_v22 = vadd.s32 144, %v6808_v14  ;;  %vm6844_vm6 = vcmp.eq.s32.totalorder %v1163_v0, 0 }
  0xd2   : > { %vm6848_vm7 = vcmp.eq.s32.totalorder %v1164_v6, 0  ;;  %vm6852_vm8 = vcmp.eq.s32.totalorder %v1165_v7, 0  ;;  %v1153_v4 = vadd.s32 152, %v6808_v14  ;;  %vm6857_vm9 = vcmp.eq.s32.totalorder %v1166_v5, 0  ;;  %v6980_v7 = vld [vmem:[%s8884_s1] ss:$0 sm:$0xff] }
  0xd3   : > { %v1169_v36 = vand.u32 1, %v1145_v24  ;;  %v1170_v37 = vand.u32 1, %v1146_v10  ;;  %v1154_v39 = vadd.s32 160, %v6808_v14  ;;  %vm6862_vm10 = vcmp.eq.s32.totalorder %v1167_v12, 0 }
  0xd4   : > { %529 = vperm.xlu1 %6352, %v458_v27   ;;  %524 = vperm.xlu0 %6351, %v457_v3   ;;  %vm6866_vm11 = vcmp.eq.s32.totalorder %v1168_v13, 0  ;;  %v1171_v28 = vand.u32 1, %v1147_v15  ;;  %v1172_v25 = vand.u32 1, %v1148_v16  ;;  %v1173_v30 = vand.u32 1, %v1149_v18 }
  0xd5   : > { %v1174_v27 = vand.u32 1, %v1150_v19  ;;  %v1175_v3 = vand.u32 1, %v1151_v21  ;;  %vm1193_vm12 = vcmp.eq.s32.totalorder %v1169_v36, 0  ;;  %vm1194_vm13 = vcmp.eq.s32.totalorder %v1170_v37, 0 }
  0xd6   : > { %vm1195_vm14 = vcmp.eq.s32.totalorder %v1171_v28, 0  ;;  %vm1196_vm15 = vcmp.eq.s32.totalorder %v1172_v25, 0  ;;  %vm6900_vm0 = vcmp.eq.s32.totalorder %v1173_v30, 0  ;;  %vm678_vm4 = vcmask 1046528  }
  0xd7   : > { %vm6904_vm1 = vcmp.eq.s32.totalorder %v1174_v27, 0  ;;  %vm6908_vm2 = vcmp.eq.s32.totalorder %v1175_v3, 0  ;;  %vm830_vm5 = vcmask 1045504   ;;  %v6922_v44 = vsel %vm1193_vm12, 1.0, %v8895_v58 }
  0xd8   : > { %539 = vperm.xlu1 %6352, %v460_v31   ;;  %534 = vperm.xlu0 %6351, %v459_v11   ;;  %v1176_v31 = vand.u32 1, %v1152_v22  ;;  %v6873_v11 = vsel %vm6844_vm6, 1.0, %v8895_v58  ;;  %vm982_vm6 = vcmask 1044480   ;;  %8958 = vst [vmem:[#allocation15_spill] sm:$0xff] %v6922_v44  ;;  %v6925_v43 = vsel %vm1194_vm13, 1.0, %v8895_v58 }
  0xd9   : > { %8959 = vst [vmem:[#allocation16_spill] sm:$0xff] %v6925_v43  ;;  %v6932_v50 = vadd.s32 184, %v6808_v14  ;;  %v6940_v53 = vsel %vm1195_vm14, 1.0, %v8895_v58  ;;  %v6943_v49 = vsel %vm1196_vm15, 1.0, %v8895_v58  ;;  %v6950_v52 = vadd.s32 168, %v6808_v14 }
  0xda   : > { %vm6912_vm3 = vcmp.eq.s32.totalorder %v1176_v31, 0  ;;  %8962 = vst [vmem:[#allocation17_spill] sm:$0xff] %v6940_v53  ;;  %8963 = vst [vmem:[#allocation18_spill] sm:$0xff] %v6943_v49  ;;  %v6960_v57 = vsel %vm6900_vm0, 1.0, %v8895_v58  ;;  %v6965_v59 = vsel %vm6904_vm1, 1.0, %v8895_v58  ;;  %v6970_v0 = vsel %vm6908_vm2, 1.0, %v8895_v58 }
  0xdb   : > { %8966 = vst [vmem:[#allocation19_spill] sm:$0xff] %v6960_v57  ;;  %8967 = vst [vmem:[#allocation20_spill] sm:$0xff] %v6965_v59  ;;  %v6975_v6 = vsel %vm6912_vm3, 1.0, %v8895_v58  ;;  %v7001_v22 = vadd.s32 176, %v6808_v14  ;;  %vm6403_vm12 = vmmov 0   ;;  %vm4340_vm13 = vcmask 1042432  }
  0xdc   : > { %549 = vperm.xlu1 %6352, %v462_v8   ;;  %544 = vperm.xlu0 %6351, %v461_v17   ;;  %v6878_v8 = vsel %vm6848_vm7, 1.0, %v8895_v58  ;;  %v6883_v17 = vsel %vm6852_vm8, 1.0, %v8895_v58  ;;  %8968 = vst [vmem:[#allocation21_spill] sm:$0xff] %v6970_v0  ;;  %8969 = vst [vmem:[#allocation22_spill] sm:$0xff] %v6975_v6 }
  0xdd   : > { %8945 = vst [vmem:[#allocation10_spill] sm:$0xff] %v6878_v8  ;;  %8946 = vst [vmem:[#allocation11_spill] sm:$0xff] %v6883_v17 }
  0xe0   : > { %559 = vperm.xlu1 %6352, %v464_v45   ;;  %554 = vperm.xlu0 %6351, %v463_v23   ;;  %v1177_v45 = vand.u32 1, %v1153_v4  ;;  %v6888_v23 = vsel %vm6857_vm9, 1.0, %v8895_v58 }
  0xe1   : > { %8947 = vst [vmem:[#allocation12_spill] sm:$0xff] %v6888_v23 }
  0xe2   : > { %vm6927_vm7 = vcmp.eq.s32.totalorder %v1177_v45, 0 }
  0xe3   : > { %v6988_v12 = vsel %vm6927_vm7, 1.0, %v8895_v58 }
  0xe4   : > { %569 = vperm.xlu1 %6352, %v466_v20   ;;  %564 = vperm.xlu0 %6351, %v465_v29   ;;  %v1178_v20 = vand.u32 1, %v1154_v39  ;;  %v6893_v29 = vsel %vm6862_vm10, 1.0, %v8895_v58 }
  0xe5   : > { %8948 = vst [vmem:[#allocation13_spill] sm:$0xff] %v6893_v29 }
  0xe6   : > { %vm6945_vm8 = vcmp.eq.s32.totalorder %v1178_v20, 0 }
  0xe7   : > { %v6995_v16 = vsel %vm6945_vm8, 1.0, %v8895_v58 }
  0xe8   : > { %579 = vperm.xlu1 %6352, %v468_v26   ;;  %574 = vperm.xlu0 %6351, %v467_v35   ;;  %v6898_v26 = vsel %vm6866_vm11, 1.0, %v8895_v58 }
  0xe9   : > { %8949 = vst [vmem:[#allocation14_spill] sm:$0xff] %v6898_v26 }
  0xec   : > { %589 = vperm.xlu1 %6352, %v470_v32   ;;  %584 = vperm.xlu0 %6351, %v469_v41  }
 0x13f   : > { %v485_v54 = vpop.permute.xlu1 %484  ;;  %v475_v55 = vpop.permute.xlu0 %474 }
 0x140   : > { %v632_v5 = vmul.f32 %v6919_v47, %v485_v54  ;;  %v784_v24 = vmul.f32 %v6937_v48, %v485_v54  ;;  %v936_v10 = vmul.f32 %v6955_v56, %v485_v54  ;;  %v630_v13 = vmul.f32 %v6919_v47, %v475_v55 }
 0x141   : > { %v782_v15 = vmul.f32 %v6937_v48, %v475_v55  ;;  %v600_v19 = vmul.f32 %v6980_v7, %v485_v54  ;;  %v934_v21 = vmul.f32 %v6955_v56, %v475_v55  ;;  %v598_v34 = vmul.f32 %v6980_v7, %v475_v55 }
 0x142   : > { %v682_v33 = vrot.slane %v632_v5, 1  ;;  %v834_v2 = vrot.slane %v784_v24, 2  ;;  %v986_v4 = vrot.slane %v936_v10, 3  ;;  %v679_v39 = vrot.slane %v630_v13, 1 }
 0x143   : > { %v490_v36 = vpop.permute.xlu1 %489  ;;  %v480_v37 = vpop.permute.xlu0 %479  ;;  %v831_v14 = vrot.slane %v782_v15, 2  ;;  %v983_v3 = vrot.slane %v934_v21, 3 }
 0x144   : > { %v633_v40 = vmul.f32 %v6919_v47, %v490_v36  ;;  %v7007_v42 = vmul.f32 %v6937_v48, %v490_v36  ;;  %v7010_v28 = vmul.f32 %v6955_v56, %v490_v36  ;;  %v631_v25 = vmul.f32 %v6919_v47, %v480_v37 }
 0x145   : > { %v783_v30 = vmul.f32 %v6937_v48, %v480_v37  ;;  %v935_v27 = vmul.f32 %v6955_v56, %v480_v37  ;;  %v601_v35 = vmul.f32 %v6980_v7, %v490_v36  ;;  %v599_v5 = vmul.f32 %v6980_v7, %v480_v37 }
 0x146   : > { %v684_v31 = vrot.slane %v633_v40, 1  ;;  %v836_v45 = vrot.slane %v7007_v42, 2  ;;  %v988_v20 = vrot.slane %v7010_v28, 3  ;;  %v680_v32 = vrot.slane %v631_v25, 1 }
 0x147   : > { %v832_v41 = vrot.slane %v783_v30, 2  ;;  %v984_v38 = vrot.slane %v935_v27, 3  ;;  %v500_v46 = vpop.permute.xlu1 %499  ;;  %v495_v25 = vpop.permute.xlu0 %494 }
 0x148   : > { %v685_v51 = vsel %vm678_vm4, %v682_v33, %v684_v31  ;;  %v837_v54 = vsel %vm830_vm5, %v834_v2, %v836_v45  ;;  %v989_v55 = vsel %vm982_vm6, %v986_v4, %v988_v20  ;;  %v681_v10 = vsel %vm678_vm4, %v679_v39, %v680_v32 }
 0x149   : > { %v752_v24 = vadd.f32 %v685_v51, %v600_v19  ;;  %v683_v13 = vsel %vm678_vm4, %v680_v32, %v682_v33  ;;  %v7027_v15 = vmul.f32 %v6980_v7, %v500_v46  ;;  %v750_v21 = vadd.f32 %v681_v10, %v598_v34  ;;  %v7041_v33 = vld [vmem:[%s8886_s3] ss:$0 sm:$0xff] }
 0x14a   : > { %v751_v36 = vadd.f32 %v683_v13, %v599_v5  ;;  %v833_v40 = vsel %vm830_vm5, %v831_v14, %v832_v41  ;;  %v835_v42 = vsel %vm830_vm5, %v832_v41, %v834_v2  ;;  %v985_v27 = vsel %vm982_vm6, %v983_v3, %v984_v38 }
 0x14b   : > { %v904_v30 = vadd.f32 %v837_v54, %v752_v24  ;;  %v7033_v37 = vmul.f32 %v6919_v47, %v500_v46  ;;  %v7036_v19 = vmul.f32 %v6937_v48, %v500_v46  ;;  %v902_v34 = vadd.f32 %v833_v40, %v750_v21  ;;  %v510_v54 = vpop.permute.xlu1 %509 }
 0x14c   : > { %v903_v39 = vadd.f32 %v835_v42, %v751_v36  ;;  %v987_v14 = vsel %vm982_vm6, %v984_v38, %v986_v4  ;;  %v7045_v2 = vmul.f32 %v6955_v56, %v500_v46  ;;  %v602_v41 = vmul.f32 %v6980_v7, %v495_v25 }
 0x14d   : > { %v1056_v32 = vadd.f32 %v989_v55, %v904_v30  ;;  %v688_v3 = vrot.slane %v7033_v37, 1  ;;  %v634_v51 = vmul.f32 %v6919_v47, %v495_v25  ;;  %v1054_v5 = vadd.f32 %v985_v27, %v902_v34 }
 0x14e   : > { %v1055_v24 = vadd.f32 %v987_v14, %v903_v39  ;;  %v840_v10 = vrot.slane %v7036_v19, 2  ;;  %v786_v13 = vmul.f32 %v6937_v48, %v495_v25  ;;  %v992_v4 = vrot.slane %v7045_v2, 3 }
 0x14f   : > { %v7053_v21 = vadd.f32 %v7041_v33, %v1056_v32  ;;  %v686_v38 = vrot.slane %v634_v51, 1  ;;  %v938_v46 = vmul.f32 %v6955_v56, %v495_v25  ;;  %v7058_v55 = vadd.f32 %v7041_v33, %v1054_v5 }
 0x150   : > { %v7061_v36 = vadd.f32 %v7041_v33, %v1055_v24  ;;  %v838_v40 = vrot.slane %v786_v13, 2  ;;  %v7064_v42 = vmul.f32 %v6919_v47, %v510_v54  ;;  %v7077_v5 = vmul.f32 %v6980_v7, %v510_v54  ;;  %v505_v13 = vpop.permute.xlu0 %504 }
 0x151   : > { %v8892_v30 = vmax.f32 %v7053_v21, 0.0  ;;  %v687_v27 = vsel %vm678_vm4, %v684_v31, %v686_v38  ;;  %v689_v37 = vsel %vm678_vm4, %v686_v38, %v688_v3  ;;  %v990_v19 = vrot.slane %v938_v46, 3 }
 0x152   : > { %v8893_v34 = vmax.f32 %v7058_v55, 0.0  ;;  %v8894_v25 = vmax.f32 %v7061_v36, 0.0  ;;  %v753_v39 = vadd.f32 %v687_v27, %v601_v35  ;;  %v754_v14 = vadd.f32 %v689_v37, %v602_v41 }
 0x153   : > { %v1232_v2 = vmul.f32 %v6822_v60, %v8892_v30  ;;  %v839_v32 = vsel %vm830_vm5, %v836_v45, %v838_v40  ;;  %v841_v51 = vsel %vm830_vm5, %v838_v40, %v840_v10  ;;  %v991_v45 = vsel %vm982_vm6, %v988_v20, %v990_v19 }
 0x154   : > { %v1230_v31 = vmul.f32 %v6825_v61, %v8893_v34  ;;  %v1231_v35 = vmul.f32 %v6828_v62, %v8894_v25  ;;  %v905_v41 = vadd.f32 %v839_v32, %v753_v39  ;;  %v906_v24 = vadd.f32 %v841_v51, %v754_v14  ;;  %v520_v25 = vpop.permute.xlu1 %519 }
 0x155   : > { %v993_v38 = vsel %vm982_vm6, %v990_v19, %v992_v4  ;;  %v789_v46 = vmul.f32 %v6937_v48, %v510_v54  ;;  %v7091_v40 = vmul.f32 %v6955_v56, %v510_v54  ;;  %v692_v34 = vrot.slane %v7064_v42, 1 }
 0x156   : > { %v1254_v27 = vadd.f32 %v1231_v35, %v1230_v31  ;;  %v1057_v37 = vadd.f32 %v991_v45, %v905_v41  ;;  %v1058_v30 = vadd.f32 %v993_v38, %v906_v24  ;;  %v604_v14 = vmul.f32 %v6980_v7, %v505_v13 }
 0x157   : > { %v844_v39 = vrot.slane %v789_v46, 2  ;;  %v636_v28 = vmul.f32 %v6919_v47, %v505_v13  ;;  %v788_v20 = vmul.f32 %v6937_v48, %v505_v13  ;;  %v996_v54 = vrot.slane %v7091_v40, 3 }
 0x158   : > { %v7098_v19 = vadd.f32 %v7041_v33, %v1057_v37  ;;  %v7101_v32 = vadd.f32 %v7041_v33, %v1058_v30  ;;  %v940_v51 = vmul.f32 %v6955_v56, %v505_v13  ;;  %v1255_v31 = vadd.f32 %v1254_v27, %v1232_v2 }
 0x159   : > { %v690_v42 = vrot.slane %v636_v28, 1  ;;  %v842_v35 = vrot.slane %v788_v20, 2  ;;  %v7106_v41 = vmul.f32 %v6919_v47, %v520_v25  ;;  %v7111_v46 = vmul.f32 %v6980_v7, %v520_v25 }
 0x15a   : > { %v8898_v24 = vmax.f32 %v7098_v19, 0.0  ;;  %v8899_v45 = vmax.f32 %v7101_v32, 0.0  ;;  %v994_v38 = vrot.slane %v940_v51, 3  ;;  %v7117_v2 = vmul.f32 %v6937_v48, %v520_v25  ;;  %v515_v51 = vpop.permute.xlu0 %514 }
 0x15b   : > { %v691_v30 = vsel %vm678_vm4, %v688_v3, %v690_v42  ;;  %v693_v40 = vsel %vm678_vm4, %v690_v42, %v692_v34  ;;  %v843_v13 = vsel %vm830_vm5, %v840_v10, %v842_v35  ;;  %v845_v20 = vsel %vm830_vm5, %v842_v35, %v844_v39 }
 0x15c   : > { %v1233_v27 = vmul.f32 %v6831_v63, %v8898_v24  ;;  %v755_v37 = vadd.f32 %v691_v30, %v7027_v15  ;;  %v756_v28 = vadd.f32 %v693_v40, %v604_v14  ;;  %v1234_v3 = vmul.f32 %v6834_v9, %v8899_v45  ;;  %v530_v40 = vpop.permute.xlu1 %529 }
 0x15d   : > { %v995_v42 = vsel %vm982_vm6, %v992_v4, %v994_v38  ;;  %v997_v10 = vsel %vm982_vm6, %v994_v38, %v996_v54  ;;  %v696_v58 = vrot.slane %v7106_v41, 1  ;;  %v7131_v24 = vmul.f32 %v6955_v56, %v520_v25 }
 0x15e   : > { %v1256_v1 = vadd.f32 %v1255_v31, %v1233_v27  ;;  %v907_v18 = vadd.f32 %v843_v13, %v755_v37  ;;  %v908_v60 = vadd.f32 %v845_v20, %v756_v28  ;;  %v848_v15 = vrot.slane %v7117_v2, 2 }
 0x15f   : > { %v638_v14 = vmul.f32 %v6919_v47, %v515_v51  ;;  %v790_v35 = vmul.f32 %v6937_v48, %v515_v51  ;;  %v942_v30 = vmul.f32 %v6955_v56, %v515_v51  ;;  %v606_v41 = vmul.f32 %v6980_v7, %v515_v51 }
 0x160   : > { %v1257_v4 = vadd.f32 %v1256_v1, %v1234_v3  ;;  %v1059_v45 = vadd.f32 %v995_v42, %v907_v18  ;;  %v1060_v38 = vadd.f32 %v997_v10, %v908_v60  ;;  %v1000_v31 = vrot.slane %v7131_v24, 3  ;;  %v525_v10 = vpop.permute.xlu0 %524 }
 0x161   : > { %v694_v13 = vrot.slane %v638_v14, 1  ;;  %v846_v27 = vrot.slane %v790_v35, 2  ;;  %v998_v25 = vrot.slane %v942_v30, 3  ;;  %v7146_v28 = vmul.f32 %v6919_v47, %v530_v40 }
 0x162   : > { %v7140_v37 = vadd.f32 %v7041_v33, %v1059_v45  ;;  %v7143_v2 = vadd.f32 %v7041_v33, %v1060_v38  ;;  %v7149_v1 = vmul.f32 %v6937_v48, %v530_v40  ;;  %v7155_v20 = vmul.f32 %v6980_v7, %v530_v40 }
 0x163   : > { %v695_v60 = vsel %vm678_vm4, %v692_v34, %v694_v13  ;;  %v697_v18 = vsel %vm678_vm4, %v694_v13, %v696_v58  ;;  %v847_v24 = vsel %vm830_vm5, %v844_v39, %v846_v27  ;;  %v849_v14 = vsel %vm830_vm5, %v846_v27, %v848_v15 }
 0x164   : > { %v8901_v45 = vmax.f32 %v7140_v37, 0.0  ;;  %v757_v3 = vadd.f32 %v695_v60, %v7077_v5  ;;  %v758_v42 = vadd.f32 %v697_v18, %v606_v41  ;;  %v999_v35 = vsel %vm982_vm6, %v996_v54, %v998_v25  ;;  %v540_v60 = vpop.permute.xlu1 %539 }
 0x165   : > { %v1001_v34 = vsel %vm982_vm6, %v998_v25, %v1000_v31  ;;  %v8970_v5 = vmax.f32 %v7143_v2, 0.0  ;;  %v7172_v27 = vmul.f32 %v6955_v56, %v530_v40  ;;  %v640_v54 = vmul.f32 %v6919_v47, %v525_v10 }
 0x166   : > { %v1235_v39 = vmul.f32 %v6873_v11, %v8901_v45  ;;  %v909_v38 = vadd.f32 %v847_v24, %v757_v3  ;;  %v910_v13 = vadd.f32 %v849_v14, %v758_v42  ;;  %v792_v25 = vmul.f32 %v6937_v48, %v525_v10 }
 0x167   : > { %v1236_v41 = vmul.f32 %v6878_v8, %v8970_v5  ;;  %v944_v24 = vmul.f32 %v6955_v56, %v525_v10  ;;  %v1004_v3 = vrot.slane %v7172_v27, 3  ;;  %v608_v42 = vmul.f32 %v6980_v7, %v525_v10 }
 0x168   : > { %v1258_v18 = vadd.f32 %v1257_v4, %v1235_v39  ;;  %v1061_v30 = vadd.f32 %v999_v35, %v909_v38  ;;  %v1062_v9 = vadd.f32 %v1001_v34, %v910_v13  ;;  %v698_v14 = vrot.slane %v640_v54, 1 }
 0x169   : > { %v850_v45 = vrot.slane %v792_v25, 2  ;;  %v1002_v51 = vrot.slane %v944_v24, 3  ;;  %v7186_v8 = vmul.f32 %v6980_v7, %v540_v60  ;;  %v8971_v34 = vrot.slane %v7146_v28, 1 }
 0x16a   : > { %v7180_v5 = vadd.f32 %v7041_v33, %v1061_v30  ;;  %v7183_v40 = vadd.f32 %v7041_v33, %v1062_v9  ;;  %v1259_v4 = vadd.f32 %v1258_v18, %v1236_v41  ;;  %v699_v35 = vsel %vm678_vm4, %v696_v58, %v698_v14 }
 0x16b   : > { %v701_v39 = vsel %vm678_vm4, %v698_v14, %v8971_v34  ;;  %v851_v10 = vsel %vm830_vm5, %v848_v15, %v850_v45  ;;  %v759_v9 = vadd.f32 %v699_v35, %v7111_v46  ;;  %v8972_v27 = vrot.slane %v7149_v1, 2  ;;  %v535_v15 = vpop.permute.xlu0 %534 }
 0x16c   : > { %v8903_v38 = vmax.f32 %v7180_v5, 0.0  ;;  %v8904_v30 = vmax.f32 %v7183_v40, 0.0  ;;  %v760_v13 = vadd.f32 %v701_v39, %v608_v42  ;;  %v1003_v41 = vsel %vm982_vm6, %v1000_v31, %v1002_v51 }
 0x16d   : > { %v853_v54 = vsel %vm830_vm5, %v850_v45, %v8972_v27  ;;  %v7201_v58 = vmul.f32 %v6919_v47, %v540_v60  ;;  %v7204_v25 = vmul.f32 %v6937_v48, %v540_v60  ;;  %v911_v24 = vadd.f32 %v851_v10, %v759_v9  ;;  %v550_v10 = vpop.permute.xlu1 %549 }
 0x16e   : > { %v1237_v18 = vmul.f32 %v6883_v17, %v8903_v38  ;;  %v912_v46 = vadd.f32 %v853_v54, %v760_v13  ;;  %v1005_v42 = vsel %vm982_vm6, %v1002_v51, %v1004_v3  ;;  %v1238_v45 = vmul.f32 %v6888_v23, %v8904_v30 }
 0x16f   : > { %v704_v31 = vrot.slane %v7201_v58, 1  ;;  %v856_v14 = vrot.slane %v7204_v25, 2  ;;  %v7216_v35 = vmul.f32 %v6955_v56, %v540_v60  ;;  %v1063_v39 = vadd.f32 %v1003_v41, %v911_v24  ;;  %v545_v30 = vpop.permute.xlu0 %544 }
 0x170   : > { %v1260_v34 = vadd.f32 %v1259_v4, %v1237_v18  ;;  %v1064_v27 = vadd.f32 %v1005_v42, %v912_v46  ;;  %v642_v38 = vmul.f32 %v6919_v47, %v535_v15  ;;  %v610_v51 = vmul.f32 %v6980_v7, %v535_v15 }
 0x171   : > { %v1008_v9 = vrot.slane %v7216_v35, 3  ;;  %v794_v13 = vmul.f32 %v6937_v48, %v535_v15  ;;  %v946_v54 = vmul.f32 %v6955_v56, %v535_v15  ;;  %v7224_v25 = vadd.f32 %v7041_v33, %v1063_v39 }
 0x172   : > { %v1261_v58 = vadd.f32 %v1260_v34, %v1238_v45  ;;  %v7227_v60 = vadd.f32 %v7041_v33, %v1064_v27  ;;  %v702_v4 = vrot.slane %v642_v38, 1  ;;  %v7230_v24 = vmul.f32 %v6919_v47, %v550_v10 }
 0x173   : > { %v854_v41 = vrot.slane %v794_v13, 2  ;;  %v1006_v18 = vrot.slane %v946_v54, 3  ;;  %v7233_v46 = vmul.f32 %v6937_v48, %v550_v10  ;;  %v8907_v42 = vmax.f32 %v7224_v25, 0.0 }
 0x174   : > { %v8973_v45 = vrot.slane %v7146_v28, 1  ;;  %v705_v34 = vsel %vm678_vm4, %v702_v4, %v704_v31  ;;  %v8974_v27 = vrot.slane %v7149_v1, 2  ;;  %v7246_v54 = vmul.f32 %v6980_v7, %v550_v10 }
 0x175   : > { %v762_v39 = vadd.f32 %v705_v34, %v610_v51  ;;  %v1239_v15 = vmul.f32 %v6893_v29, %v8907_v42  ;;  %v8975_v28 = vmax.f32 %v7227_v60, 0.0  ;;  %v708_v34 = vrot.slane %v7230_v24, 1 }
 0x176   : > { %v703_v35 = vsel %vm678_vm4, %v8973_v45, %v702_v4  ;;  %v855_v13 = vsel %vm830_vm5, %v8974_v27, %v854_v41  ;;  %v857_v4 = vsel %vm830_vm5, %v854_v41, %v856_v14  ;;  %v860_v23 = vrot.slane %v7233_v46, 2 }
 0x177   : > { %v761_v38 = vadd.f32 %v703_v35, %v7155_v20  ;;  %v1240_v45 = vmul.f32 %v6898_v26, %v8975_v28  ;;  %v1007_v20 = vsel %vm982_vm6, %v1004_v3, %v1006_v18  ;;  %v914_v1 = vadd.f32 %v857_v4, %v762_v39 }
 0x178   : > { %v1009_v35 = vsel %vm982_vm6, %v1006_v18, %v1008_v9  ;;  %v1262_v27 = vadd.f32 %v1261_v58, %v1239_v15  ;;  %v7260_v17 = vmul.f32 %v6955_v56, %v550_v10  ;;  %v644_v42 = vmul.f32 %v6919_v47, %v545_v30 }
 0x179   : > { %v913_v51 = vadd.f32 %v855_v13, %v761_v38  ;;  %v1066_v28 = vadd.f32 %v1009_v35, %v914_v1  ;;  %v796_v41 = vmul.f32 %v6937_v48, %v545_v30  ;;  %v948_v3 = vmul.f32 %v6955_v56, %v545_v30  ;;  %v560_v38 = vpop.permute.xlu1 %559 }
 0x17a   : > { %v1263_v39 = vadd.f32 %v1262_v27, %v1240_v45  ;;  %v1012_v18 = vrot.slane %v7260_v17, 3  ;;  %v612_v24 = vmul.f32 %v6980_v7, %v545_v30  ;;  %v706_v58 = vrot.slane %v644_v42, 1 }
 0x17b   : > { %v1065_v29 = vadd.f32 %v1007_v20, %v913_v51  ;;  %v7271_v10 = vadd.f32 %v7041_v33, %v1066_v28  ;;  %v858_v15 = vrot.slane %v796_v41, 2  ;;  %v1010_v13 = vrot.slane %v948_v3, 3  ;;  %v555_v28 = vpop.permute.xlu0 %554 }
 0x17c   : > { %v707_v4 = vsel %vm678_vm4, %v704_v31, %v706_v58  ;;  %v709_v20 = vsel %vm678_vm4, %v706_v58, %v708_v34  ;;  %v7276_v51 = vmul.f32 %v6919_v47, %v560_v38  ;;  %v7279_v17 = vmul.f32 %v6937_v48, %v560_v38 }
 0x17d   : > { %v7268_v46 = vadd.f32 %v7041_v33, %v1065_v29  ;;  %v763_v42 = vadd.f32 %v707_v4, %v7186_v8  ;;  %v764_v45 = vadd.f32 %v709_v20, %v612_v24  ;;  %v859_v1 = vsel %vm830_vm5, %v856_v14, %v858_v15 }
 0x17e   : > { %v861_v35 = vsel %vm830_vm5, %v858_v15, %v860_v23  ;;  %v1011_v31 = vsel %vm982_vm6, %v1008_v9, %v1010_v13  ;;  %v7288_v27 = vmul.f32 %v6980_v7, %v560_v38  ;;  %v1013_v29 = vsel %vm982_vm6, %v1010_v13, %v1012_v18 }
 0x17f   : > { %v8910_v30 = vmax.f32 %v7268_v46, 0.0  ;;  %v915_v3 = vadd.f32 %v859_v1, %v763_v42  ;;  %v916_v58 = vadd.f32 %v861_v35, %v764_v45  ;;  %v8976_v8 = vmax.f32 %v7271_v10, 0.0  ;;  %v570_v42 = vpop.permute.xlu1 %569 }
 0x180   : > { %v712_v24 = vrot.slane %v7276_v51, 1  ;;  %v864_v9 = vrot.slane %v7279_v17, 2  ;;  %v7300_v15 = vmul.f32 %v6955_v56, %v560_v38  ;;  %v614_v13 = vmul.f32 %v6980_v7, %v555_v28 }
 0x181   : > { %v1241_v41 = vmul.f32 %v6922_v44, %v8910_v30  ;;  %v1242_v14 = vmul.f32 %v6925_v43, %v8976_v8  ;;  %v1067_v20 = vadd.f32 %v1011_v31, %v915_v3  ;;  %v1068_v26 = vadd.f32 %v1013_v29, %v916_v58 }
 0x182   : > { %v646_v30 = vmul.f32 %v6919_v47, %v555_v28  ;;  %v1016_v45 = vrot.slane %v7300_v15, 3  ;;  %v798_v1 = vmul.f32 %v6937_v48, %v555_v28  ;;  %v950_v35 = vmul.f32 %v6955_v56, %v555_v28 }
 0x183   : > { %v1264_v4 = vadd.f32 %v1263_v39, %v1241_v41  ;;  %v7308_v17 = vadd.f32 %v7041_v33, %v1067_v20  ;;  %v7311_v38 = vadd.f32 %v7041_v33, %v1068_v26  ;;  %v7314_v41 = vmul.f32 %v6919_v47, %v570_v42  ;;  %v565_v20 = vpop.permute.xlu0 %564 }
 0x184   : > { %v710_v39 = vrot.slane %v646_v30, 1  ;;  %v862_v29 = vrot.slane %v798_v1, 2  ;;  %v1014_v31 = vrot.slane %v950_v35, 3  ;;  %v7317_v3 = vmul.f32 %v6937_v48, %v570_v42 }
 0x185   : > { %v1265_v51 = vadd.f32 %v1264_v4, %v1242_v14  ;;  %v8913_v58 = vmax.f32 %v7308_v17, 0.0  ;;  %v8915_v28 = vmax.f32 %v7311_v38, 0.0  ;;  %v7326_v4 = vmul.f32 %v6980_v7, %v570_v42 }
 0x186   : > { %v711_v8 = vsel %vm678_vm4, %v708_v34, %v710_v39  ;;  %v713_v14 = vsel %vm678_vm4, %v710_v39, %v712_v24  ;;  %v863_v30 = vsel %vm830_vm5, %v860_v23, %v862_v29  ;;  %v865_v34 = vsel %vm830_vm5, %v862_v29, %v864_v9 }
 0x187   : > { %v765_v26 = vadd.f32 %v711_v8, %v7246_v54  ;;  %v766_v15 = vadd.f32 %v713_v14, %v614_v13  ;;  %v1243_v1 = vmul.f32 %v6940_v53, %v8913_v58  ;;  %v1244_v35 = vmul.f32 %v6943_v49, %v8915_v28 }
 0x188   : > { %v1015_v39 = vsel %vm982_vm6, %v1012_v18, %v1014_v31  ;;  %v1017_v23 = vsel %vm982_vm6, %v1014_v31, %v1016_v45  ;;  %v716_v8 = vrot.slane %v7314_v41, 1  ;;  %v868_v43 = vrot.slane %v7317_v3, 2 }
 0x189   : > { %v917_v54 = vadd.f32 %v863_v30, %v765_v26  ;;  %v918_v13 = vadd.f32 %v865_v34, %v766_v15  ;;  %v1266_v14 = vadd.f32 %v1265_v51, %v1243_v1  ;;  %v7340_v44 = vmul.f32 %v6955_v56, %v570_v42  ;;  %v580_v26 = vpop.permute.xlu1 %579 }
 0x18a   : > { %v648_v58 = vmul.f32 %v6919_v47, %v565_v20  ;;  %v800_v29 = vmul.f32 %v6937_v48, %v565_v20  ;;  %v952_v18 = vmul.f32 %v6955_v56, %v565_v20  ;;  %v616_v41 = vmul.f32 %v6980_v7, %v565_v20 }
 0x18b   : > { %v1069_v53 = vadd.f32 %v1015_v39, %v917_v54  ;;  %v1070_v28 = vadd.f32 %v1017_v23, %v918_v13  ;;  %v1267_v15 = vadd.f32 %v1266_v14, %v1244_v35  ;;  %v1020_v31 = vrot.slane %v7340_v44, 3  ;;  %v575_v14 = vpop.permute.xlu0 %574 }
 0x18c   : > { %v714_v51 = vrot.slane %v648_v58, 1  ;;  %v866_v30 = vrot.slane %v800_v29, 2  ;;  %v1018_v1 = vrot.slane %v952_v18, 3  ;;  %v7356_v54 = vmul.f32 %v6919_v47, %v580_v26 }
 0x18d   : > { %v7348_v3 = vadd.f32 %v7041_v33, %v1069_v53  ;;  %v7351_v42 = vadd.f32 %v7041_v33, %v1070_v28  ;;  %v7359_v44 = vmul.f32 %v6937_v48, %v580_v26  ;;  %v7368_v23 = vmul.f32 %v6980_v7, %v580_v26 }
 0x18e   : > { %v715_v34 = vsel %vm678_vm4, %v712_v24, %v714_v51  ;;  %v717_v39 = vsel %vm678_vm4, %v714_v51, %v716_v8  ;;  %v867_v35 = vsel %vm830_vm5, %v864_v9, %v866_v30  ;;  %v869_v13 = vsel %vm830_vm5, %v866_v30, %v868_v43 }
 0x18f   : > { %v8917_v58 = vmax.f32 %v7348_v3, 0.0  ;;  %v767_v20 = vadd.f32 %v715_v34, %v7288_v27  ;;  %v768_v28 = vadd.f32 %v717_v39, %v616_v41  ;;  %v1019_v24 = vsel %vm982_vm6, %v1016_v45, %v1018_v1 }
 0x190   : > { %v1021_v53 = vsel %vm982_vm6, %v1018_v1, %v1020_v31  ;;  %v8977_v27 = vmax.f32 %v7351_v42, 0.0  ;;  %v720_v41 = vrot.slane %v7356_v54, 1  ;;  %v7380_v30 = vmul.f32 %v6955_v56, %v580_v26 }
 0x191   : > { %v1245_v29 = vmul.f32 %v6960_v57, %v8917_v58  ;;  %v919_v18 = vadd.f32 %v867_v35, %v767_v20  ;;  %v920_v51 = vadd.f32 %v869_v13, %v768_v28  ;;  %v650_v58 = vmul.f32 %v6919_v47, %v575_v14  ;;  %v590_v20 = vpop.permute.xlu1 %589 }
 0x192   : > { %v1246_v9 = vmul.f32 %v6965_v59, %v8977_v27  ;;  %v618_v1 = vmul.f32 %v6980_v7, %v575_v14  ;;  %v802_v35 = vmul.f32 %v6937_v48, %v575_v14  ;;  %v954_v13 = vmul.f32 %v6955_v56, %v575_v14 }
 0x193   : > { %v1268_v34 = vadd.f32 %v1267_v15, %v1245_v29  ;;  %v1071_v39 = vadd.f32 %v1019_v24, %v919_v18  ;;  %v1072_v49 = vadd.f32 %v1021_v53, %v920_v51  ;;  %v718_v15 = vrot.slane %v650_v58, 1 }
 0x194   : > { %v870_v53 = vrot.slane %v802_v35, 2  ;;  %v1022_v24 = vrot.slane %v954_v13, 3  ;;  %v653_v29 = vmul.f32 %v6919_v47, %v590_v20  ;;  %v805_v18 = vmul.f32 %v6937_v48, %v590_v20  ;;  %v585_v35 = vpop.permute.xlu0 %584 }
 0x195   : > { %v1269_v54 = vadd.f32 %v1268_v34, %v1246_v9  ;;  %v7388_v27 = vadd.f32 %v7041_v33, %v1071_v39  ;;  %v7391_v26 = vadd.f32 %v7041_v33, %v1072_v49  ;;  %v719_v14 = vsel %vm678_vm4, %v716_v8, %v718_v15 }
 0x196   : > { %v721_v9 = vsel %vm678_vm4, %v718_v15, %v720_v41  ;;  %v769_v34 = vadd.f32 %v719_v14, %v7326_v4  ;;  %v871_v49 = vsel %vm830_vm5, %v868_v43, %v870_v53  ;;  %v621_v58 = vmul.f32 %v6980_v7, %v590_v20 }
 0x197   : > { %8978 = vst [vmem:[#allocation23_spill] sm:$0xff] %v7388_v27  ;;  %8979 = vst [vmem:[#allocation24_spill] sm:$0xff] %v7391_v26  ;;  %v8921_v51 = vmax.f32 %v7388_v27, 0.0  ;;  %v8923_v28 = vmax.f32 %v7391_v26, 0.0  ;;  %v770_v39 = vadd.f32 %v721_v9, %v618_v1  ;;  %v8980_v8 = vrot.slane %v7359_v44, 2 }
 0x198   : > { %v1023_v4 = vsel %vm982_vm6, %v1020_v31, %v1022_v24  ;;  %v921_v1 = vadd.f32 %v871_v49, %v769_v34  ;;  %v8981_v43 = vrot.slane %v7380_v30, 3  ;;  %v724_v59 = vrot.slane %v653_v29, 1 }
 0x199   : > { %v1247_v13 = vmul.f32 %v6970_v0, %v8921_v51  ;;  %v1248_v45 = vmul.f32 %v6975_v6, %v8923_v28  ;;  %v873_v15 = vsel %vm830_vm5, %v870_v53, %v8980_v8  ;;  %v876_v27 = vrot.slane %v805_v18, 2 }
 0x19a   : > { %v922_v14 = vadd.f32 %v873_v15, %v770_v39  ;;  %v1025_v9 = vsel %vm982_vm6, %v1022_v24, %v8981_v43  ;;  %v957_v51 = vmul.f32 %v6955_v56, %v590_v20  ;;  %v652_v0 = vmul.f32 %v6919_v47, %v585_v35  ;;  %v1464_v15 = vld [vmem:[#allocation5 + $0x10] sm:$0xff] }
 0x19b   : > { %v1270_v57 = vadd.f32 %v1269_v54, %v1247_v13  ;;  %v1073_v28 = vadd.f32 %v1023_v4, %v921_v1  ;;  %v773_v26 = vadd.f32 %v724_v59, %v621_v58  ;;  %v804_v53 = vmul.f32 %v6937_v48, %v585_v35  ;;  %v1462_v13 = vld [vmem:[#allocation5] sm:$0xff] }
 0x19c   : > { %v1074_v6 = vadd.f32 %v1025_v9, %v922_v14  ;;  %v8982_v31 = vand.u32 1, %v6932_v50  ;;  %v1028_v39 = vrot.slane %v957_v51, 3  ;;  %v620_v24 = vmul.f32 %v6980_v7, %v585_v35  ;;  %v1504_v9 = vld [vmem:[#allocation5 + $0x90] sm:$0xff] }
 0x19d   : > { %v722_v54 = vrot.slane %v652_v0, 1  ;;  %v956_v29 = vmul.f32 %v6955_v56, %v585_v35  ;;  %v7427_v20 = vadd.f32 %v7041_v33, %v1073_v28  ;;  %v925_v18 = vadd.f32 %v876_v27, %v773_v26  ;;  %v1502_v28 = vld [vmem:[#allocation5 + $0x80] sm:$0xff]  ;;  %v1463_v26 = vld [vmem:[#allocation5 + $0x8] sm:$0xff] }
 0x19e   : > { %vm7420_vm9 = vcmp.eq.s32.totalorder %v8982_v31, 0  ;;  %v7430_v47 = vadd.f32 %v7041_v33, %v1074_v6  ;;  %v874_v48 = vrot.slane %v804_v53, 2  ;;  %v1271_v51 = vadd.f32 %v1270_v57, %v1248_v45  ;;  %v1503_v6 = vld [vmem:[#allocation5 + $0x88] sm:$0xff]  ;;  %v1505_v53 = vld [vmem:[#allocation5 + $0x98] sm:$0xff] }
 0x19f   : > { %v723_v50 = vsel %vm678_vm4, %v720_v41, %v722_v54  ;;  %v725_v49 = vsel %vm678_vm4, %v722_v54, %v724_v59  ;;  %v1026_v58 = vrot.slane %v956_v29, 3  ;;  %v1128_v7 = vmax.f32 %v7427_v20, 0.0 }
 0x1a0   : > { %v1077_v0 = vadd.f32 %v1028_v39, %v925_v18  ;;  %v771_v56 = vadd.f32 %v723_v50, %v7368_v23  ;;  %v6402_v35 = vmov 0.0|0.0   ;;  %v1129_v41 = vmax.f32 %v7430_v47, 0.0 }
 0x1a1   : > { %5923 = vmatprep.subr.bf16.mxu0 %v6402_v35  ;;  %5947 = vmatprep.subr.bf16.mxu1 %v6402_v35  ;;  %v1180_v59 = vand.u32 1, %v7001_v22  ;;  %v772_v8 = vadd.f32 %v725_v49, %v620_v24  ;;  %v8985_v57 = vrot.slane %v7359_v44, 2  ;;  %v1249_v23 = vmul.f32 %v6988_v12, %v1128_v7  ;;  %v1465_v22 = vld [vmem:[#allocation5 + $0x18] sm:$0xff] }
 0x1a2   : > { %v877_v4 = vsel %vm830_vm5, %v874_v48, %v876_v27  ;;  %v8986_v14 = vmov %v8981_v43  ;;  %v7451_v31 = vadd.f32 %v7041_v33, %v1077_v0  ;;  %v5924_v24 = vpack.c.bf16 %v1503_v6, %v1502_v28  ;;  %v1466_v0 = vld [vmem:[#allocation5 + $0x20] sm:$0xff]  ;;  %v1467_v28 = vld [vmem:[#allocation5 + $0x28] sm:$0xff] }
 0x1a3   : > { %v875_v45 = vsel %vm830_vm5, %v8985_v57, %v874_v48  ;;  %v1027_v43 = vsel %vm982_vm6, %v8986_v14, %v1026_v58  ;;  %v924_v44 = vadd.f32 %v877_v4, %v772_v8  ;;  %v5948_v54 = vpack.c.bf16 %v1463_v26, %v1462_v13  ;;  %v1468_v14 = vld [vmem:[#allocation5 + $0x30] sm:$0xff] }
 0x1a4   : > { %v923_v1 = vadd.f32 %v875_v45, %v771_v56  ;;  %v1272_v29 = vadd.f32 %v1271_v51, %v1249_v23  ;;  %v8987_v18 = vand.u32 1, %v6950_v52  ;;  %v1029_v30 = vsel %vm982_vm6, %v1026_v58, %v1028_v39  ;;  %5925 = vmatpush3.bf16.msra.mxu0 %v5924_v24  ;;  %v1506_v39 = vld [vmem:[#allocation5 + $0xa0] sm:$0xff]  ;;  %v1507_v58 = vld [vmem:[#allocation5 + $0xa8] sm:$0xff]  ;;  %v1472_v51 = vld [vmem:[#allocation5 + $0x50] sm:$0xff] }
 0x1a5   : > { %v1076_v48 = vadd.f32 %v1029_v30, %v924_v44  ;;  %5949 = vmatpush3.bf16.msra.mxu1 %v5948_v54  ;;  %v5927_v49 = vpack.c.bf16 %v1505_v53, %v1504_v9  ;;  %v5951_v56 = vpack.c.bf16 %v1465_v22, %v1464_v15  ;;  %v1250_v13 = vmul.f32 %v6995_v16, %v1129_v41  ;;  %v1509_v9 = vld [vmem:[#allocation5 + $0xb8] sm:$0xff]  ;;  %v1510_v30 = vld [vmem:[#allocation5 + $0xc0] sm:$0xff] }
 0x1a6   : > { %vm7455_vm10 = vcmp.eq.s32.totalorder %v8987_v18, 0  ;;  %v1075_v27 = vadd.f32 %v1027_v43, %v923_v1  ;;  %vm7463_vm11 = vcmp.eq.s32.totalorder %v1180_v59, 0  ;;  %5926 = vmatprep.subr.bf16.mxu0 %v6402_v35  ;;  %5950 = vmatprep.subr.bf16.mxu1 %v6402_v35  ;;  %v1132_v6 = vmax.f32 %v7451_v31, 0.0  ;;  %v1508_v43 = vld [vmem:[#allocation5 + $0xb0] sm:$0xff]  ;;  %v1469_v53 = vld [vmem:[#allocation5 + $0x38] sm:$0xff]  ;;  %v1470_v18 = vld [vmem:[#allocation5 + $0x40] sm:$0xff] }
 0x1a7   : > { %v8992_v26 = vmov 0.0   ;;  %v7479_v59 = vadd.f32 %v7041_v33, %v1076_v48  ;;  %v1273_v57 = vadd.f32 %v1272_v29, %v1250_v13  ;;  %v5930_v4 = vpack.c.bf16 %v1507_v58, %v1506_v39  ;;  %v1471_v48 = vld [vmem:[#allocation5 + $0x48] sm:$0xff]  ;;  %v1512_v58 = vld [vmem:[#allocation5 + $0xd0] sm:$0xff] }
 0x1a8   : > { %v7468_v52 = vadd.f32 %v7041_v33, %v1075_v27  ;;  %v7476_v8 = vsel %vm7455_vm10, 1.0, %v8992_v26  ;;  %4935 = vmatprep.mubr.msk.f32.mxu0 %vm6403_vm12, %v8992_v26  ;;  %v7486_v45 = vsel %vm7420_vm9, 1.0, %v8992_v26  ;;  %5036 = vmatprep.mubr.msk.f32.mxu1 %vm6403_vm12, %v8992_v26  ;;  %v7494_v33 = vsel %vm7463_vm11, 1.0, %v8992_v26  ;;  %v1511_v27 = vld [vmem:[#allocation5 + $0xc8] sm:$0xff] }
 0x1a9   : > { %v1131_v23 = vmax.f32 %v7479_v59, 0.0  ;;  %5928 = vmatpush3.bf16.msra.mxu0 %v5927_v49  ;;  %5952 = vmatpush3.bf16.msra.mxu1 %v5951_v56  ;;  %v5954_v1 = vpack.c.bf16 %v1467_v28, %v1466_v0  ;;  %v1253_v22 = vmul.f32 %v7486_v45, %v1132_v6  ;;  %v5933_v54 = vpack.c.bf16 %v1509_v9, %v1508_v43  ;;  %v1513_v28 = vld [vmem:[#allocation5 + $0xd8] sm:$0xff]  ;;  %v1514_v9 = vld [vmem:[#allocation5 + $0xe0] sm:$0xff] }
 0x1aa   : > { %v1130_v15 = vmax.f32 %v7468_v52, 0.0  ;;  %5929 = vmatprep.subr.bf16.mxu0 %v6402_v35  ;;  %5953 = vmatprep.subr.bf16.mxu1 %v6402_v35  ;;  %v5957_v29 = vpack.c.bf16 %v1469_v53, %v1468_v14  ;;  %v5936_v0 = vpack.c.bf16 %v1511_v27, %v1510_v30  ;;  %v5960_v13 = vpack.c.bf16 %v1471_v48, %v1470_v18  ;;  %v1515_v53 = vld [vmem:[#allocation5 + $0xe8] sm:$0xff]  ;;  %v1516_v18 = vld [vmem:[#allocation5 + $0xf0] sm:$0xff]  ;;  %v1477_v27 = vld [vmem:[#allocation5 + $0x78] sm:$0xff] }
 0x1ab   : > { %v1252_v44 = vmul.f32 %v7494_v33, %v1131_v23  ;;  %v1276_v49 = vsel %vm982_vm6, %v1253_v22, 0.0  ;;  %v1475_v22 = vld [vmem:[#allocation5 + $0x68] sm:$0xff]  ;;  %v1476_v30 = vld [vmem:[#allocation5 + $0x70] sm:$0xff] }
 0x1ac   : > { %v1251_v34 = vmul.f32 %v7476_v8, %v1130_v15 }
 0x1ad   : > { %5931 = vmatpush3.bf16.msra.mxu0 %v5930_v4  ;;  %5955 = vmatpush3.bf16.msra.mxu1 %v5954_v1  ;;  %v5939_v1 = vpack.c.bf16 %v1513_v28, %v1512_v58  ;;  %v8995_v28 = vmax.f32 %v7053_v21, 0.0 }
 0x1ae   : > { %v1274_v24 = vadd.f32 %v1273_v57, %v1251_v34  ;;  %5932 = vmatprep.subr.bf16.mxu0 %v6402_v35  ;;  %5956 = vmatprep.subr.bf16.mxu1 %v6402_v35  ;;  %v1473_v57 = vld [vmem:[#allocation5 + $0x58] sm:$0xff]  ;;  %v1474_v34 = vld [vmem:[#allocation5 + $0x60] sm:$0xff] }
 0x1af   : > { %v5963_v14 = vpack.c.bf16 %v1473_v57, %v1472_v51 }
 0x1b0   : > { %v1275_v50 = vadd.f32 %v1274_v24, %v1252_v44  ;;  %v5942_v24 = vpack.c.bf16 %v1515_v53, %v1514_v9  ;;  %v8998_v53 = vmax.f32 %v7140_v37, 0.0 }
 0x1b1   : > { %5934 = vmatpush3.bf16.msra.mxu0 %v5933_v54  ;;  %5958 = vmatpush3.bf16.msra.mxu1 %v5957_v29  ;;  %v5966_v54 = vpack.c.bf16 %v1475_v22, %v1474_v34 }
 0x1b2   : > { %v1277_v56 = vadd.f32 %v1276_v49, %v1275_v50  ;;  %5935 = vmatprep.subr.bf16.mxu0 %v6402_v35  ;;  %5959 = vmatprep.subr.bf16.mxu1 %v6402_v35  ;;  %v1517_v50 = vld [vmem:[#allocation5 + $0xf8] sm:$0xff] }
 0x1b3   : > { %v5945_v48 = vpack.c.bf16 %v1517_v50, %v1516_v18 }
 0x1b4   : > { %v1278_v39 = vrot.slane %v1277_v56, 4 }
 0x1b5   : > { %5937 = vmatpush3.bf16.msra.mxu0 %v5936_v0  ;;  %5961 = vmatpush3.bf16.msra.mxu1 %v5960_v13  ;;  %v8993_v13 = vmax.f32 %v7058_v55, 0.0  ;;  %v8996_v55 = vmax.f32 %v7098_v19, 0.0 }
 0x1b6   : > { %v1279_v4 = vadd.f32 %v1278_v39, %v1277_v56  ;;  %5938 = vmatprep.subr.bf16.mxu0 %v6402_v35  ;;  %5962 = vmatprep.subr.bf16.mxu1 %v6402_v35  ;;  %v5969_v56 = vpack.c.bf16 %v1477_v27, %v1476_v30  ;;  %v8994_v39 = vmax.f32 %v7061_v36, 0.0  ;;  %v8997_v36 = vmax.f32 %v7101_v32, 0.0 }
 0x1b7   : > { %v8999_v32 = vmax.f32 %v7143_v2, 0.0  ;;  %v9002_v2 = vmax.f32 %v7183_v40, 0.0  ;;  %v9005_v40 = vmax.f32 %v7227_v60, 0.0  ;;  %v9009_v60 = vmax.f32 %v7271_v10, 0.0 }
 0x1b8   : > { %v1280_v43 = vrot.slane %v1279_v4, 2  ;;  %v9013_v10 = vmax.f32 %v7311_v38, 0.0  ;;  %v9017_v38 = vmax.f32 %v7351_v42, 0.0  ;;  %v9022_v42 = vld [vmem:[#allocation24_spill] sm:$0xff] }
 0x1b9   : > { %5940 = vmatpush3.bf16.msra.mxu0 %v5939_v1  ;;  %5964 = vmatpush3.bf16.msra.mxu1 %v5963_v14 }
 0x1ba   : > { %v1281_v44 = vadd.f32 %v1280_v43, %v1279_v4  ;;  %5941 = vmatprep.subr.bf16.mxu0 %v6402_v35  ;;  %5965 = vmatprep.subr.bf16.mxu1 %v6402_v35 }
 0x1bc   : > { %v1282_v29 = vrot.slane %v1281_v44, 1 }
 0x1bd   : > { %5943 = vmatpush3.bf16.msra.mxu0 %v5942_v24  ;;  %5967 = vmatpush3.bf16.msra.mxu1 %v5966_v54  ;;  %v9000_v54 = vld [vmem:[#allocation8_spill] sm:$0xff] }
 0x1be   : > { %v1283_v49 = vadd.f32 %v1282_v29, %v1281_v44  ;;  %5944 = vmatprep.subr.bf16.mxu0 %v6402_v35  ;;  %5968 = vmatprep.subr.bf16.mxu1 %v6402_v35 }
 0x1c0   : > { %v7519_v0 = vmul.f32 0.010526316, %v1283_v49  ;;  %v9003_v49 = vld [vmem:[#allocation9_spill] sm:$0xff] }
 0x1c1   : > { %5946 = vmatpush3.bf16.msra.mxu0 %v5945_v48  ;;  %5970 = vmatpush3.bf16.msra.mxu1 %v5969_v56 }
 0x1c2   : > { %5971 = vmatprep.subr.bf16.mxu0 %v6402_v35  ;;  %5995 = vmatprep.subr.bf16.mxu1 %v6402_v35  ;;  %v7526_v51 = vsub.f32 %v8993_v13, %v7519_v0  ;;  %v7531_v58 = vsub.f32 %v8994_v39, %v7519_v0  ;;  %v7536_v57 = vsub.f32 %v8995_v28, %v7519_v0 }
 0x1c3   : > { %v7545_v14 = vsub.f32 %v8996_v55, %v7519_v0  ;;  %v7550_v34 = vsub.f32 %v8997_v36, %v7519_v0  ;;  %v7559_v22 = vsub.f32 %v8998_v53, %v7519_v0  ;;  %v7566_v44 = vsub.f32 %v8999_v32, %v7519_v0  ;;  %v9006_v36 = vld [vmem:[#allocation10_spill] sm:$0xff]  ;;  %v9008_v53 = vld [vmem:[#allocation11_spill] sm:$0xff] }
 0x1c4   : > { %v1310_v4 = vmul.f32 %v7526_v51, %v7526_v51  ;;  %v1311_v1 = vmul.f32 %v7531_v58, %v7531_v58  ;;  %v1312_v21 = vmul.f32 %v7536_v57, %v7536_v57  ;;  %v7582_v27 = vsub.f32 %v9002_v2, %v7519_v0 }
 0x1c5   : > { %v1313_v19 = vmul.f32 %v7545_v14, %v7545_v14  ;;  %v1314_v24 = vmul.f32 %v7550_v34, %v7550_v34  ;;  %v1315_v18 = vmul.f32 %v7559_v22, %v7559_v22  ;;  %v1316_v48 = vmul.f32 %v7566_v44, %v7566_v44 }
 0x1c6   : > { %v1334_v43 = vmul.f32 %v1310_v4, %v6825_v61  ;;  %v1335_v9 = vmul.f32 %v1311_v1, %v6828_v62  ;;  %v1336_v61 = vmul.f32 %v1312_v21, %v9000_v54  ;;  %v9001_v62 = vmax.f32 %v7180_v5, 0.0 }
 0x1c7   : > { %v1337_v50 = vmul.f32 %v1313_v19, %v6831_v63  ;;  %v1338_v56 = vmul.f32 %v1314_v24, %v9003_v49  ;;  %v9004_v5 = vmax.f32 %v7224_v25, 0.0  ;;  %v1339_v28 = vmul.f32 %v1315_v18, %v6873_v11 }
 0x1c8   : > { %v1358_v29 = vadd.f32 %v1335_v9, %v1334_v43  ;;  %v7574_v37 = vsub.f32 %v9001_v62, %v7519_v0  ;;  %v7598_v1 = vsub.f32 %v9005_v40, %v7519_v0  ;;  %v1318_v55 = vmul.f32 %v7582_v27, %v7582_v27  ;;  %v9016_v40 = vld [vmem:[#allocation15_spill] sm:$0xff] }
 0x1c9   : > { %v7590_v39 = vsub.f32 %v9004_v5, %v7519_v0  ;;  %v1340_v21 = vmul.f32 %v1316_v48, %v9006_v36  ;;  %v9007_v25 = vmax.f32 %v7268_v46, 0.0  ;;  %v7614_v24 = vsub.f32 %v9009_v60, %v7519_v0 }
 0x1ca   : > { %v1359_v30 = vadd.f32 %v1358_v29, %v1336_v61  ;;  %v1317_v63 = vmul.f32 %v7574_v37, %v7574_v37  ;;  %v1320_v54 = vmul.f32 %v7598_v1, %v7598_v1  ;;  %v9010_v61 = vld [vmem:[#allocation12_spill] sm:$0xff]  ;;  %v9011_v46 = vmax.f32 %v7308_v17, 0.0 }
 0x1cb   : > { %v7606_v9 = vsub.f32 %v9007_v25, %v7519_v0  ;;  %v1319_v11 = vmul.f32 %v7590_v39, %v7590_v39  ;;  %v1342_v29 = vmul.f32 %v1318_v55, %v9010_v61  ;;  %v7630_v49 = vsub.f32 %v9013_v10, %v7519_v0  ;;  %v9018_v25 = vld [vmem:[#allocation16_spill] sm:$0xff] }
 0x1cc   : > { %v1360_v13 = vadd.f32 %v1359_v30, %v1337_v50  ;;  %v1341_v19 = vmul.f32 %v1317_v63, %v9008_v53  ;;  %v7622_v18 = vsub.f32 %v9011_v46, %v7519_v0  ;;  %v9012_v30 = vld [vmem:[#allocation13_spill] sm:$0xff]  ;;  %v9015_v17 = vmax.f32 %v7348_v3, 0.0  ;;  %v9019_v3 = vld [vmem:[#allocation23_spill] sm:$0xff] }
 0x1cd   : > { %v1321_v50 = vmul.f32 %v7606_v9, %v7606_v9  ;;  %v1343_v2 = vmul.f32 %v1319_v11, %v9012_v30  ;;  %v9024_v30 = vld [vmem:[#allocation18_spill] sm:$0xff]  ;;  %v1305_v10 = vsub.f32 %v1128_v7, %v7519_v0  ;;  %v9027_v7 = vld [vmem:[#allocation21_spill] sm:$0xff]  ;;  %v1308_v47 = vsub.f32 %v1131_v23, %v7519_v0 }
 0x1ce   : > { %v1361_v4 = vadd.f32 %v1360_v13, %v1338_v56  ;;  %v1322_v56 = vmul.f32 %v7614_v24, %v7614_v24  ;;  %v9014_v13 = vld [vmem:[#allocation14_spill] sm:$0xff] }
 0x1cf   : > { %v1344_v5 = vmul.f32 %v1320_v54, %v9014_v13  ;;  %v1345_v55 = vmul.f32 %v1321_v50, %v9016_v40  ;;  %v9021_v54 = vld [vmem:[#allocation17_spill] sm:$0xff]  ;;  %v9025_v13 = vld [vmem:[#allocation19_spill] sm:$0xff]  ;;  %v9026_v40 = vld [vmem:[#allocation20_spill] sm:$0xff]  ;;  %v1329_v20 = vmul.f32 %v1305_v10, %v1305_v10 }
 0x1d0   : > { %v1362_v43 = vadd.f32 %v1361_v4, %v1339_v28  ;;  %v7638_v28 = vsub.f32 %v9015_v17, %v7519_v0  ;;  %v1323_v4 = vmul.f32 %v7622_v18, %v7622_v18  ;;  %v1346_v11 = vmul.f32 %v1322_v56, %v9018_v25 }
 0x1d1   : > { %v1306_v17 = vsub.f32 %v1129_v41, %v7519_v0  ;;  %v1353_v52 = vmul.f32 %v1329_v20, %v6988_v12 }
 0x1d2   : > { %v1363_v32 = vadd.f32 %v1362_v43, %v1340_v21  ;;  %v7646_v21 = vsub.f32 %v9017_v38, %v7519_v0  ;;  %v1324_v43 = vmul.f32 %v7630_v49, %v7630_v49  ;;  %v1325_v60 = vmul.f32 %v7638_v28, %v7638_v28 }
 0x1d3   : > { %v1347_v61 = vmul.f32 %v1323_v4, %v9021_v54  ;;  %v1307_v38 = vsub.f32 %v1130_v15, %v7519_v0  ;;  %v1330_v41 = vmul.f32 %v1306_v17, %v1306_v17 }
 0x1d4   : > { %v1364_v62 = vadd.f32 %v1363_v32, %v1341_v19  ;;  %v9020_v19 = vmax.f32 %v9019_v3, 0.0  ;;  %v1326_v50 = vmul.f32 %v7646_v21, %v7646_v21 }
 0x1d6   : > { %v1365_v48 = vadd.f32 %v1364_v62, %v1342_v29  ;;  %v7654_v32 = vsub.f32 %v9020_v19, %v7519_v0  ;;  %v9023_v62 = vmax.f32 %v9022_v42, 0.0 }
 0x1d8   : > { %v1366_v63 = vadd.f32 %v1365_v48, %v1343_v2  ;;  %v1304_v46 = vsub.f32 %v9023_v62, %v7519_v0  ;;  %v1348_v2 = vmul.f32 %v1324_v43, %v9024_v30  ;;  %v1327_v56 = vmul.f32 %v7654_v32, %v7654_v32 }
 0x1da   : > { %v1367_v36 = vadd.f32 %v1366_v63, %v1344_v5  ;;  %v1349_v5 = vmul.f32 %v1325_v60, %v9025_v13  ;;  %v1328_v4 = vmul.f32 %v1304_v46, %v1304_v46  ;;  %v1351_v43 = vmul.f32 %v1327_v56, %v9027_v7 }
 0x1db   : > { %v1331_v60 = vmul.f32 %v1307_v38, %v1307_v38 }
 0x1dc   : > { %v1368_v53 = vadd.f32 %v1367_v36, %v1345_v55  ;;  %v1350_v55 = vmul.f32 %v1326_v50, %v9026_v40  ;;  %v7692_v40 = vld [vmem:[#allocation5 + $0x190] sm:$0xff] }
 0x1dd   : > { %v1355_v31 = vmul.f32 %v1331_v60, %v7476_v8  ;;  %v2145_v8 = vld [vmem:[#allocation5 + $0x180] sm:$0xff] }
 0x1de   : > { %v1369_v29 = vadd.f32 %v1368_v53, %v1346_v11  ;;  %v1309_v11 = vsub.f32 %v1132_v6, %v7519_v0  ;;  %v9028_v53 = vld [vmem:[#allocation22_spill] sm:$0xff] }
 0x1df   : > { %v1352_v3 = vmul.f32 %v1328_v4, %v9028_v53  ;;  %v2146_v4 = vld [vmem:[#allocation5 + $0x188] sm:$0xff] }
 0x1e0   : > { %v1370_v48 = vadd.f32 %v1369_v29, %v1347_v61  ;;  %v1333_v54 = vmul.f32 %v1309_v11, %v1309_v11  ;;  %v1332_v61 = vmul.f32 %v1308_v47, %v1308_v47  ;;  %v1354_v29 = vmul.f32 %v1330_v41, %v6995_v16 }
 0x1e2   : > { %v1371_v63 = vadd.f32 %v1370_v48, %v1348_v2  ;;  %v1357_v62 = vmul.f32 %v1333_v54, %v7486_v45  ;;  %v1356_v59 = vmul.f32 %v1332_v61, %v7494_v33  ;;  %v2148_v45 = vld [vmem:[#allocation5 + $0x198] sm:$0xff]  ;;  %v1907_v54 = vld [vmem:[#allocation5 + $0x128] sm:$0xff] }
 0x1e4   : > { %v1372_v36 = vadd.f32 %v1371_v63, %v1349_v5  ;;  %v1380_v50 = vsel %vm982_vm6, %v1357_v62, 0.0  ;;  %v1909_v62 = vld [vmem:[#allocation5 + $0x138] sm:$0xff] }
 0x1e6   : > { %v1373_v25 = vadd.f32 %v1372_v36, %v1350_v55  ;;  %v5996_v55 = vpack.c.bf16 %v2146_v4, %v2145_v8  ;;  %v5999_v36 = vpack.c.bf16 %v2148_v45, %v7692_v40  ;;  %v1913_v8 = vld [vmem:[#allocation5 + $0x158] sm:$0xff]  ;;  %v2157_v45 = vld [vmem:[#allocation5 + $0x1e0] sm:$0xff] }
 0x1e8   : > { %v1374_v19 = vadd.f32 %v1373_v25, %v1351_v43 }
 0x1ea   : > { %v1375_v15 = vadd.f32 %v1374_v19, %v1352_v3 }
 0x1ec   : > { %v1376_v42 = vadd.f32 %v1375_v15, %v1353_v52  ;;  %v1906_v15 = vld [vmem:[#allocation5 + $0x120] sm:$0xff] }
 0x1ee   : > { %v1377_v6 = vadd.f32 %v1376_v42, %v1354_v29  ;;  %v2151_v29 = vld [vmem:[#allocation5 + $0x1b0] sm:$0xff]  ;;  %v2152_v42 = vld [vmem:[#allocation5 + $0x1b8] sm:$0xff] }
 0x1f0   : > { %v1378_v23 = vadd.f32 %v1377_v6, %v1355_v31  ;;  %v5978_v31 = vpack.c.bf16 %v1907_v54, %v1906_v15  ;;  %v1908_v6 = vld [vmem:[#allocation5 + $0x130] sm:$0xff] }
 0x1f2   : > { %v1379_v0 = vadd.f32 %v1378_v23, %v1356_v59  ;;  %v6005_v59 = vpack.c.bf16 %v2152_v42, %v2151_v29 }
 0x1f4   : > { %v1381_v30 = vadd.f32 %v1380_v50, %v1379_v0  ;;  %v2153_v0 = vld [vmem:[#allocation5 + $0x1c0] sm:$0xff]  ;;  %v2154_v50 = vld [vmem:[#allocation5 + $0x1c8] sm:$0xff] }
 0x1f6   : > { %v1382_v2 = vrot.slane %v1381_v30, 4 }
 0x1f8   : > { %v1383_v12 = vadd.f32 %v1382_v2, %v1381_v30  ;;  %v5981_v30 = vpack.c.bf16 %v1909_v62, %v1908_v6  ;;  %v1910_v2 = vld [vmem:[#allocation5 + $0x140] sm:$0xff] }
 0x1fa   : > { %v1384_v48 = vrot.slane %v1383_v12, 2 }
 0x1fc   : > { %v1385_v56 = vadd.f32 %v1384_v48, %v1383_v12  ;;  %v1911_v12 = vld [vmem:[#allocation5 + $0x148] sm:$0xff]  ;;  %v6008_v48 = vpack.c.bf16 %v2154_v50, %v2153_v0 }
 0x1fe   : > { %v1386_v13 = vrot.slane %v1385_v56, 1 }
 0x200   : > { %v1387_v5 = vadd.f32 %v1386_v13, %v1385_v56  ;;  %v2155_v13 = vld [vmem:[#allocation5 + $0x1d0] sm:$0xff] }
 0x202   : > { %v1388_v16 = vmul.f32 0.010526316, %v1387_v5  ;;  %v2156_v5 = vld [vmem:[#allocation5 + $0x1d8] sm:$0xff] }
 0x203   : > { %v6011_v4 = vpack.c.bf16 %v2156_v5, %v2155_v13 }
 0x204   : > { %v1389_v63 = vadd.f32 1e-05, %v1388_v16  ;;  %v5984_v16 = vpack.c.bf16 %v1911_v12, %v1910_v2 }
 0x206   : > { %6355 = vrsqrt.f32 %v1389_v63  ;;  %v1912_v63 = vld [vmem:[#allocation5 + $0x150] sm:$0xff] }
 0x210   : > { %v6356_v33 = vpop.eup %6355 }
 0x211   : > { %v7695_v20 = vmul.f32 %v6356_v33, %v1304_v46  ;;  %v7697_v7 = vmul.f32 %v6356_v33, %v1305_v10  ;;  %v7699_v43 = vmul.f32 %v6356_v33, %v1306_v17  ;;  %v7701_v25 = vmul.f32 %v6356_v33, %v1307_v38 }
 0x212   : > { %v1413_v41 = vmul.f32 %v6356_v33, %v1308_v47  ;;  %v1414_v53 = vmul.f32 %v6356_v33, %v1309_v11  ;;  %v1391_v3 = vmul.f32 %v6356_v33, %v7526_v51  ;;  %v1392_v19 = vmul.f32 %v6356_v33, %v7531_v58  ;;  %v2150_v47 = vld [vmem:[#allocation5 + $0x1a8] sm:$0xff] }
 0x213   : > { %1435 = vst [vmem:[#allocation2 + $0xa0] sm:$0xff] %v7699_v43  ;;  %1436 = vst [vmem:[#allocation2 + $0xa8] sm:$0xff] %v7701_v25  ;;  %v1393_v46 = vmul.f32 %v6356_v33, %v7536_v57  ;;  %v7711_v10 = vmul.f32 %v6356_v33, %v7545_v14  ;;  %v7714_v17 = vmul.f32 %v6356_v33, %v7550_v34 }
 0x214   : > { %1433 = vst [vmem:[#allocation2 + $0x90] sm:$0xff] %v7695_v20  ;;  %1434 = vst [vmem:[#allocation2 + $0x98] sm:$0xff] %v7697_v7  ;;  %v7717_v51 = vmul.f32 %v6356_v33, %v7559_v22  ;;  %5037 = vmatmul.mubr.f32.vlgmr.msra.gmra.mrb[0].mxu1 %v1391_v3  ;;  %v7720_v58 = vmul.f32 %v6356_v33, %v7566_v44  ;;  %v7723_v38 = vmul.f32 %v6356_v33, %v7574_v37  ;;  %v1902_v37 = vld [vmem:[#allocation5 + $0x100] sm:$0xff] }
 0x215   : > { %1437 = vst [vmem:[#allocation2 + $0xb0] sm:$0xff] %v1413_v41  ;;  %1438 = vst [vmem:[#allocation2 + $0xb8] sm:$0x1f] %v1414_v53  ;;  %v7726_v57 = vmul.f32 %v6356_v33, %v7582_v27  ;;  %v7729_v14 = vmul.f32 %v6356_v33, %v7590_v39  ;;  %5997 = vmatpush3.bf16.msra.mxu1 %v5996_v55  ;;  %5039 = vmatprep.mubr.msk.f32.mxu1 %vm6403_vm12, %v8992_v26  ;;  %v1903_v27 = vld [vmem:[#allocation5 + $0x108] sm:$0xff] }
 0x216   : > { %1415 = vst [vmem:[#allocation2] sm:$0xff] %v1391_v3  ;;  %1416 = vst [vmem:[#allocation2 + $0x8] sm:$0xff] %v1392_v19  ;;  %v7737_v34 = vmul.f32 %v6356_v33, %v7598_v1  ;;  %v7740_v22 = vmul.f32 %v6356_v33, %v7606_v9  ;;  %v7743_v44 = vmul.f32 %v6356_v33, %v7614_v24  ;;  %5998 = vmatprep.subr.bf16.mxu1 %v6402_v35  ;;  %v1915_v41 = vld [vmem:[#allocation5 + $0x168] sm:$0xff] }
 0x217   : > { %1417 = vst [vmem:[#allocation2 + $0x10] sm:$0xff] %v1393_v46  ;;  %1418 = vst [vmem:[#allocation2 + $0x18] sm:$0xff] %v7711_v10  ;;  %v7751_v39 = vmul.f32 %v6356_v33, %v7622_v18  ;;  %v7754_v1 = vmul.f32 %v6356_v33, %v7630_v49  ;;  %v7757_v9 = vmul.f32 %v6356_v33, %v7638_v28  ;;  %v2149_v18 = vld [vmem:[#allocation5 + $0x1a0] sm:$0xff]  ;;  %v1904_v28 = vld [vmem:[#allocation5 + $0x110] sm:$0xff] }
 0x218   : > { %1419 = vst [vmem:[#allocation2 + $0x20] sm:$0xff] %v7714_v17  ;;  %1420 = vst [vmem:[#allocation2 + $0x28] sm:$0xff] %v7717_v51  ;;  %v7760_v24 = vmul.f32 %v6356_v33, %v7646_v21  ;;  %v7766_v11 = vmul.f32 %v6356_v33, %v7654_v32  ;;  %5040 = vmatmul.mubr.f32.gmra.mrb[2].mxu1 %v1392_v19  ;;  %v5972_v49 = vpack.c.bf16 %v1903_v27, %v1902_v37  ;;  %v1905_v21 = vld [vmem:[#allocation5 + $0x118] sm:$0xff]  ;;  %v2158_v33 = vld [vmem:[#allocation5 + $0x1e8] sm:$0xff] }
 0x219   : > { %1421 = vst [vmem:[#allocation2 + $0x30] sm:$0xff] %v7720_v58  ;;  %1422 = vst [vmem:[#allocation2 + $0x38] sm:$0xff] %v7723_v38  ;;  %5042 = vmatprep.mubr.msk.f32.mxu1 %vm6403_vm12, %v8992_v26  ;;  %6000 = vmatpush3.bf16.msra.mxu1 %v5999_v36  ;;  %v6002_v60 = vpack.c.bf16 %v2150_v47, %v2149_v18  ;;  %v5975_v52 = vpack.c.bf16 %v1905_v21, %v1904_v28  ;;  %v1914_v36 = vld [vmem:[#allocation5 + $0x160] sm:$0xff]  ;;  %v2159_v19 = vld [vmem:[#allocation5 + $0x1f0] sm:$0xff] }
 0x21a   : > { %1423 = vst [vmem:[#allocation2 + $0x40] sm:$0xff] %v7726_v57  ;;  %1424 = vst [vmem:[#allocation2 + $0x48] sm:$0xff] %v7729_v14  ;;  %6001 = vmatprep.subr.bf16.mxu1 %v6402_v35  ;;  %v5987_v55 = vpack.c.bf16 %v1913_v8, %v1912_v63  ;;  %v6014_v53 = vpack.c.bf16 %v2158_v33, %v2157_v45  ;;  %v1917_v37 = vld [vmem:[#allocation5 + $0x178] sm:$0xff]  ;;  %v2503_v45 = vld [vmem:[#allocation5 + $0x280] sm:$0xff] }
 0x21b   : > { %1425 = vst [vmem:[#allocation2 + $0x50] sm:$0xff] %v7737_v34  ;;  %1426 = vst [vmem:[#allocation2 + $0x58] sm:$0xff] %v7740_v22  ;;  %v2504_v33 = vld [vmem:[#allocation5 + $0x288] sm:$0xff] }
 0x21c   : > { %1427 = vst [vmem:[#allocation2 + $0x60] sm:$0xff] %v7743_v44  ;;  %1428 = vst [vmem:[#allocation2 + $0x68] sm:$0xff] %v7751_v39  ;;  %5043 = vmatmul.mubr.f32.gmra.mrb[4].mxu1 %v1393_v46  ;;  %v2160_v46 = vld [vmem:[#allocation5 + $0x1f8] sm:$0xff]  ;;  %v1461_v47 = vld [vmem:[#allocation2 + $0xb0] sm:$0x7f] }
 0x21d   : > { %1429 = vst [vmem:[#allocation2 + $0x70] sm:$0xff] %v7754_v1  ;;  %1430 = vst [vmem:[#allocation2 + $0x78] sm:$0xff] %v7757_v9  ;;  %v1478_v32 = vld [vmem:[#allocation2 + $0x2] sm:$0xff]  ;;  %5045 = vmatprep.mubr.msk.f32.mxu1 %vm6403_vm12, %v8992_v26  ;;  %6003 = vmatpush3.bf16.msra.mxu1 %v6002_v60 }
 0x21e   : > { %1431 = vst [vmem:[#allocation2 + $0x80] sm:$0xff] %v7760_v24  ;;  %1432 = vst [vmem:[#allocation2 + $0x88] sm:$0xff] %v7766_v11  ;;  %4936 = vmatmul.mubr.f32.vlgmr.msra.gmra.mrb[0].mxu0 %v1478_v32  ;;  %v1479_v61 = vld [vmem:[#allocation2 + $0xa] sm:$0xff]  ;;  %v1480_v23 = vld [vmem:[#allocation2 + $0x12] sm:$0xff]  ;;  %6004 = vmatprep.subr.bf16.mxu1 %v6402_v35 }
 0x21f   : > { %5973 = vmatpush3.bf16.msra.mxu0 %v5972_v49  ;;  %4938 = vmatprep.mubr.msk.f32.mxu0 %vm6403_vm12, %v8992_v26  ;;  %v1481_v56 = vld [vmem:[#allocation2 + $0x1a] sm:$0xff]  ;;  %v1482_v40 = vld [vmem:[#allocation2 + $0x22] sm:$0xff]  ;;  %v2122_v28 = vld [vmem:[#allocation2 + $0xe] sm:$0xff] }
 0x220   : > { %5974 = vmatprep.subr.bf16.mxu0 %v6402_v35  ;;  %5046 = vmatmul.mubr.f32.gmra.mrb[6].mxu1 %v7711_v10  ;;  %v1483_v3 = vld [vmem:[#allocation2 + $0x2a] sm:$0xff]  ;;  %v5990_v10 = vpack.c.bf16 %v1915_v41, %v1914_v36  ;;  %v2123_v32 = vld [vmem:[#allocation2 + $0x16] sm:$0xff] }
 0x221   : > { %5048 = vmatprep.mubr.msk.f32.mxu1 %vm6403_vm12, %v8992_v26  ;;  %6006 = vmatpush3.bf16.msra.mxu1 %v6005_v59  ;;  %v1485_v27 = vld [vmem:[#allocation2 + $0x3a] sm:$0xff]  ;;  %v2121_v49 = vld [vmem:[#allocation2 + $0x6] sm:$0xff]  ;;  %v2126_v29 = vld [vmem:[#allocation2 + $0x2e] sm:$0xff] }
 0x222   : > { %4939 = vmatmul.mubr.f32.gmra.mrb[2].mxu0 %v1479_v61  ;;  %6007 = vmatprep.subr.bf16.mxu1 %v6402_v35  ;;  %v1487_v18 = vld [vmem:[#allocation2 + $0x4a] sm:$0xff]  ;;  %v1880_v15 = vld [vmem:[#allocation2 + $0x14] sm:$0xff]  ;;  %v1881_v61 = vld [vmem:[#allocation2 + $0x1c] sm:$0xff] }
 0x223   : > { %4941 = vmatprep.mubr.msk.f32.mxu0 %vm6403_vm12, %v8992_v26  ;;  %5976 = vmatpush3.bf16.msra.mxu0 %v5975_v52  ;;  %v1878_v21 = vld [vmem:[#allocation2 + $0x4] sm:$0xff]  ;;  %v1879_v60 = vld [vmem:[#allocation2 + $0xc] sm:$0xff]  ;;  %v1884_v59 = vld [vmem:[#allocation2 + $0x34] sm:$0xff] }
 0x224   : > { %5977 = vmatprep.subr.bf16.mxu0 %v6402_v35  ;;  %5049 = vmatmul.mubr.f32.gmra.mrb[8].mxu1 %v7714_v17  ;;  %v6017_v17 = vpack.c.bf16 %v2160_v46, %v2159_v19  ;;  %v2124_v52 = vld [vmem:[#allocation2 + $0x1e] sm:$0xff]  ;;  %v2125_v54 = vld [vmem:[#allocation2 + $0x26] sm:$0xff]  ;;  %v2130_v50 = vld [vmem:[#allocation2 + $0x4e] sm:$0xff] }
 0x225   : > { %5051 = vmatprep.mubr.msk.f32.mxu1 %vm6403_vm12, %v8992_v26  ;;  %6009 = vmatpush3.bf16.msra.mxu1 %v6008_v48  ;;  %v1882_v42 = vld [vmem:[#allocation2 + $0x24] sm:$0xff]  ;;  %v1883_v6 = vld [vmem:[#allocation2 + $0x2c] sm:$0xff]  ;;  %v1885_v0 = vld [vmem:[#allocation2 + $0x3c] sm:$0xff] }
 0x226   : > { %4942 = vmatmul.mubr.f32.gmra.mrb[4].mxu0 %v1480_v23  ;;  %6010 = vmatprep.subr.bf16.mxu1 %v6402_v35  ;;  %v2128_v62 = vld [vmem:[#allocation2 + $0x3e] sm:$0xff]  ;;  %v2129_v23 = vld [vmem:[#allocation2 + $0x46] sm:$0xff]  ;;  %v2131_v2 = vld [vmem:[#allocation2 + $0x56] sm:$0xff] }
 0x227   : > { %4944 = vmatprep.mubr.msk.f32.mxu0 %vm6403_vm12, %v8992_v26  ;;  %5979 = vmatpush3.bf16.msra.mxu0 %v5978_v31  ;;  %v2127_v31 = vld [vmem:[#allocation2 + $0x36] sm:$0xff]  ;;  %v1887_v12 = vld [vmem:[#allocation2 + $0x4c] sm:$0xff]  ;;  %v2132_v48 = vld [vmem:[#allocation2 + $0x5e] sm:$0xff] }
 0x228   : > { %5980 = vmatprep.subr.bf16.mxu0 %v6402_v35  ;;  %5052 = vmatmul.mubr.f32.gmra.mrb[10].mxu1 %v7717_v51  ;;  %v1484_v51 = vld [vmem:[#allocation2 + $0x32] sm:$0xff]  ;;  %v2133_v13 = vld [vmem:[#allocation2 + $0x66] sm:$0xff]  ;;  %v1889_v5 = vld [vmem:[#allocation2 + $0x5c] sm:$0xff] }
 0x229   : > { %5054 = vmatprep.mubr.msk.f32.mxu1 %vm6403_vm12, %v8992_v26  ;;  %6012 = vmatpush3.bf16.msra.mxu1 %v6011_v4  ;;  %v1890_v63 = vld [vmem:[#allocation2 + $0x64] sm:$0xff]  ;;  %v2135_v8 = vld [vmem:[#allocation2 + $0x76] sm:$0xff]  ;;  %v1891_v4 = vld [vmem:[#allocation2 + $0x6c] sm:$0xff] }
 0x22a   : > { %4945 = vmatmul.mubr.f32.gmra.mrb[6].mxu0 %v1481_v56  ;;  %6013 = vmatprep.subr.bf16.mxu1 %v6402_v35  ;;  %v1888_v56 = vld [vmem:[#allocation2 + $0x54] sm:$0xff]  ;;  %v2137_v41 = vld [vmem:[#allocation2 + $0x86] sm:$0xff] }
 0x22b   : > { %4947 = vmatprep.mubr.msk.f32.mxu0 %vm6403_vm12, %v8992_v26  ;;  %5982 = vmatpush3.bf16.msra.mxu0 %v5981_v30  ;;  %v1886_v30 = vld [vmem:[#allocation2 + $0x44] sm:$0xff]  ;;  %v1892_v36 = vld [vmem:[#allocation2 + $0x74] sm:$0xff] }
 0x22c   : > { %5983 = vmatprep.subr.bf16.mxu0 %v6402_v35  ;;  %5055 = vmatmul.mubr.f32.gmra.mrb[12].mxu1 %v7720_v58  ;;  %v1916_v58 = vld [vmem:[#allocation5 + $0x170] sm:$0xff]  ;;  %v1894_v19 = vld [vmem:[#allocation2 + $0x84] sm:$0xff] }
 0x22d   : > { %5057 = vmatprep.mubr.msk.f32.mxu1 %vm6403_vm12, %v8992_v26  ;;  %6015 = vmatpush3.bf16.msra.mxu1 %v6014_v53  ;;  %v1893_v53 = vld [vmem:[#allocation2 + $0x7c] sm:$0xff] }
 0x22e   : > { %4948 = vmatmul.mubr.f32.gmra.mrb[8].mxu0 %v1482_v40  ;;  %6016 = vmatprep.subr.bf16.mxu1 %v6402_v35  ;;  %v2136_v40 = vld [vmem:[#allocation2 + $0x7e] sm:$0xff]  ;;  %v2139_v46 = vld [vmem:[#allocation2 + $0x96] sm:$0xff] }
 0x22f   : > { %4950 = vmatprep.mubr.msk.f32.mxu0 %vm6403_vm12, %v8992_v26  ;;  %5985 = vmatpush3.bf16.msra.mxu0 %v5984_v16  ;;  %v2134_v16 = vld [vmem:[#allocation2 + $0x6e] sm:$0xff] }
 0x230   : > { %5986 = vmatprep.subr.bf16.mxu0 %v6402_v35  ;;  %5058 = vmatmul.mubr.f32.gmra.mrb[14].mxu1 %v7723_v38  ;;  %v5993_v38 = vpack.c.bf16 %v1917_v37, %v1916_v58  ;;  %v1895_v58 = vld [vmem:[#allocation2 + $0x8c] sm:$0xff]  ;;  %v2140_v37 = vld [vmem:[#allocation2 + $0x9e] sm:$0xff] }
 0x231   : > { %5060 = vmatprep.mubr.msk.f32.mxu1 %vm6403_vm12, %v8992_v26  ;;  %6018 = vmatpush3.bf16.msra.mxu1 %v6017_v17  ;;  %v2506_v17 = vld [vmem:[#allocation5 + $0x298] sm:$0xff] }
 0x232   : > { %4951 = vmatmul.mubr.f32.gmra.mrb[10].mxu0 %v1483_v3  ;;  %6147 = vmatprep.subr.bf16.mxu1 %v6402_v35  ;;  %v2138_v3 = vld [vmem:[#allocation2 + $0x8e] sm:$0xff] }
 0x233   : > { %4953 = vmatprep.mubr.msk.f32.mxu0 %vm6403_vm12, %v8992_v26  ;;  %5988 = vmatpush3.bf16.msra.mxu0 %v5987_v55  ;;  %v6019_v55 = vpack.c.bf16 %v2504_v33, %v2503_v45 }
 0x234   : > { %5989 = vmatprep.subr.bf16.mxu0 %v6402_v35  ;;  %5061 = vmatmul.mubr.f32.gmra.mrb[16].mxu1 %v7726_v57  ;;  %v1486_v57 = vld [vmem:[#allocation2 + $0x42] sm:$0xff] }
 0x235   : > { %5063 = vmatprep.mubr.msk.f32.mxu1 %vm6403_vm12, %v8992_v26 }
 0x236   : > { %4954 = vmatmul.mubr.f32.gmra.mrb[12].mxu0 %v1484_v51 }
 0x237   : > { %4956 = vmatprep.mubr.msk.f32.mxu0 %vm6403_vm12, %v8992_v26  ;;  %5991 = vmatpush3.bf16.msra.mxu0 %v5990_v10  ;;  %v2505_v10 = vld [vmem:[#allocation5 + $0x290] sm:$0xff] }
 0x238   : > { %5992 = vmatprep.subr.bf16.mxu0 %v6402_v35  ;;  %5064 = vmatmul.mubr.f32.gmra.mrb[18].mxu1 %v7729_v14  ;;  %v1488_v14 = vld [vmem:[#allocation2 + $0x52] sm:$0xff]  ;;  %v6023_v51 = vpack.c.bf16 %v2506_v17, %v2505_v10 }
 0x239   : > { %5066 = vmatprep.mubr.msk.f32.mxu1 %vm6403_vm12, %v8992_v26 }
 0x23a   : > { %4957 = vmatmul.mubr.f32.gmra.mrb[14].mxu0 %v1485_v27  ;;  %v2141_v27 = vld [vmem:[#allocation2 + $0xa6] sm:$0xff] }
 0x23b   : > { %4959 = vmatprep.mubr.msk.f32.mxu0 %vm6403_vm12, %v8992_v26  ;;  %5994 = vmatpush3.bf16.msra.mxu0 %v5993_v38  ;;  %v1896_v38 = vld [vmem:[#allocation2 + $0x94] sm:$0xff] }
 0x23c   : > { %5067 = vmatmul.mubr.f32.gmra.mrb[20].mxu1 %v7737_v34  ;;  %v1489_v34 = vld [vmem:[#allocation2 + $0x5a] sm:$0xff]  ;;  %6020 = vmatprep.subr.bf16.mxu0 %v6019_v55 }
 0x23d   : > { %5069 = vmatprep.mubr.msk.f32.mxu1 %vm6403_vm12, %v8992_v26 }
 0x23e   : > { %4960 = vmatmul.mubr.f32.gmra.mrb[16].mxu0 %v1486_v57  ;;  %v1897_v57 = vld [vmem:[#allocation2 + $0x9c] sm:$0xff] }
 0x23f   : > { %4962 = vmatprep.mubr.msk.f32.mxu0 %vm6403_vm12, %v8992_v26 }
 0x240   : > { %5070 = vmatmul.mubr.f32.gmra.mrb[22].mxu1 %v7740_v22  ;;  %v1490_v22 = vld [vmem:[#allocation2 + $0x62] sm:$0xff] }
 0x241   : > { %5072 = vmatprep.mubr.msk.f32.mxu1 %vm6403_vm12, %v8992_v26 }
 0x242   : > { %4963 = vmatmul.mubr.f32.gmra.mrb[18].mxu0 %v1487_v18  ;;  %v2142_v18 = vld [vmem:[#allocation2 + $0xae] sm:$0xff] }
 0x243   : > { %4965 = vmatprep.mubr.msk.f32.mxu0 %vm6403_vm12, %v8992_v26 }
 0x244   : > { %5073 = vmatmul.mubr.f32.gmra.mrb[24].mxu1 %v7743_v44  ;;  %v1491_v44 = vld [vmem:[#allocation2 + $0x6a] sm:$0xff] }
 0x245   : > { %5075 = vmatprep.mubr.msk.f32.mxu1 %vm6403_vm12, %v8992_v26 }
 0x246   : > { %4966 = vmatmul.mubr.f32.gmra.mrb[20].mxu0 %v1488_v14  ;;  %v2507_v14 = vld [vmem:[#allocation5 + $0x2a0] sm:$0xff] }
 0x247   : > { %4968 = vmatprep.mubr.msk.f32.mxu0 %vm6403_vm12, %v8992_v26 }
 0x248   : > { %5076 = vmatmul.mubr.f32.gmra.mrb[26].mxu1 %v7751_v39  ;;  %v1492_v39 = vld [vmem:[#allocation2 + $0x72] sm:$0xff] }
 0x249   : > { %5078 = vmatprep.mubr.msk.f32.mxu1 %vm6403_vm12, %v8992_v26 }
 0x24a   : > { %4969 = vmatmul.mubr.f32.gmra.mrb[22].mxu0 %v1489_v34  ;;  %v2508_v34 = vld [vmem:[#allocation5 + $0x2a8] sm:$0xff] }
 0x24b   : > { %4971 = vmatprep.mubr.msk.f32.mxu0 %vm6403_vm12, %v8992_v26 }
 0x24c   : > { %5079 = vmatmul.mubr.f32.gmra.mrb[28].mxu1 %v7754_v1  ;;  %v1493_v1 = vld [vmem:[#allocation2 + $0x7a] sm:$0xff] }
 0x24d   : > { %5081 = vmatprep.mubr.msk.f32.mxu1 %vm6403_vm12, %v8992_v26 }
 0x24e   : > { %4972 = vmatmul.mubr.f32.gmra.mrb[24].mxu0 %v1490_v22  ;;  %v6027_v22 = vpack.c.bf16 %v2508_v34, %v2507_v14 }
 0x24f   : > { %4974 = vmatprep.mubr.msk.f32.mxu0 %vm6403_vm12, %v8992_v26 }
 0x250   : > { %5082 = vmatmul.mubr.f32.gmra.mrb[30].mxu1 %v7757_v9  ;;  %v1494_v9 = vld [vmem:[#allocation2 + $0x82] sm:$0xff] }
 0x251   : > { %5084 = vmatprep.mubr.msk.f32.mxu1 %vm6403_vm12, %v8992_v26 }
 0x252   : > { %4975 = vmatmul.mubr.f32.gmra.mrb[26].mxu0 %v1491_v44  ;;  %v1898_v44 = vld [vmem:[#allocation2 + $0xa4] sm:$0xff] }
 0x253   : > { %4977 = vmatprep.mubr.msk.f32.mxu0 %vm6403_vm12, %v8992_v26 }
 0x254   : > { %5085 = vmatmul.mubr.f32.gmra.mrb[32].mxu1 %v7760_v24  ;;  %v1495_v24 = vld [vmem:[#allocation2 + $0x8a] sm:$0xff] }
 0x255   : > { %5087 = vmatprep.mubr.msk.f32.mxu1 %vm6403_vm12, %v8992_v26 }
 0x256   : > { %4978 = vmatmul.mubr.f32.gmra.mrb[28].mxu0 %v1492_v39  ;;  %v2143_v39 = vld [vmem:[#allocation2 + $0xb6] sm:$0x7f] }
 0x257   : > { %4980 = vmatprep.mubr.msk.f32.mxu0 %vm6403_vm12, %v8992_v26 }
 0x258   : > { %5088 = vmatmul.mubr.f32.gmra.mrb[34].mxu1 %v7766_v11  ;;  %v1496_v11 = vld [vmem:[#allocation2 + $0x92] sm:$0xff] }
 0x259   : > { %5090 = vmatprep.mubr.msk.f32.mxu1 %vm6403_vm12, %v8992_v26 }
 0x25a   : > { %4981 = vmatmul.mubr.f32.gmra.mrb[30].mxu0 %v1493_v1  ;;  %v1899_v1 = vld [vmem:[#allocation2 + $0xac] sm:$0xff] }
 0x25b   : > { %4983 = vmatprep.mubr.msk.f32.mxu0 %vm6403_vm12, %v8992_v26 }
 0x25c   : > { %5091 = vmatmul.mubr.f32.gmra.mrb[36].mxu1 %v7695_v20  ;;  %v1497_v20 = vld [vmem:[#allocation2 + $0x9a] sm:$0xff] }
 0x25d   : > { %5093 = vmatprep.mubr.msk.f32.mxu1 %vm6403_vm12, %v8992_v26 }
 0x25e   : > { %4984 = vmatmul.mubr.f32.gmra.mrb[32].mxu0 %v1494_v9  ;;  %v1900_v9 = vld [vmem:[#allocation2 + $0xb4] sm:$0x7f] }
 0x25f   : > { %4986 = vmatprep.mubr.msk.f32.mxu0 %vm6403_vm12, %v8992_v26 }
 0x260   : > { %5094 = vmatmul.mubr.f32.gmra.mrb[38].mxu1 %v7697_v7  ;;  %v1498_v7 = vld [vmem:[#allocation2 + $0xa2] sm:$0xff] }
 0x261   : > { %5096 = vmatprep.mubr.msk.f32.mxu1 %vm6403_vm12, %v8992_v26 }
 0x262   : > { %4987 = vmatmul.mubr.f32.gmra.mrb[34].mxu0 %v1495_v24  ;;  %v2509_v24 = vld [vmem:[#allocation5 + $0x2b0] sm:$0xff] }
 0x263   : > { %4989 = vmatprep.mubr.msk.f32.mxu0 %vm6403_vm12, %v8992_v26 }
 0x264   : > { %5097 = vmatmul.mubr.f32.gmra.mrb[40].mxu1 %v7699_v43  ;;  %v1499_v43 = vld [vmem:[#allocation2 + $0xaa] sm:$0xff] }
 0x265   : > { %5099 = vmatprep.mubr.msk.f32.mxu1 %vm6403_vm12, %v8992_v26 }
 0x266   : > { %4990 = vmatmul.mubr.f32.gmra.mrb[36].mxu0 %v1496_v11  ;;  %v2510_v11 = vld [vmem:[#allocation5 + $0x2b8] sm:$0xff] }
 0x267   : > { %4992 = vmatprep.mubr.msk.f32.mxu0 %vm6403_vm12, %v8992_v26 }
 0x268   : > { %5100 = vmatmul.mubr.f32.gmra.mrb[42].mxu1 %v7701_v25  ;;  %v1500_v25 = vld [vmem:[#allocation2 + $0xb2] sm:$0x7f] }
 0x269   : > { %5102 = vmatprep.mubr.msk.f32.mxu1 %vm6403_vm12, %v8992_v26 }
 0x26a   : > { %4993 = vmatmul.mubr.f32.gmra.mrb[38].mxu0 %v1497_v20  ;;  %v6031_v20 = vpack.c.bf16 %v2510_v11, %v2509_v24 }
 0x26b   : > { %4995 = vmatprep.mubr.msk.f32.mxu0 %vm6403_vm12, %v8992_v26 }
 0x26c   : > { %5103 = vmatmul.mubr.f32.gmra.mrb[44].mxu1 %v1461_v47  ;;  %v2512_v47 = vld [vmem:[#allocation5 + $0x2c8] sm:$0xff] }
 0x26d   : > { %5238 = vmatprep.mubr.msk.f32.mxu1 %vm6403_vm12, %v8992_v26 }
 0x26e   : > { %4996 = vmatmul.mubr.f32.gmra.mrb[40].mxu0 %v1498_v7  ;;  %v2511_v7 = vld [vmem:[#allocation5 + $0x2c0] sm:$0xff] }
 0x26f   : > { %4998 = vmatprep.mubr.msk.f32.mxu0 %vm6403_vm12, %v8992_v26 }
 0x270   : > { %5239 = vmatmul.mubr.f32.vlgmr.msra.gmra.mrb[46].mxu1 %v2121_v49  ;;  %v2513_v49 = vld [vmem:[#allocation5 + $0x2d0] sm:$0xff] }
 0x271   : > { %5241 = vmatprep.mubr.msk.f32.mxu1 %vm6403_vm12, %v8992_v26 }
 0x272   : > { %4999 = vmatmul.mubr.f32.gmra.mrb[42].mxu0 %v1499_v43  ;;  %v6035_v43 = vpack.c.bf16 %v2512_v47, %v2511_v7  ;;  %v2465_v7 = vld [vmem:[#allocation5 + $0x208] sm:$0xff] }
 0x273   : > { %5001 = vmatprep.mubr.msk.f32.mxu0 %vm6403_vm12, %v8992_v26 }
 0x274   : > { %5242 = vmatmul.mubr.f32.gmra.mrb[48].mxu1 %v2122_v28 }
 0x275   : > { %5244 = vmatprep.mubr.msk.f32.mxu1 %vm6403_vm12, %v8992_v26 }
 0x276   : > { %5002 = vmatmul.mubr.f32.gmra.mrb[44].mxu0 %v1500_v25  ;;  %v2514_v25 = vld [vmem:[#allocation5 + $0x2d8] sm:$0xff] }
 0x277   : > { %5137 = vmatprep.mubr.msk.f32.mxu0 %vm6403_vm12, %v8992_v26  ;;  %v6039_v28 = vpack.c.bf16 %v2514_v25, %v2513_v49 }
 0x278   : > { %5245 = vmatmul.mubr.f32.gmra.mrb[50].mxu1 %v2123_v32  ;;  %v2516_v32 = vld [vmem:[#allocation5 + $0x2e8] sm:$0xff] }
 0x279   : > { %5247 = vmatprep.mubr.msk.f32.mxu1 %vm6403_vm12, %v8992_v26 }
 0x27a   : > { %5138 = vmatmul.mubr.f32.vlgmr.msra.gmra.mrb[46].mxu0 %v1878_v21  ;;  %v2515_v21 = vld [vmem:[#allocation5 + $0x2e0] sm:$0xff] }
 0x27b   : > { %5140 = vmatprep.mubr.msk.f32.mxu0 %vm6403_vm12, %v8992_v26  ;;  %6022 = vmatpush3.bf16.msra.mxu0 %v6019_v55 }
 0x27c   : > { %5248 = vmatmul.mubr.f32.gmra.mrb[52].mxu1 %v2124_v52  ;;  %6024 = vmatprep.subr.bf16.mxu0 %v6023_v51 }
 0x27d   : > { %5250 = vmatprep.mubr.msk.f32.mxu1 %vm6403_vm12, %v8992_v26 }
 0x27e   : > { %5141 = vmatmul.mubr.f32.gmra.mrb[48].mxu0 %v1879_v60  ;;  %v6043_v60 = vpack.c.bf16 %v2516_v32, %v2515_v21 }
 0x27f   : > { %5143 = vmatprep.mubr.msk.f32.mxu0 %vm6403_vm12, %v8992_v26  ;;  %6026 = vmatpush3.bf16.msra.mxu0 %v6023_v51 }
 0x280   : > { %5251 = vmatmul.mubr.f32.gmra.mrb[54].mxu1 %v2125_v54  ;;  %6028 = vmatprep.subr.bf16.mxu0 %v6027_v22  ;;  %v2517_v54 = vld [vmem:[#allocation5 + $0x2f0] sm:$0xff] }
 0x281   : > { %5253 = vmatprep.mubr.msk.f32.mxu1 %vm6403_vm12, %v8992_v26 }
 0x282   : > { %5144 = vmatmul.mubr.f32.gmra.mrb[50].mxu0 %v1880_v15 }
 0x283   : > { %5146 = vmatprep.mubr.msk.f32.mxu0 %vm6403_vm12, %v8992_v26  ;;  %6030 = vmatpush3.bf16.msra.mxu0 %v6027_v22 }
 0x284   : > { %5254 = vmatmul.mubr.f32.gmra.mrb[56].mxu1 %v2126_v29  ;;  %6032 = vmatprep.subr.bf16.mxu0 %v6031_v20 }
 0x285   : > { %5256 = vmatprep.mubr.msk.f32.mxu1 %vm6403_vm12, %v8992_v26 }
 0x286   : > { %5147 = vmatmul.mubr.f32.gmra.mrb[52].mxu0 %v1881_v61  ;;  %v2518_v61 = vld [vmem:[#allocation5 + $0x2f8] sm:$0xff] }
 0x287   : > { %5149 = vmatprep.mubr.msk.f32.mxu0 %vm6403_vm12, %v8992_v26  ;;  %6034 = vmatpush3.bf16.msra.mxu0 %v6031_v20  ;;  %v6047_v29 = vpack.c.bf16 %v2518_v61, %v2517_v54  ;;  %v2464_v20 = vld [vmem:[#allocation5 + $0x200] sm:$0xff] }
 0x288   : > { %5257 = vmatmul.mubr.f32.gmra.mrb[58].mxu1 %v2127_v31  ;;  %6036 = vmatprep.subr.bf16.mxu0 %v6035_v43  ;;  %v8004_v47 = vpack.c.bf16 %v2465_v7, %v2464_v20 }
 0x289   : > { %5259 = vmatprep.mubr.msk.f32.mxu1 %vm6403_vm12, %v8992_v26 }
 0x28a   : > { %5150 = vmatmul.mubr.f32.gmra.mrb[54].mxu0 %v1882_v42 }
 0x28b   : > { %5152 = vmatprep.mubr.msk.f32.mxu0 %vm6403_vm12, %v8992_v26  ;;  %6038 = vmatpush3.bf16.msra.mxu0 %v6035_v43 }
 0x28c   : > { %5260 = vmatmul.mubr.f32.gmra.mrb[60].mxu1 %v2128_v62  ;;  %6040 = vmatprep.subr.bf16.mxu0 %v6039_v28 }
 0x28d   : > { %5262 = vmatprep.mubr.msk.f32.mxu1 %vm6403_vm12, %v8992_v26 }
 0x28e   : > { %5153 = vmatmul.mubr.f32.gmra.mrb[56].mxu0 %v1883_v6 }
 0x28f   : > { %5155 = vmatprep.mubr.msk.f32.mxu0 %vm6403_vm12, %v8992_v26  ;;  %6042 = vmatpush3.bf16.msra.mxu0 %v6039_v28 }
 0x290   : > { %5263 = vmatmul.mubr.f32.gmra.mrb[62].mxu1 %v2129_v23  ;;  %6044 = vmatprep.subr.bf16.mxu0 %v6043_v60 }
 0x291   : > { %5265 = vmatprep.mubr.msk.f32.mxu1 %vm6403_vm12, %v8992_v26 }
 0x292   : > { %5156 = vmatmul.mubr.f32.gmra.mrb[58].mxu0 %v1884_v59 }
 0x293   : > { %5158 = vmatprep.mubr.msk.f32.mxu0 %vm6403_vm12, %v8992_v26  ;;  %6046 = vmatpush3.bf16.msra.mxu0 %v6043_v60 }
 0x294   : > { %5266 = vmatmul.mubr.f32.gmra.mrb[64].mxu1 %v2130_v50  ;;  %6048 = vmatprep.subr.bf16.mxu0 %v6047_v29 }
 0x295   : > { %5268 = vmatprep.mubr.msk.f32.mxu1 %vm6403_vm12, %v8992_v26 }
 0x296   : > { %5159 = vmatmul.mubr.f32.gmra.mrb[60].mxu0 %v1885_v0 }
 0x297   : > { %5161 = vmatprep.mubr.msk.f32.mxu0 %vm6403_vm12, %v8992_v26  ;;  %6050 = vmatpush3.bf16.msra.mxu0 %v6047_v29 }
 0x298   : > { %5269 = vmatmul.mubr.f32.gmra.mrb[66].mxu1 %v2131_v2  ;;  %6052 = vmatprep.subr.bf16.mxu0 %v8004_v47 }
 0x299   : > { %5271 = vmatprep.mubr.msk.f32.mxu1 %vm6403_vm12, %v8992_v26 }
 0x29a   : > { %5162 = vmatmul.mubr.f32.gmra.mrb[62].mxu0 %v1886_v30 }
 0x29b   : > { %5164 = vmatprep.mubr.msk.f32.mxu0 %vm6403_vm12, %v8992_v26 }
 0x29c   : > { %5272 = vmatmul.mubr.f32.gmra.mrb[68].mxu1 %v2132_v48 }
 0x29d   : > { %5274 = vmatprep.mubr.msk.f32.mxu1 %vm6403_vm12, %v8992_v26 }
 0x29e   : > { %5165 = vmatmul.mubr.f32.gmra.mrb[64].mxu0 %v1887_v12 }
 0x29f   : > { %5167 = vmatprep.mubr.msk.f32.mxu0 %vm6403_vm12, %v8992_v26 }
 0x2a0   : > { %5275 = vmatmul.mubr.f32.gmra.mrb[70].mxu1 %v2133_v13 }
 0x2a1   : > { %5277 = vmatprep.mubr.msk.f32.mxu1 %vm6403_vm12, %v8992_v26 }
 0x2a2   : > { %5168 = vmatmul.mubr.f32.gmra.mrb[66].mxu0 %v1888_v56 }
 0x2a3   : > { %5170 = vmatprep.mubr.msk.f32.mxu0 %vm6403_vm12, %v8992_v26 }
 0x2a4   : > { %5278 = vmatmul.mubr.f32.gmra.mrb[72].mxu1 %v2134_v16 }
 0x2a5   : > { %5280 = vmatprep.mubr.msk.f32.mxu1 %vm6403_vm12, %v8992_v26 }
 0x2a6   : > { %5171 = vmatmul.mubr.f32.gmra.mrb[68].mxu0 %v1889_v5 }
 0x2a7   : > { %5173 = vmatprep.mubr.msk.f32.mxu0 %vm6403_vm12, %v8992_v26 }
 0x2a8   : > { %5281 = vmatmul.mubr.f32.gmra.mrb[74].mxu1 %v2135_v8 }
 0x2a9   : > { %5283 = vmatprep.mubr.msk.f32.mxu1 %vm6403_vm12, %v8992_v26 }
 0x2aa   : > { %5174 = vmatmul.mubr.f32.gmra.mrb[70].mxu0 %v1890_v63 }
 0x2ab   : > { %5176 = vmatprep.mubr.msk.f32.mxu0 %vm6403_vm12, %v8992_v26 }
 0x2ac   : > { %5284 = vmatmul.mubr.f32.gmra.mrb[76].mxu1 %v2136_v40 }
 0x2ad   : > { %5286 = vmatprep.mubr.msk.f32.mxu1 %vm6403_vm12, %v8992_v26 }
 0x2ae   : > { %5177 = vmatmul.mubr.f32.gmra.mrb[72].mxu0 %v1891_v4 }
 0x2af   : > { %5179 = vmatprep.mubr.msk.f32.mxu0 %vm6403_vm12, %v8992_v26 }
 0x2b0   : > { %5287 = vmatmul.mubr.f32.gmra.mrb[78].mxu1 %v2137_v41 }
 0x2b1   : > { %5289 = vmatprep.mubr.msk.f32.mxu1 %vm6403_vm12, %v8992_v26 }
 0x2b2   : > { %5180 = vmatmul.mubr.f32.gmra.mrb[74].mxu0 %v1892_v36 }
 0x2b3   : > { %5182 = vmatprep.mubr.msk.f32.mxu0 %vm6403_vm12, %v8992_v26 }
 0x2b4   : > { %5290 = vmatmul.mubr.f32.gmra.mrb[80].mxu1 %v2138_v3 }
 0x2b5   : > { %5292 = vmatprep.mubr.msk.f32.mxu1 %vm6403_vm12, %v8992_v26 }
 0x2b6   : > { %5183 = vmatmul.mubr.f32.gmra.mrb[76].mxu0 %v1893_v53 }
 0x2b7   : > { %5185 = vmatprep.mubr.msk.f32.mxu0 %vm6403_vm12, %v8992_v26 }
 0x2b8   : > { %5293 = vmatmul.mubr.f32.gmra.mrb[82].mxu1 %v2139_v46 }
 0x2b9   : > { %5295 = vmatprep.mubr.msk.f32.mxu1 %vm6403_vm12, %v8992_v26 }
 0x2ba   : > { %5186 = vmatmul.mubr.f32.gmra.mrb[78].mxu0 %v1894_v19 }
 0x2bb   : > { %5188 = vmatprep.mubr.msk.f32.mxu0 %vm6403_vm12, %v8992_v26 }
 0x2bc   : > { %5296 = vmatmul.mubr.f32.gmra.mrb[84].mxu1 %v2140_v37 }
 0x2bd   : > { %5298 = vmatprep.mubr.msk.f32.mxu1 %vm6403_vm12, %v8992_v26 }
 0x2be   : > { %5189 = vmatmul.mubr.f32.gmra.mrb[80].mxu0 %v1895_v58 }
 0x2bf   : > { %5191 = vmatprep.mubr.msk.f32.mxu0 %vm6403_vm12, %v8992_v26 }
 0x2c0   : > { %5299 = vmatmul.mubr.f32.gmra.mrb[86].mxu1 %v2141_v27 }
 0x2c1   : > { %5301 = vmatprep.mubr.msk.f32.mxu1 %vm6403_vm12, %v8992_v26 }
 0x2c2   : > { %5192 = vmatmul.mubr.f32.gmra.mrb[82].mxu0 %v1896_v38 }
 0x2c3   : > { %5194 = vmatprep.mubr.msk.f32.mxu0 %vm6403_vm12, %v8992_v26 }
 0x2c4   : > { %5302 = vmatmul.mubr.f32.gmra.mrb[88].mxu1 %v2142_v18 }
 0x2c5   : > { %5304 = vmatprep.mubr.msk.f32.mxu1 %vm6403_vm12, %v8992_v26 }
 0x2c6   : > { %5195 = vmatmul.mubr.f32.gmra.mrb[84].mxu0 %v1897_v57 }
 0x2c7   : > { %5197 = vmatprep.mubr.msk.f32.mxu0 %vm6403_vm12, %v8992_v26 }
 0x2c8   : > { %5305 = vmatmul.mubr.f32.gmra.mrb[90].mxu1 %v2143_v39 }
 0x2c9   : > { %5599 = vmatprep.mubr.msk.f32.mxu1 %vm6403_vm12, %v8992_v26 }
 0x2ca   : > { %5198 = vmatmul.mubr.f32.gmra.mrb[86].mxu0 %v1898_v44 }
 0x2cb   : > { %5200 = vmatprep.mubr.msk.f32.mxu0 %vm6403_vm12, %v8992_v26 }
 0x2ce   : > { %5201 = vmatmul.mubr.f32.gmra.mrb[88].mxu0 %v1899_v1 }
 0x2cf   : > { %5203 = vmatprep.mubr.msk.f32.mxu0 %vm6403_vm12, %v8992_v26 }
 0x2d2   : > { %5204 = vmatmul.mubr.f32.gmra.mrb[90].mxu0 %v1900_v9 }
 0x2e7   : > { %v1764_v52 = vpop.f32.mrb[0].mxu1 }
 0x2e8   : > { %v5038_v15 = vpop.f32.mrb[1].mxu1 }
 0x2eb   : > { %v1769_v42 = vpop.f32.mrb[2].mxu1 }
 0x2ec   : > { %v5041_v31 = vpop.f32.mrb[3].mxu1 }
 0x2ef   : > { %v1774_v62 = vpop.f32.mrb[4].mxu1 }
 0x2f0   : > { %v5044_v0 = vpop.f32.mrb[5].mxu1 }
 0x2f1   : > { %v1584_v6 = vpop.f32.mrb[0].mxu0 }
 0x2f2   : > { %v7986_v59 = vadd.f32 %v1764_v52, %v1584_v6  ;;  %v4937_v23 = vpop.f32.mrb[1].mxu0 }
 0x2f3   : > { %v1779_v30 = vpop.f32.mrb[6].mxu1 }
 0x2f4   : > { %v5047_v48 = vpop.f32.mrb[7].mxu1 }
 0x2f5   : > { %v1589_v50 = vpop.f32.mrb[2].mxu0 }
 0x2f6   : > { %v7988_v2 = vadd.f32 %v1769_v42, %v1589_v50  ;;  %v4940_v12 = vpop.f32.mrb[3].mxu0 }
 0x2f7   : > { %v1784_v13 = vpop.f32.mrb[8].mxu1 }
 0x2f8   : > { %v5050_v63 = vpop.f32.mrb[9].mxu1 }
 0x2f9   : > { %v1594_v56 = vpop.f32.mrb[4].mxu0 }
 0x2fa   : > { %v7990_v5 = vadd.f32 %v1774_v62, %v1594_v56  ;;  %v4943_v16 = vpop.f32.mrb[5].mxu0 }
 0x2fb   : > { %v1789_v4 = vpop.f32.mrb[10].mxu1 }
 0x2fc   : > { %v5053_v33 = vpop.f32.mrb[11].mxu1 }
 0x2fd   : > { %v1599_v8 = vpop.f32.mrb[6].mxu0 }
 0x2fe   : > { %v7992_v40 = vadd.f32 %v1779_v30, %v1599_v8  ;;  %v4946_v45 = vpop.f32.mrb[7].mxu0 }
 0x2ff   : > { %v1794_v36 = vpop.f32.mrb[12].mxu1 }
 0x300   : > { %v5056_v3 = vpop.f32.mrb[13].mxu1 }
 0x301   : > { %v1604_v55 = vpop.f32.mrb[8].mxu0 }
 0x302   : > { %v7994_v41 = vadd.f32 %v1784_v13, %v1604_v55  ;;  %v4949_v53 = vpop.f32.mrb[9].mxu0 }
 0x303   : > { %v1799_v46 = vpop.f32.mrb[14].mxu1 }
 0x304   : > { %v5059_v51 = vpop.f32.mrb[15].mxu1 }
 0x305   : > { %v1609_v19 = vpop.f32.mrb[10].mxu0 }
 0x306   : > { %v7996_v10 = vadd.f32 %v1789_v4, %v1609_v19  ;;  %v4952_v17 = vpop.f32.mrb[11].mxu0 }
 0x307   : > { %v1804_v37 = vpop.f32.mrb[16].mxu1 }
 0x308   : > { %v5062_v57 = vpop.f32.mrb[17].mxu1 }
 0x309   : > { %v1614_v58 = vpop.f32.mrb[12].mxu0 }
 0x30a   : > { %v7998_v38 = vadd.f32 %v1794_v36, %v1614_v58  ;;  %v4955_v27 = vpop.f32.mrb[13].mxu0 }
 0x30b   : > { %v1809_v14 = vpop.f32.mrb[18].mxu1 }
 0x30c   : > { %v5065_v44 = vpop.f32.mrb[19].mxu1 }
 0x30d   : > { %v1619_v18 = vpop.f32.mrb[14].mxu0 }
 0x30e   : > { %v8000_v34 = vadd.f32 %v1799_v46, %v1619_v18  ;;  %v4958_v22 = vpop.f32.mrb[15].mxu0 }
 0x30f   : > { %v1814_v1 = vpop.f32.mrb[20].mxu1 }
 0x310   : > { %v5068_v11 = vpop.f32.mrb[21].mxu1 }
 0x311   : > { %v1624_v39 = vpop.f32.mrb[16].mxu0 }
 0x312   : > { %v8002_v9 = vadd.f32 %v1804_v37, %v1624_v39  ;;  %v4961_v24 = vpop.f32.mrb[17].mxu0 }
 0x313   : > { %v1819_v49 = vpop.f32.mrb[22].mxu1 }
 0x314   : > { %v5071_v21 = vpop.f32.mrb[23].mxu1 }
 0x315   : > { %v1629_v43 = vpop.f32.mrb[18].mxu0 }
 0x316   : > { %v8007_v25 = vadd.f32 %v1809_v14, %v1629_v43  ;;  %v4964_v28 = vpop.f32.mrb[19].mxu0 }
 0x317   : > { %v1824_v60 = vpop.f32.mrb[24].mxu1 }
 0x318   : > { %v5074_v54 = vpop.f32.mrb[25].mxu1 }
 0x319   : > { %v1634_v32 = vpop.f32.mrb[20].mxu0 }
 0x31a   : > { %v8009_v52 = vadd.f32 %v1814_v1, %v1634_v32  ;;  %v4967_v15 = vpop.f32.mrb[21].mxu0 }
 0x31b   : > { %v1829_v29 = vpop.f32.mrb[26].mxu1 }
 0x31c   : > { %v5077_v6 = vpop.f32.mrb[27].mxu1 }
 0x31d   : > { %v1639_v61 = vpop.f32.mrb[22].mxu0 }
 0x31e   : > { %v8011_v42 = vadd.f32 %v1819_v49, %v1639_v61  ;;  %v4970_v31 = vpop.f32.mrb[23].mxu0 }
 0x31f   : > { %v1834_v23 = vpop.f32.mrb[28].mxu1 }
 0x320   : > { %v5080_v30 = vpop.f32.mrb[29].mxu1 }
 0x321   : > { %v1644_v62 = vpop.f32.mrb[24].mxu0 }
 0x322   : > { %v8013_v0 = vadd.f32 %v1824_v60, %v1644_v62  ;;  %v4973_v50 = vpop.f32.mrb[25].mxu0 }
 0x323   : > { %v1839_v48 = vpop.f32.mrb[30].mxu1 }
 0x324   : > { %v5083_v16 = vpop.f32.mrb[31].mxu1 }
 0x325   : > { %v1649_v12 = vpop.f32.mrb[26].mxu0 }
 0x326   : > { %v8015_v56 = vadd.f32 %v1829_v29, %v1649_v12  ;;  %v4976_v13 = vpop.f32.mrb[27].mxu0 }
 0x327   : > { %v1844_v8 = vpop.f32.mrb[32].mxu1 }
 0x328   : > { %v5086_v33 = vpop.f32.mrb[33].mxu1 }
 0x329   : > { %v1654_v63 = vpop.f32.mrb[28].mxu0  ;;  %v8039_v33 = vld [vmem:[%s8886_s3 + $0x1] ss:$0 sm:$0xff] }
 0x32a   : > { %v8017_v4 = vadd.f32 %v1834_v23, %v1654_v63  ;;  %v4979_v45 = vpop.f32.mrb[29].mxu0 }
 0x32b   : > { %v1849_v36 = vpop.f32.mrb[34].mxu1 }
 0x32c   : > { %v5089_v19 = vpop.f32.mrb[35].mxu1 }
 0x32d   : > { %v1659_v55 = vpop.f32.mrb[30].mxu0 }
 0x32e   : > { %v8019_v53 = vadd.f32 %v1839_v48, %v1659_v55  ;;  %v4982_v3 = vpop.f32.mrb[31].mxu0 }
 0x32f   : > { %v1854_v17 = vpop.f32.mrb[36].mxu1 }
 0x330   : > { %v5092_v37 = vpop.f32.mrb[37].mxu1 }
 0x331   : > { %v1664_v46 = vpop.f32.mrb[32].mxu0 }
 0x332   : > { %v8021_v51 = vadd.f32 %v1844_v8, %v1664_v46  ;;  %v4985_v58 = vpop.f32.mrb[33].mxu0 }
 0x333   : > { %v1859_v57 = vpop.f32.mrb[38].mxu1 }
 0x334   : > { %v5095_v22 = vpop.f32.mrb[39].mxu1 }
 0x335   : > { %v1669_v27 = vpop.f32.mrb[34].mxu0 }
 0x336   : > { %v8023_v18 = vadd.f32 %v1849_v36, %v1669_v27  ;;  %v4988_v14 = vpop.f32.mrb[35].mxu0 }
 0x337   : > { %v1864_v39 = vpop.f32.mrb[40].mxu1 }
 0x338   : > { %v5098_v11 = vpop.f32.mrb[41].mxu1 }
 0x339   : > { %v1674_v44 = vpop.f32.mrb[36].mxu0 }
 0x33a   : > { %v8025_v1 = vadd.f32 %v1854_v17, %v1674_v44  ;;  %v4991_v24 = vpop.f32.mrb[37].mxu0 }
 0x33b   : > { %v1869_v7 = vpop.f32.mrb[42].mxu1 }
 0x33c   : > { %v5101_v28 = vpop.f32.mrb[43].mxu1 }
 0x33d   : > { %v1679_v20 = vpop.f32.mrb[38].mxu0 }
 0x33e   : > { %v8027_v43 = vadd.f32 %v1859_v57, %v1679_v20  ;;  %v4994_v49 = vpop.f32.mrb[39].mxu0 }
 0x33f   : > { %v1874_v32 = vpop.f32.mrb[44].mxu1 }
 0x340   : > { %v5104_v54 = vpop.f32.mrb[45].mxu1 }
 0x341   : > { %v1684_v21 = vpop.f32.mrb[40].mxu0 }
 0x342   : > { %v8029_v60 = vadd.f32 %v1864_v39, %v1684_v21  ;;  %v4997_v15 = vpop.f32.mrb[41].mxu0 }
 0x343   : > { %v2227_v29 = vpop.f32.mrb[46].mxu1 }
 0x344   : > { %v5240_v62 = vpop.f32.mrb[47].mxu1 }
 0x345   : > { %v1689_v61 = vpop.f32.mrb[42].mxu0 }
 0x346   : > { %v8031_v31 = vadd.f32 %v1869_v7, %v1689_v61  ;;  %v5000_v6 = vpop.f32.mrb[43].mxu0 }
 0x347   : > { %v2232_v50 = vpop.f32.mrb[48].mxu1 }
 0x348   : > { %v5243_v48 = vpop.f32.mrb[49].mxu1 }
 0x349   : > { %v1694_v23 = vpop.f32.mrb[44].mxu0 }
 0x34a   : > { %v8033_v30 = vadd.f32 %v1874_v32, %v1694_v23  ;;  %v5003_v12 = vpop.f32.mrb[45].mxu0 }
 0x34b   : > { %v2237_v16 = vpop.f32.mrb[50].mxu1 }
 0x34c   : > { %v5246_v45 = vpop.f32.mrb[51].mxu1 }
 0x34d   : > { %v1984_v13 = vpop.f32.mrb[46].mxu0 }
 0x34e   : > { %v2098_v63 = vadd.f32 %v1984_v13, %v7986_v59  ;;  %v5139_v8 = vpop.f32.mrb[47].mxu0  ;;  %v2466_v13 = vld [vmem:[#allocation5 + $0x210] sm:$0xff] }
 0x34f   : > { %v2242_v3 = vpop.f32.mrb[52].mxu1 }
 0x350   : > { %v2341_v55 = vadd.f32 %v2227_v29, %v2098_v63  ;;  %v5249_v58 = vpop.f32.mrb[53].mxu1 }
 0x351   : > { %v1989_v36 = vpop.f32.mrb[48].mxu0 }
 0x352   : > { %v8042_v19 = vadd.f32 %v8039_v33, %v2341_v55  ;;  %v2099_v46 = vadd.f32 %v1989_v36, %v7988_v2  ;;  %v5142_v17 = vpop.f32.mrb[49].mxu0 }
 0x353   : > { %v2247_v57 = vpop.f32.mrb[54].mxu1 }
 0x354   : > { %v2395_v37 = vmax.f32 %v8042_v19, 0.0  ;;  %v2342_v59 = vadd.f32 %v2232_v50, %v2099_v46  ;;  %v5252_v39 = vpop.f32.mrb[55].mxu1 }
 0x355   : > { %v1994_v27 = vpop.f32.mrb[50].mxu0 }
 0x356   : > { %2418 = vst [vmem:[#allocation3] sm:$0xff] %v2395_v37  ;;  %v2373_v14 = vadd.f32 %v8039_v33, %v2342_v59  ;;  %v2100_v22 = vadd.f32 %v1994_v27, %v7990_v5  ;;  %v5145_v44 = vpop.f32.mrb[51].mxu0  ;;  %v2468_v59 = vld [vmem:[#allocation5 + $0x220] sm:$0xff]  ;;  %v2469_v27 = vld [vmem:[#allocation5 + $0x228] sm:$0xff] }
 0x357   : > { %v2252_v20 = vpop.f32.mrb[56].mxu1 }
 0x358   : > { %v8050_v24 = vmax.f32 %v2373_v14, 0.0  ;;  %v2343_v11 = vadd.f32 %v2237_v16, %v2100_v22  ;;  %v5255_v21 = vpop.f32.mrb[57].mxu1  ;;  %v2467_v16 = vld [vmem:[#allocation5 + $0x218] sm:$0xff] }
 0x359   : > { %v1999_v2 = vpop.f32.mrb[52].mxu0 }
 0x35a   : > { %2419 = vst [vmem:[#allocation3 + $0x8] sm:$0xff] %v8050_v24  ;;  %v2374_v7 = vadd.f32 %v8039_v33, %v2343_v11  ;;  %v2101_v49 = vadd.f32 %v1999_v2, %v7992_v40  ;;  %v5148_v28 = vpop.f32.mrb[53].mxu0  ;;  %v6059_v11 = vpack.c.bf16 %v2469_v27, %v2468_v59 }
 0x35b   : > { %v2257_v5 = vpop.f32.mrb[58].mxu1  ;;  %v2471_v28 = vld [vmem:[#allocation5 + $0x238] sm:$0xff] }
 0x35c   : > { %v8055_v32 = vmax.f32 %v2374_v7, 0.0  ;;  %v2344_v15 = vadd.f32 %v2242_v3, %v2101_v49  ;;  %v5258_v62 = vpop.f32.mrb[59].mxu1  ;;  %v6055_v3 = vpack.c.bf16 %v2467_v16, %v2466_v13  ;;  %v2470_v49 = vld [vmem:[#allocation5 + $0x230] sm:$0xff] }
 0x35d   : > { %v2004_v54 = vpop.f32.mrb[54].mxu0 }
 0x35e   : > { %2420 = vst [vmem:[#allocation3 + $0x10] sm:$0xff] %v8055_v32  ;;  %v2375_v61 = vadd.f32 %v8039_v33, %v2344_v15  ;;  %v2102_v29 = vadd.f32 %v2004_v54, %v7994_v41  ;;  %v5151_v6 = vpop.f32.mrb[55].mxu0 }
 0x35f   : > { %v2262_v48 = vpop.f32.mrb[60].mxu1 }
 0x360   : > { %v8060_v23 = vmax.f32 %v2375_v61, 0.0  ;;  %v2345_v50 = vadd.f32 %v2247_v57, %v2102_v29  ;;  %v5261_v55 = vpop.f32.mrb[61].mxu1  ;;  %v6063_v61 = vpack.c.bf16 %v2471_v28, %v2470_v49  ;;  %v2477_v49 = vld [vmem:[#allocation5 + $0x268] sm:$0xff] }
 0x361   : > { %v2009_v12 = vpop.f32.mrb[56].mxu0  ;;  %v2480_v40 = vld [vmem:[#allocation3 + $0x4] sm:$0xff] }
 0x362   : > { %2421 = vst [vmem:[#allocation3 + $0x18] sm:$0xff] %v8060_v23  ;;  %v2376_v63 = vadd.f32 %v8039_v33, %v2345_v50  ;;  %v2103_v8 = vadd.f32 %v2009_v12, %v7996_v10  ;;  %v5154_v45 = vpop.f32.mrb[57].mxu0  ;;  %5339 = vmatprep.mubr.f32.mxu0 %v2480_v40  ;;  %v2472_v50 = vld [vmem:[#allocation5 + $0x240] sm:$0xff]  ;;  %v2473_v12 = vld [vmem:[#allocation5 + $0x248] sm:$0xff] }
 0x363   : > { %v2267_v58 = vpop.f32.mrb[62].mxu1 }
 0x364   : > { %v8065_v41 = vmax.f32 %v2376_v63, 0.0  ;;  %v2346_v36 = vadd.f32 %v2252_v20, %v2103_v8  ;;  %v5264_v22 = vpop.f32.mrb[63].mxu1  ;;  %v6067_v8 = vpack.c.bf16 %v2473_v12, %v2472_v50  ;;  %v2478_v50 = vld [vmem:[#allocation5 + $0x270] sm:$0xff]  ;;  %v2479_v12 = vld [vmem:[#allocation5 + $0x278] sm:$0xff] }
 0x365   : > { %v2014_v46 = vpop.f32.mrb[58].mxu0  ;;  %v8067_v17 = vld [vmem:[#allocation3 + $0xc] sm:$0xff] }
 0x366   : > { %2422 = vst [vmem:[#allocation3 + $0x20] sm:$0xff] %v8065_v41  ;;  %v2377_v57 = vadd.f32 %v8039_v33, %v2346_v36  ;;  %v2104_v14 = vadd.f32 %v2014_v46, %v7998_v38  ;;  %v5157_v10 = vpop.f32.mrb[59].mxu0  ;;  %5340 = vmatmul.mubr.f32.vlgmr.msra.gmra.mrb[92].mxu0 %v8067_v17  ;;  %v2475_v46 = vld [vmem:[#allocation5 + $0x258] sm:$0xff] }
 0x367   : > { %6054 = vmatpush3.bf16.msra.mxu0 %v8004_v47  ;;  %v2272_v7 = vpop.f32.mrb[64].mxu1 }
 0x368   : > { %v8074_v44 = vmax.f32 %v2377_v57, 0.0  ;;  %v2347_v39 = vadd.f32 %v2257_v5, %v2104_v14  ;;  %6056 = vmatprep.subr.bf16.mxu0 %v6055_v3  ;;  %v5267_v47 = vpop.f32.mrb[65].mxu1 }
 0x369   : > { %v2019_v2 = vpop.f32.mrb[60].mxu0  ;;  %v8076_v20 = vld [vmem:[#allocation3 + $0x14] sm:$0xff] }
 0x36a   : > { %2423 = vst [vmem:[#allocation3 + $0x28] sm:$0xff] %v8074_v44  ;;  %v2378_v38 = vadd.f32 %v8039_v33, %v2347_v39  ;;  %v2105_v21 = vadd.f32 %v2019_v2, %v8000_v34  ;;  %v5160_v15 = vpop.f32.mrb[61].mxu0  ;;  %5342 = vmatprep.mubr.f32.mxu0 %v8076_v20  ;;  %v2476_v2 = vld [vmem:[#allocation5 + $0x260] sm:$0xff] }
 0x36b   : > { %6058 = vmatpush3.bf16.msra.mxu0 %v6055_v3  ;;  %v2277_v62 = vpop.f32.mrb[66].mxu1  ;;  %v2474_v3 = vld [vmem:[#allocation5 + $0x250] sm:$0xff]  ;;  %v6075_v47 = vpack.c.bf16 %v2477_v49, %v2476_v2 }
 0x36c   : > { %v8082_v54 = vmax.f32 %v2378_v38, 0.0  ;;  %v2348_v5 = vadd.f32 %v2262_v48, %v2105_v21  ;;  %6060 = vmatprep.subr.bf16.mxu0 %v6059_v11  ;;  %v5270_v16 = vpop.f32.mrb[67].mxu1  ;;  %v6071_v10 = vpack.c.bf16 %v2475_v46, %v2474_v3  ;;  %v2892_v46 = vld [vmem:[#allocation5 + $0x300] sm:$0xff] }
 0x36d   : > { %v2024_v29 = vpop.f32.mrb[62].mxu0  ;;  %v8084_v6 = vld [vmem:[#allocation3 + $0x1c] sm:$0xff] }
 0x36e   : > { %2424 = vst [vmem:[#allocation3 + $0x30] sm:$0xff] %v8082_v54  ;;  %v2379_v34 = vadd.f32 %v8039_v33, %v2348_v5  ;;  %v2106_v40 = vadd.f32 %v2024_v29, %v8002_v9  ;;  %v5163_v13 = vpop.f32.mrb[63].mxu0  ;;  %5343 = vmatmul.mubr.f32.gmra.mrb[94].mxu0 %v8084_v6 }
 0x36f   : > { %6062 = vmatpush3.bf16.msra.mxu0 %v6059_v11  ;;  %v2282_v36 = vpop.f32.mrb[68].mxu1 }
 0x370   : > { %v8090_v48 = vmax.f32 %v2379_v34, 0.0  ;;  %v2349_v63 = vadd.f32 %v2267_v58, %v2106_v40  ;;  %6064 = vmatprep.subr.bf16.mxu0 %v6063_v61  ;;  %v5273_v57 = vpop.f32.mrb[69].mxu1 }
 0x371   : > { %v2029_v45 = vpop.f32.mrb[64].mxu0  ;;  %v8092_v55 = vld [vmem:[#allocation3 + $0x24] sm:$0xff] }
 0x372   : > { %2425 = vst [vmem:[#allocation3 + $0x38] sm:$0xff] %v8090_v48  ;;  %v2380_v9 = vadd.f32 %v8039_v33, %v2349_v63  ;;  %v2107_v59 = vadd.f32 %v2029_v45, %v8007_v25  ;;  %v5166_v27 = vpop.f32.mrb[65].mxu0  ;;  %5345 = vmatprep.mubr.f32.mxu0 %v8092_v55  ;;  %v6079_v63 = vpack.c.bf16 %v2479_v12, %v2478_v50 }
 0x373   : > { %6066 = vmatpush3.bf16.msra.mxu0 %v6063_v61  ;;  %v2287_v11 = vpop.f32.mrb[70].mxu1 }
 0x374   : > { %v8098_v58 = vmax.f32 %v2380_v9, 0.0  ;;  %v2350_v14 = vadd.f32 %v2272_v7, %v2107_v59  ;;  %6068 = vmatprep.subr.bf16.mxu0 %v6067_v8  ;;  %v5276_v21 = vpop.f32.mrb[71].mxu1  ;;  %v2893_v9 = vld [vmem:[#allocation5 + $0x308] sm:$0xff] }
 0x375   : > { %v2034_v22 = vpop.f32.mrb[66].mxu0  ;;  %v8100_v39 = vld [vmem:[#allocation3 + $0x2c] sm:$0xff] }
 0x376   : > { %2426 = vst [vmem:[#allocation3 + $0x40] sm:$0xff] %v8098_v58  ;;  %v2381_v25 = vadd.f32 %v8039_v33, %v2350_v14  ;;  %v2108_v28 = vadd.f32 %v2034_v22, %v8009_v52  ;;  %v5169_v38 = vpop.f32.mrb[67].mxu0  ;;  %5346 = vmatmul.mubr.f32.gmra.mrb[96].mxu0 %v8100_v39 }
 0x377   : > { %6070 = vmatpush3.bf16.msra.mxu0 %v6067_v8  ;;  %v2292_v29 = vpop.f32.mrb[72].mxu1 }
 0x378   : > { %v8106_v7 = vmax.f32 %v2381_v25, 0.0  ;;  %v2351_v15 = vadd.f32 %v2277_v62, %v2108_v28  ;;  %6072 = vmatprep.subr.bf16.mxu0 %v6071_v10  ;;  %v5279_v13 = vpop.f32.mrb[73].mxu1 }
 0x379   : > { %v2039_v5 = vpop.f32.mrb[68].mxu0  ;;  %v8108_v61 = vld [vmem:[#allocation3 + $0x34] sm:$0xff] }
 0x37a   : > { %2427 = vst [vmem:[#allocation3 + $0x48] sm:$0xff] %v8106_v7  ;;  %v2382_v52 = vadd.f32 %v8039_v33, %v2351_v15  ;;  %v2109_v34 = vadd.f32 %v2039_v5, %v8011_v42  ;;  %v5172_v40 = vpop.f32.mrb[69].mxu0  ;;  %5348 = vmatprep.mubr.f32.mxu0 %v8108_v61 }
 0x37b   : > { %6074 = vmatpush3.bf16.msra.mxu0 %v6071_v10  ;;  %v2297_v3 = vpop.f32.mrb[74].mxu1  ;;  %v8124_v10 = vpack.c.bf16 %v2893_v9, %v2892_v46 }
 0x37c   : > { %v8114_v62 = vmax.f32 %v2382_v52, 0.0  ;;  %v2352_v16 = vadd.f32 %v2282_v36, %v2109_v34  ;;  %6076 = vmatprep.subr.bf16.mxu0 %v6075_v47  ;;  %v5282_v57 = vpop.f32.mrb[75].mxu1 }
 0x37d   : > { %v2044_v8 = vpop.f32.mrb[70].mxu0  ;;  %v8116_v45 = vld [vmem:[#allocation3 + $0x3c] sm:$0xff] }
 0x37e   : > { %2428 = vst [vmem:[#allocation3 + $0x50] sm:$0xff] %v8114_v62  ;;  %v2383_v42 = vadd.f32 %v8039_v33, %v2352_v16  ;;  %v2110_v59 = vadd.f32 %v2044_v8, %v8013_v0  ;;  %v5175_v27 = vpop.f32.mrb[71].mxu0  ;;  %5349 = vmatmul.mubr.f32.gmra.mrb[98].mxu0 %v8116_v45 }
 0x37f   : > { %6078 = vmatpush3.bf16.msra.mxu0 %v6075_v47  ;;  %v2302_v49 = vpop.f32.mrb[76].mxu1 }
 0x380   : > { %v8122_v36 = vmax.f32 %v2383_v42, 0.0  ;;  %v2353_v14 = vadd.f32 %v2287_v11, %v2110_v59  ;;  %6080 = vmatprep.subr.bf16.mxu0 %v6079_v63  ;;  %v5285_v38 = vpop.f32.mrb[77].mxu1 }
 0x381   : > { %v2049_v22 = vpop.f32.mrb[72].mxu0  ;;  %v8126_v2 = vld [vmem:[#allocation3 + $0x44] sm:$0xff] }
 0x382   : > { %2429 = vst [vmem:[#allocation3 + $0x58] sm:$0xff] %v8122_v36  ;;  %v2384_v25 = vadd.f32 %v8039_v33, %v2353_v14  ;;  %v2111_v0 = vadd.f32 %v2049_v22, %v8015_v56  ;;  %v5178_v28 = vpop.f32.mrb[73].mxu0  ;;  %5351 = vmatprep.mubr.f32.mxu0 %v8126_v2 }
 0x383   : > { %6082 = vmatpush3.bf16.msra.mxu0 %v6079_v63  ;;  %v2307_v5 = vpop.f32.mrb[78].mxu1 }
 0x384   : > { %v8132_v21 = vmax.f32 %v2384_v25, 0.0  ;;  %v2354_v11 = vadd.f32 %v2292_v29, %v2111_v0  ;;  %6084 = vmatprep.subr.bf16.mxu0 %v8124_v10  ;;  %v5288_v52 = vpop.f32.mrb[79].mxu1 }
 0x385   : > { %v2054_v15 = vpop.f32.mrb[74].mxu0  ;;  %v8135_v47 = vld [vmem:[#allocation3 + $0x4c] sm:$0xff] }
 0x386   : > { %2430 = vst [vmem:[#allocation3 + $0x60] sm:$0xff] %v8132_v21  ;;  %v2385_v50 = vadd.f32 %v8039_v33, %v2354_v11  ;;  %v2112_v56 = vadd.f32 %v2054_v15, %v8017_v4  ;;  %v5181_v12 = vpop.f32.mrb[75].mxu0  ;;  %5352 = vmatmul.mubr.f32.gmra.mrb[100].mxu0 %v8135_v47 }
 0x387   : > { %v2312_v16 = vpop.f32.mrb[80].mxu1 }
 0x388   : > { %v8141_v34 = vmax.f32 %v2385_v50, 0.0  ;;  %v2355_v40 = vadd.f32 %v2297_v3, %v2112_v56  ;;  %v5291_v4 = vpop.f32.mrb[81].mxu1 }
 0x389   : > { %v2059_v29 = vpop.f32.mrb[76].mxu0  ;;  %v8143_v13 = vld [vmem:[#allocation3 + $0x54] sm:$0xff] }
 0x38a   : > { %2431 = vst [vmem:[#allocation3 + $0x68] sm:$0xff] %v8141_v34  ;;  %v2386_v63 = vadd.f32 %v8039_v33, %v2355_v40  ;;  %v2113_v8 = vadd.f32 %v2059_v29, %v8019_v53  ;;  %v5184_v46 = vpop.f32.mrb[77].mxu0  ;;  %5354 = vmatprep.mubr.f32.mxu0 %v8143_v13 }
 0x38b   : > { %v2317_v3 = vpop.f32.mrb[82].mxu1 }
 0x38c   : > { %v8149_v9 = vmax.f32 %v2386_v63, 0.0  ;;  %v2356_v42 = vadd.f32 %v2302_v49, %v2113_v8  ;;  %v5294_v53 = vpop.f32.mrb[83].mxu1 }
 0x38d   : > { %v2064_v59 = vpop.f32.mrb[78].mxu0  ;;  %v8151_v27 = vld [vmem:[#allocation3 + $0x5c] sm:$0xff] }
 0x38e   : > { %2432 = vst [vmem:[#allocation3 + $0x70] sm:$0xff] %v8149_v9  ;;  %v2387_v57 = vadd.f32 %v8039_v33, %v2356_v42  ;;  %v2114_v14 = vadd.f32 %v2064_v59, %v8021_v51  ;;  %v5187_v22 = vpop.f32.mrb[79].mxu0  ;;  %5355 = vmatmul.mubr.f32.gmra.mrb[102].mxu0 %v8151_v27 }
 0x38f   : > { %v2322_v49 = vpop.f32.mrb[84].mxu1 }
 0x390   : > { %v8157_v25 = vmax.f32 %v2387_v57, 0.0  ;;  %v2357_v0 = vadd.f32 %v2307_v5, %v2114_v14  ;;  %v5297_v51 = vpop.f32.mrb[85].mxu1 }
 0x391   : > { %v2069_v28 = vpop.f32.mrb[80].mxu0  ;;  %v8159_v38 = vld [vmem:[#allocation3 + $0x64] sm:$0xff] }
 0x392   : > { %2433 = vst [vmem:[#allocation3 + $0x78] sm:$0xff] %v8157_v25  ;;  %v2388_v11 = vadd.f32 %v8039_v33, %v2357_v0  ;;  %v2115_v15 = vadd.f32 %v2069_v28, %v8023_v18  ;;  %v5190_v50 = vpop.f32.mrb[81].mxu0  ;;  %5357 = vmatprep.mubr.f32.mxu0 %v8159_v38 }
 0x393   : > { %v2327_v5 = vpop.f32.mrb[86].mxu1 }
 0x394   : > { %v8165_v56 = vmax.f32 %v2388_v11, 0.0  ;;  %v2358_v12 = vadd.f32 %v2312_v16, %v2115_v15  ;;  %v5300_v18 = vpop.f32.mrb[87].mxu1 }
 0x395   : > { %v2074_v52 = vpop.f32.mrb[82].mxu0  ;;  %v8167_v40 = vld [vmem:[#allocation3 + $0x6c] sm:$0xff] }
 0x396   : > { %2434 = vst [vmem:[#allocation3 + $0x80] sm:$0xff] %v8165_v56  ;;  %v2389_v29 = vadd.f32 %v8039_v33, %v2358_v12  ;;  %v2116_v63 = vadd.f32 %v2074_v52, %v8025_v1  ;;  %v5193_v8 = vpop.f32.mrb[83].mxu0  ;;  %5358 = vmatmul.mubr.f32.gmra.mrb[104].mxu0 %v8167_v40 }
 0x397   : > { %v2332_v16 = vpop.f32.mrb[88].mxu1 }
 0x398   : > { %v8173_v46 = vmax.f32 %v2389_v29, 0.0  ;;  %v2359_v4 = vadd.f32 %v2317_v3, %v2116_v63  ;;  %v5303_v1 = vpop.f32.mrb[89].mxu1 }
 0x399   : > { %v2079_v42 = vpop.f32.mrb[84].mxu0  ;;  %v8175_v59 = vld [vmem:[#allocation3 + $0x74] sm:$0xff] }
 0x39a   : > { %2435 = vst [vmem:[#allocation3 + $0x88] sm:$0xff] %v8173_v46  ;;  %v2390_v57 = vadd.f32 %v8039_v33, %v2359_v4  ;;  %v2117_v14 = vadd.f32 %v2079_v42, %v8027_v43  ;;  %v5196_v22 = vpop.f32.mrb[85].mxu0  ;;  %5360 = vmatprep.mubr.f32.mxu0 %v8175_v59 }
 0x39b   : > { %v2337_v3 = vpop.f32.mrb[90].mxu1 }
 0x39c   : > { %v8181_v53 = vmax.f32 %v2390_v57, 0.0  ;;  %v2360_v0 = vadd.f32 %v2322_v49, %v2117_v14  ;;  %v5306_v43 = vpop.f32.mrb[91].mxu1 }
 0x39d   : > { %v2084_v28 = vpop.f32.mrb[86].mxu0  ;;  %v8183_v11 = vld [vmem:[#allocation3 + $0x7c] sm:$0xff]  ;;  %v2896_v43 = vld [vmem:[#allocation5 + $0x320] sm:$0xff] }
 0x39e   : > { %2436 = vst [vmem:[#allocation3 + $0x90] sm:$0xff] %v8181_v53  ;;  %v2391_v15 = vadd.f32 %v8039_v33, %v2360_v0  ;;  %v2118_v50 = vadd.f32 %v2084_v28, %v8029_v60  ;;  %v5199_v51 = vpop.f32.mrb[87].mxu0  ;;  %5361 = vmatmul.mubr.f32.gmra.mrb[106].mxu0 %v8183_v11 }
 0x39f   : > { %v2895_v51 = vld [vmem:[#allocation5 + $0x318] sm:$0xff] }
 0x3a0   : > { %v8189_v12 = vmax.f32 %v2391_v15, 0.0  ;;  %v2361_v52 = vadd.f32 %v2327_v5, %v2118_v50 }
 0x3a1   : > { %v2089_v29 = vpop.f32.mrb[88].mxu0  ;;  %v8191_v63 = vld [vmem:[#allocation3 + $0x84] sm:$0xff] }
 0x3a2   : > { %2437 = vst [vmem:[#allocation3 + $0x98] sm:$0xff] %v8189_v12  ;;  %v2392_v49 = vadd.f32 %v8039_v33, %v2361_v52  ;;  %v2119_v8 = vadd.f32 %v2089_v29, %v8031_v31  ;;  %v5202_v18 = vpop.f32.mrb[89].mxu0  ;;  %5363 = vmatprep.mubr.f32.mxu0 %v8191_v63  ;;  %v2897_v52 = vld [vmem:[#allocation5 + $0x328] sm:$0xff]  ;;  %v3454_v29 = vld [vmem:[#allocation5 + $0x480] sm:$0xff] }
 0x3a4   : > { %v8197_v60 = vmax.f32 %v2392_v49, 0.0  ;;  %v2362_v4 = vadd.f32 %v2332_v16, %v2119_v8  ;;  %v3455_v49 = vld [vmem:[#allocation5 + $0x488] sm:$0xff]  ;;  %v3456_v8 = vld [vmem:[#allocation5 + $0x490] sm:$0xff] }
 0x3a5   : > { %v2094_v42 = vpop.f32.mrb[90].mxu0  ;;  %v8199_v57 = vld [vmem:[#allocation3 + $0x8c] sm:$0xff]  ;;  %v6148_v18 = vpack.c.bf16 %v3455_v49, %v3454_v29  ;;  %v2903_v29 = vld [vmem:[#allocation5 + $0x358] sm:$0xff] }
 0x3a6   : > { %2438 = vst [vmem:[#allocation3 + $0xa0] sm:$0xff] %v8197_v60  ;;  %v8203_v5 = vadd.f32 %v8039_v33, %v2362_v4  ;;  %v2120_v14 = vadd.f32 %v2094_v42, %v8033_v30  ;;  %v5205_v22 = vpop.f32.mrb[91].mxu0  ;;  %5364 = vmatmul.mubr.f32.gmra.mrb[108].mxu0 %v8199_v57  ;;  %v3457_v4 = vld [vmem:[#allocation5 + $0x498] sm:$0xff]  ;;  %v6091_v42 = vpack.c.bf16 %v2897_v52, %v2896_v43  ;;  %v2902_v52 = vld [vmem:[#allocation5 + $0x350] sm:$0xff]  ;;  %v3462_v49 = vld [vmem:[#allocation5 + $0x4c0] sm:$0xff] }
 0x3a7   : > { %v2899_v22 = vld [vmem:[#allocation5 + $0x338] sm:$0xff]  ;;  %6149 = vmatpush3.bf16.msra.mxu1 %v6148_v18  ;;  %v6151_v19 = vpack.c.bf16 %v3457_v4, %v3456_v8  ;;  %v3463_v8 = vld [vmem:[#allocation5 + $0x4c8] sm:$0xff]  ;;  %v6103_v18 = vpack.c.bf16 %v2903_v29, %v2902_v52  ;;  %v2904_v4 = vld [vmem:[#allocation5 + $0x360] sm:$0xff] }
 0x3a8   : > { %v2416_v31 = vmax.f32 %v8203_v5, 0.0  ;;  %v2363_v1 = vadd.f32 %v2337_v3, %v2120_v14  ;;  %v2894_v3 = vld [vmem:[#allocation5 + $0x310] sm:$0xff]  ;;  %6150 = vmatprep.subr.bf16.mxu1 %v6402_v35  ;;  %v3129_v52 = vld [vmem:[#allocation5 + $0x388] sm:$0xff] }
 0x3a9   : > { %v8208_v0 = vld [vmem:[#allocation3 + $0x94] sm:$0xff] }
 0x3aa   : > { %2439 = vst [vmem:[#allocation3 + $0xa8] sm:$0xff] %v2416_v31  ;;  %v2394_v16 = vadd.f32 %v8039_v33, %v2363_v1  ;;  %5366 = vmatprep.mubr.f32.mxu0 %v8208_v0  ;;  %v6087_v33 = vpack.c.bf16 %v2895_v51, %v2894_v3  ;;  %v2898_v14 = vld [vmem:[#allocation5 + $0x330] sm:$0xff]  ;;  %v3459_v1 = vld [vmem:[#allocation5 + $0x4a8] sm:$0xff]  ;;  %v3461_v51 = vld [vmem:[#allocation5 + $0x4b8] sm:$0xff] }
 0x3ab   : > { %6152 = vmatpush3.bf16.msra.mxu1 %v6151_v19  ;;  %v3460_v3 = vld [vmem:[#allocation5 + $0x4b0] sm:$0xff]  ;;  %v3465_v19 = vld [vmem:[#allocation5 + $0x4d8] sm:$0xff] }
 0x3ac   : > { %v2417_v28 = vmax.f32 %v2394_v16, 0.0  ;;  %v2900_v16 = vld [vmem:[#allocation5 + $0x340] sm:$0xff]  ;;  %6153 = vmatprep.subr.bf16.mxu1 %v6402_v35 }
 0x3ad   : > { %v8214_v15 = vld [vmem:[#allocation3 + $0x9c] sm:$0xff] }
 0x3ae   : > { %2440 = vst [vmem:[#allocation3 + $0xb0] sm:$0x7f] %v2417_v28  ;;  %5367 = vmatmul.mubr.f32.gmra.mrb[110].mxu0 %v8214_v15  ;;  %v2901_v28 = vld [vmem:[#allocation5 + $0x348] sm:$0xff] }
 0x3af   : > { %v6099_v43 = vpack.c.bf16 %v2901_v28, %v2900_v16  ;;  %v2907_v16 = vld [vmem:[#allocation5 + $0x378] sm:$0xff]  ;;  %v3466_v28 = vld [vmem:[#allocation5 + $0x4e0] sm:$0xff] }
 0x3b1   : > { %v8217_v30 = vld [vmem:[#allocation3 + $0xa4] sm:$0xff]  ;;  %v2501_v50 = vld [vmem:[#allocation3 + $0xac] sm:$0x7] }
 0x3b2   : > { %5369 = vmatprep.mubr.f32.mxu0 %v8217_v30 }
 0x3b3   : > { %5370 = vmatmul.mubr.f32.gmra.mrb[112].mxu0 %v2501_v50 }
 0x3b4   : > { %5404 = vmatprep.mubr.f32.mxu0 %v2395_v37  ;;  %v3458_v37 = vld [vmem:[#allocation5 + $0x4a0] sm:$0xff] }
 0x3b5   : > { %v6154_v50 = vpack.c.bf16 %v3459_v1, %v3458_v37  ;;  %v2906_v1 = vld [vmem:[#allocation5 + $0x370] sm:$0xff] }
 0x3b7   : > { %5405 = vmatmul.mubr.f32.vlgmr.msra.gmra.mrb[92].mxu0 %v8050_v24  ;;  %6155 = vmatpush3.bf16.msra.mxu1 %v6154_v50  ;;  %v3467_v50 = vld [vmem:[#allocation5 + $0x4e8] sm:$0xff] }
 0x3b8   : > { %6086 = vmatpush3.bf16.msra.mxu0 %v8124_v10  ;;  %5407 = vmatprep.mubr.f32.mxu0 %v8055_v32  ;;  %v6095_v10 = vpack.c.bf16 %v2899_v22, %v2898_v14  ;;  %v2905_v14 = vld [vmem:[#allocation5 + $0x368] sm:$0xff]  ;;  %v3464_v22 = vld [vmem:[#allocation5 + $0x4d0] sm:$0xff] }
 0x3b9   : > { %6088 = vmatprep.subr.bf16.mxu0 %v6087_v33  ;;  %6156 = vmatprep.subr.bf16.mxu1 %v6402_v35  ;;  %v6107_v37 = vpack.c.bf16 %v2905_v14, %v2904_v4  ;;  %v3132_v4 = vld [vmem:[#allocation5 + $0x3a0] sm:$0xff]  ;;  %v3133_v14 = vld [vmem:[#allocation5 + $0x3a8] sm:$0xff] }
 0x3bb   : > { %5408 = vmatmul.mubr.f32.gmra.mrb[94].mxu0 %v8060_v23 }
 0x3bc   : > { %5410 = vmatprep.mubr.f32.mxu0 %v8065_v41  ;;  %6090 = vmatpush3.bf16.msra.mxu0 %v6087_v33  ;;  %v6157_v33 = vpack.c.bf16 %v3461_v51, %v3460_v3  ;;  %v6111_v3 = vpack.c.bf16 %v2907_v16, %v2906_v1  ;;  %v3128_v51 = vld [vmem:[#allocation5 + $0x380] sm:$0xff]  ;;  %v3137_v1 = vld [vmem:[#allocation5 + $0x3c8] sm:$0xff]  ;;  %v3139_v16 = vld [vmem:[#allocation5 + $0x3d8] sm:$0xff] }
 0x3bd   : > { %6092 = vmatprep.subr.bf16.mxu0 %v6091_v42  ;;  %v6115_v29 = vpack.c.bf16 %v3129_v52, %v3128_v51 }
 0x3be   : > { %6158 = vmatpush3.bf16.msra.mxu1 %v6157_v33  ;;  %v2462_v33 = vld [vmem:[#allocation3 + $0xa8] sm:$0x7] }
 0x3bf   : > { %5411 = vmatmul.mubr.f32.gmra.mrb[96].mxu0 %v8074_v44  ;;  %6159 = vmatprep.subr.bf16.mxu1 %v6402_v35 }
 0x3c0   : > { %5413 = vmatprep.mubr.f32.mxu0 %v8082_v54  ;;  %6094 = vmatpush3.bf16.msra.mxu0 %v6091_v42  ;;  %v6160_v42 = vpack.c.bf16 %v3463_v8, %v3462_v49  ;;  %v3130_v49 = vld [vmem:[#allocation5 + $0x390] sm:$0xff]  ;;  %v3131_v8 = vld [vmem:[#allocation5 + $0x398] sm:$0xff] }
 0x3c1   : > { %6096 = vmatprep.subr.bf16.mxu0 %v6095_v10 }
 0x3c2   : > { %6161 = vmatpush3.bf16.msra.mxu1 %v6160_v42  ;;  %v6123_v42 = vpack.c.bf16 %v3133_v14, %v3132_v4 }
 0x3c3   : > { %5414 = vmatmul.mubr.f32.gmra.mrb[98].mxu0 %v8090_v48  ;;  %6162 = vmatprep.subr.bf16.mxu1 %v6402_v35 }
 0x3c4   : > { %5416 = vmatprep.mubr.f32.mxu0 %v8098_v58  ;;  %6098 = vmatpush3.bf16.msra.mxu0 %v6095_v10  ;;  %v6163_v10 = vpack.c.bf16 %v3465_v19, %v3464_v22  ;;  %v3134_v22 = vld [vmem:[#allocation5 + $0x3b0] sm:$0xff]  ;;  %v3135_v19 = vld [vmem:[#allocation5 + $0x3b8] sm:$0xff] }
 0x3c5   : > { %6100 = vmatprep.subr.bf16.mxu0 %v6099_v43 }
 0x3c6   : > { %6164 = vmatpush3.bf16.msra.mxu1 %v6163_v10  ;;  %v3141_v10 = vld [vmem:[#allocation5 + $0x3e8] sm:$0xff] }
 0x3c7   : > { %5417 = vmatmul.mubr.f32.gmra.mrb[100].mxu0 %v8106_v7  ;;  %6165 = vmatprep.subr.bf16.mxu1 %v6402_v35 }
 0x3c8   : > { %5419 = vmatprep.mubr.f32.mxu0 %v8114_v62  ;;  %6102 = vmatpush3.bf16.msra.mxu0 %v6099_v43  ;;  %v6166_v43 = vpack.c.bf16 %v3467_v50, %v3466_v28  ;;  %v3143_v28 = vld [vmem:[#allocation5 + $0x3f8] sm:$0xff] }
 0x3c9   : > { %6104 = vmatprep.subr.bf16.mxu0 %v6103_v18 }
 0x3ca   : > { %6167 = vmatpush3.bf16.msra.mxu1 %v6166_v43 }
 0x3cb   : > { %5420 = vmatmul.mubr.f32.gmra.mrb[102].mxu0 %v8122_v36  ;;  %6168 = vmatprep.subr.bf16.mxu1 %v6402_v35 }
 0x3cc   : > { %5422 = vmatprep.mubr.f32.mxu0 %v8132_v21  ;;  %6106 = vmatpush3.bf16.msra.mxu0 %v6103_v18  ;;  %v6119_v18 = vpack.c.bf16 %v3131_v8, %v3130_v49  ;;  %v3437_v49 = vld [vmem:[#allocation5 + $0x410] sm:$0xff]  ;;  %v3438_v8 = vld [vmem:[#allocation5 + $0x418] sm:$0xff] }
 0x3cd   : > { %6108 = vmatprep.subr.bf16.mxu0 %v6107_v37 }
 0x3cf   : > { %5423 = vmatmul.mubr.f32.gmra.mrb[104].mxu0 %v8141_v34 }
 0x3d0   : > { %5425 = vmatprep.mubr.f32.mxu0 %v8149_v9  ;;  %6110 = vmatpush3.bf16.msra.mxu0 %v6107_v37  ;;  %v6127_v37 = vpack.c.bf16 %v3135_v19, %v3134_v22  ;;  %v6175_v22 = vpack.c.bf16 %v3438_v8, %v3437_v49 }
 0x3d1   : > { %6112 = vmatprep.subr.bf16.mxu0 %v6111_v3 }
 0x3d3   : > { %5426 = vmatmul.mubr.f32.gmra.mrb[106].mxu0 %v8157_v25 }
 0x3d4   : > { %5428 = vmatprep.mubr.f32.mxu0 %v8165_v56  ;;  %6114 = vmatpush3.bf16.msra.mxu0 %v6111_v3 }
 0x3d5   : > { %6116 = vmatprep.subr.bf16.mxu0 %v6115_v29 }
 0x3d7   : > { %5429 = vmatmul.mubr.f32.gmra.mrb[108].mxu0 %v8173_v46 }
 0x3d8   : > { %5431 = vmatprep.mubr.f32.mxu0 %v8181_v53 }
 0x3db   : > { %5432 = vmatmul.mubr.f32.gmra.mrb[110].mxu0 %v8189_v12 }
 0x3dc   : > { %5434 = vmatprep.mubr.f32.mxu0 %v8197_v60 }
 0x3df   : > { %5435 = vmatmul.mubr.f32.gmra.mrb[112].mxu0 %v2462_v33 }
 0x3e0   : > { %5469 = vmatprep.mubr.f32.mxu0 %v8050_v24  ;;  %v3136_v24 = vld [vmem:[#allocation5 + $0x3c0] sm:$0xff] }
 0x3e3   : > { %5470 = vmatmul.mubr.f32.vlgmr.msra.gmra.mrb[92].mxu0 %v8055_v32  ;;  %v6131_v32 = vpack.c.bf16 %v3137_v1, %v3136_v24 }
 0x3e4   : > { %6118 = vmatpush3.bf16.msra.mxu0 %v6115_v29  ;;  %5472 = vmatprep.mubr.f32.mxu0 %v8060_v23  ;;  %v3138_v23 = vld [vmem:[#allocation5 + $0x3d0] sm:$0xff] }
 0x3e5   : > { %6120 = vmatprep.subr.bf16.mxu0 %v6119_v18 }
 0x3e7   : > { %5473 = vmatmul.mubr.f32.gmra.mrb[94].mxu0 %v8065_v41  ;;  %v6135_v41 = vpack.c.bf16 %v3139_v16, %v3138_v23  ;;  %v3440_v23 = vld [vmem:[#allocation5 + $0x428] sm:$0xff] }
 0x3e8   : > { %5475 = vmatprep.mubr.f32.mxu0 %v8074_v44  ;;  %6122 = vmatpush3.bf16.msra.mxu0 %v6119_v18  ;;  %v3140_v44 = vld [vmem:[#allocation5 + $0x3e0] sm:$0xff] }
 0x3e9   : > { %6124 = vmatprep.subr.bf16.mxu0 %v6123_v42 }
 0x3eb   : > { %5476 = vmatmul.mubr.f32.gmra.mrb[96].mxu0 %v8082_v54  ;;  %v6139_v54 = vpack.c.bf16 %v3141_v10, %v3140_v44 }
 0x3ec   : > { %5478 = vmatprep.mubr.f32.mxu0 %v8090_v48  ;;  %6126 = vmatpush3.bf16.msra.mxu0 %v6123_v42  ;;  %v3142_v48 = vld [vmem:[#allocation5 + $0x3f0] sm:$0xff] }
 0x3ed   : > { %6128 = vmatprep.subr.bf16.mxu0 %v6127_v37 }
 0x3ef   : > { %5479 = vmatmul.mubr.f32.gmra.mrb[98].mxu0 %v8098_v58  ;;  %v6143_v58 = vpack.c.bf16 %v3143_v28, %v3142_v48 }
 0x3f0   : > { %5481 = vmatprep.mubr.f32.mxu0 %v8106_v7  ;;  %6130 = vmatpush3.bf16.msra.mxu0 %v6127_v37  ;;  %v4025_v7 = vld [vmem:[#allocation5 + $0x580] sm:$0xff] }
 0x3f1   : > { %6132 = vmatprep.subr.bf16.mxu0 %v6131_v32 }
 0x3f3   : > { %5482 = vmatmul.mubr.f32.gmra.mrb[100].mxu0 %v8114_v62  ;;  %v4026_v62 = vld [vmem:[#allocation5 + $0x588] sm:$0xff] }
 0x3f4   : > { %5484 = vmatprep.mubr.f32.mxu0 %v8122_v36  ;;  %6134 = vmatpush3.bf16.msra.mxu0 %v6131_v32  ;;  %v2890_v36 = vld [vmem:[#allocation3 + $0xb0] sm:$0x7]  ;;  %v3439_v32 = vld [vmem:[#allocation5 + $0x420] sm:$0xff] }
 0x3f5   : > { %6136 = vmatprep.subr.bf16.mxu0 %v6135_v41 }
 0x3f7   : > { %5485 = vmatmul.mubr.f32.gmra.mrb[102].mxu0 %v8132_v21  ;;  %v8274_v21 = vpack.c.bf16 %v4026_v62, %v4025_v7  ;;  %v3442_v7 = vld [vmem:[#allocation5 + $0x438] sm:$0xff] }
 0x3f8   : > { %5487 = vmatprep.mubr.f32.mxu0 %v8141_v34  ;;  %6138 = vmatpush3.bf16.msra.mxu0 %v6135_v41  ;;  %v4027_v34 = vld [vmem:[#allocation5 + $0x590] sm:$0xff] }
 0x3f9   : > { %6140 = vmatprep.subr.bf16.mxu0 %v6139_v54 }
 0x3fb   : > { %5488 = vmatmul.mubr.f32.gmra.mrb[104].mxu0 %v8149_v9  ;;  %v4028_v9 = vld [vmem:[#allocation5 + $0x598] sm:$0xff] }
 0x3fc   : > { %5490 = vmatprep.mubr.f32.mxu0 %v8157_v25  ;;  %6142 = vmatpush3.bf16.msra.mxu0 %v6139_v54  ;;  %v8279_v25 = vpack.c.bf16 %v4028_v9, %v4027_v34  ;;  %v6178_v54 = vpack.c.bf16 %v3440_v23, %v3439_v32 }
 0x3fd   : > { %6144 = vmatprep.subr.bf16.mxu0 %v6143_v58 }
 0x3ff   : > { %5491 = vmatmul.mubr.f32.gmra.mrb[106].mxu0 %v8165_v56  ;;  %v4029_v56 = vld [vmem:[#allocation5 + $0x5a0] sm:$0xff] }
 0x400   : > { %5493 = vmatprep.mubr.f32.mxu0 %v8173_v46  ;;  %6146 = vmatpush3.bf16.msra.mxu0 %v6143_v58  ;;  %v4030_v46 = vld [vmem:[#allocation5 + $0x5a8] sm:$0xff]  ;;  %v3441_v58 = vld [vmem:[#allocation5 + $0x430] sm:$0xff] }
 0x401   : > { %6219 = vmatprep.subr.bf16.mxu0 %v6402_v35 }
 0x403   : > { %5494 = vmatmul.mubr.f32.gmra.mrb[108].mxu0 %v8181_v53 }
 0x404   : > { %5496 = vmatprep.mubr.f32.mxu0 %v8189_v12  ;;  %v4038_v12 = vld [vmem:[#allocation5 + $0x5e8] sm:$0xff] }
 0x407   : > { %5497 = vmatmul.mubr.f32.gmra.mrb[110].mxu0 %v8197_v60  ;;  %v4039_v60 = vld [vmem:[#allocation5 + $0x5f0] sm:$0xff] }
 0x408   : > { %5499 = vmatprep.mubr.f32.mxu0 %v2416_v31  ;;  %v8330_v31 = vld [vmem:[%s8886_s3 + $0x2] ss:$0 sm:$0xff] }
 0x40b   : > { %5500 = vmatmul.mubr.f32.gmra.mrb[112].mxu0 %v2890_v36 }
 0x40c   : > { %5534 = vmatprep.mubr.f32.mxu0 %v8067_v17  ;;  %v8285_v17 = vpack.c.bf16 %v4030_v46, %v4029_v56  ;;  %v6181_v56 = vpack.c.bf16 %v3442_v7, %v3441_v58 }
 0x40f   : > { %5535 = vmatmul.mubr.f32.vlgmr.msra.gmra.mrb[92].mxu0 %v8076_v20  ;;  %v4031_v20 = vld [vmem:[#allocation5 + $0x5b0] sm:$0xff] }
 0x410   : > { %5537 = vmatprep.mubr.f32.mxu0 %v8084_v6  ;;  %6221 = vmatpush3.bf16.msra.mxu0 %v8274_v21  ;;  %v4032_v6 = vld [vmem:[#allocation5 + $0x5b8] sm:$0xff] }
 0x411   : > { %6222 = vmatprep.subr.bf16.mxu0 %v6402_v35  ;;  %v8291_v53 = vpack.c.bf16 %v4032_v6, %v4031_v20  ;;  %v3443_v6 = vld [vmem:[#allocation5 + $0x440] sm:$0xff] }
 0x413   : > { %5538 = vmatmul.mubr.f32.gmra.mrb[94].mxu0 %v8092_v55  ;;  %v3125_v55 = vld [vmem:[#allocation3 + $0xac] sm:$0xff] }
 0x414   : > { %5540 = vmatprep.mubr.f32.mxu0 %v8100_v39  ;;  %6224 = vmatpush3.bf16.msra.mxu0 %v8279_v25  ;;  %v3126_v39 = vld [vmem:[#allocation3 + $0xb4] sm:$0x7] }
 0x415   : > { %6225 = vmatprep.subr.bf16.mxu0 %v6402_v35 }
 0x417   : > { %5541 = vmatmul.mubr.f32.gmra.mrb[96].mxu0 %v8108_v61  ;;  %v4033_v61 = vld [vmem:[#allocation5 + $0x5c0] sm:$0xff] }
 0x418   : > { %5543 = vmatprep.mubr.f32.mxu0 %v8116_v45  ;;  %6227 = vmatpush3.bf16.msra.mxu0 %v8285_v17  ;;  %v4034_v45 = vld [vmem:[#allocation5 + $0x5c8] sm:$0xff] }
 0x419   : > { %6228 = vmatprep.subr.bf16.mxu0 %v6402_v35 }
 0x41b   : > { %5544 = vmatmul.mubr.f32.gmra.mrb[98].mxu0 %v8126_v2  ;;  %v3468_v2 = vld [vmem:[#allocation5 + $0x4f0] sm:$0xff] }
 0x41c   : > { %5546 = vmatprep.mubr.f32.mxu0 %v8135_v47  ;;  %6230 = vmatpush3.bf16.msra.mxu0 %v8291_v53  ;;  %v8311_v47 = vpack.c.bf16 %v4034_v45, %v4033_v61 }
 0x41d   : > { %6231 = vmatprep.subr.bf16.mxu0 %v6402_v35 }
 0x41f   : > { %5547 = vmatmul.mubr.f32.gmra.mrb[100].mxu0 %v8143_v13  ;;  %v3469_v13 = vld [vmem:[#allocation5 + $0x4f8] sm:$0xff] }
 0x420   : > { %5549 = vmatprep.mubr.f32.mxu0 %v8151_v27  ;;  %v6169_v27 = vpack.c.bf16 %v3469_v13, %v3468_v2  ;;  %6233 = vmatpush3.bf16.msra.mxu0 %v8311_v47 }
 0x421   : > { %6234 = vmatprep.subr.bf16.mxu0 %v6402_v35 }
 0x422   : > { %6170 = vmatpush3.bf16.msra.mxu1 %v6169_v27 }
 0x423   : > { %5550 = vmatmul.mubr.f32.gmra.mrb[102].mxu0 %v8159_v38  ;;  %v4035_v38 = vld [vmem:[#allocation5 + $0x5d0] sm:$0xff]  ;;  %6171 = vmatprep.subr.bf16.mxu1 %v6402_v35 }
 0x424   : > { %5552 = vmatprep.mubr.f32.mxu0 %v8167_v40  ;;  %v4036_v40 = vld [vmem:[#allocation5 + $0x5d8] sm:$0xff] }
 0x427   : > { %5553 = vmatmul.mubr.f32.gmra.mrb[104].mxu0 %v8175_v59  ;;  %v8315_v59 = vpack.c.bf16 %v4036_v40, %v4035_v38  ;;  %v3445_v40 = vld [vmem:[#allocation5 + $0x450] sm:$0xff] }
 0x428   : > { %5555 = vmatprep.mubr.f32.mxu0 %v8183_v11  ;;  %v4037_v11 = vld [vmem:[#allocation5 + $0x5e0] sm:$0xff] }
 0x429   : > { %6236 = vmatpush3.bf16.msra.mxu0 %v8315_v59 }
 0x42a   : > { %6237 = vmatprep.subr.bf16.mxu0 %v6402_v35 }
 0x42b   : > { %5556 = vmatmul.mubr.f32.gmra.mrb[106].mxu0 %v8191_v63  ;;  %v8320_v63 = vpack.c.bf16 %v4038_v12, %v4037_v11  ;;  %v3446_v11 = vld [vmem:[#allocation5 + $0x458] sm:$0xff] }
 0x42c   : > { %5558 = vmatprep.mubr.f32.mxu0 %v8199_v57  ;;  %v4040_v57 = vld [vmem:[#allocation5 + $0x5f8] sm:$0xff] }
 0x42d   : > { %6239 = vmatpush3.bf16.msra.mxu0 %v8320_v63  ;;  %v8324_v5 = vpack.c.bf16 %v4040_v57, %v4039_v60 }
 0x42e   : > { %6240 = vmatprep.subr.bf16.mxu0 %v6402_v35 }
 0x42f   : > { %5559 = vmatmul.mubr.f32.gmra.mrb[108].mxu0 %v8208_v0  ;;  %v3435_v0 = vld [vmem:[#allocation5 + $0x400] sm:$0xff] }
 0x430   : > { %5561 = vmatprep.mubr.f32.mxu0 %v8214_v15  ;;  %v3436_v15 = vld [vmem:[#allocation5 + $0x408] sm:$0xff] }
 0x431   : > { %6242 = vmatpush3.bf16.msra.mxu0 %v8324_v5  ;;  %v6172_v52 = vpack.c.bf16 %v3436_v15, %v3435_v0  ;;  %v6187_v15 = vpack.c.bf16 %v3446_v11, %v3445_v40  ;;  %v3811_v11 = vld [vmem:[#allocation5 + $0x508] sm:$0xff] }
 0x433   : > { %5562 = vmatmul.mubr.f32.gmra.mrb[110].mxu0 %v8217_v30 }
 0x434   : > { %5564 = vmatprep.mubr.f32.mxu0 %v3125_v55  ;;  %v3444_v55 = vld [vmem:[#allocation5 + $0x448] sm:$0xff] }
 0x435   : > { %v6184_v13 = vpack.c.bf16 %v3444_v55, %v3443_v6 }
 0x437   : > { %5565 = vmatmul.mubr.f32.gmra.mrb[112].mxu0 %v3126_v39 }
 0x438   : > { %5866 = vmatprep.mubr.msk.f32.mxu0 %vm6403_vm12, %v8992_v26 }
 0x4e2   : > { %v5536_v30 = vpop.f32.mrb[92].mxu0 }
 0x4e3   : > { %v8333_v50 = vadd.f32 %v5536_v30, %v8330_v31  ;;  %v3210_v3 = vpop.f32.mrb[93].mxu0 }
 0x4e4   : > { %v8336_v51 = vadd.f32 %v8330_v31, %v3210_v3 }
 0x4e5   : > { %v3372_v43 = vmax.f32 %v8333_v50, 0.0  ;;  %v3818_v50 = vld [vmem:[#allocation5 + $0x540] sm:$0xff] }
 0x4e6   : > { %v3371_v29 = vmax.f32 %v8336_v51, 0.0  ;;  %v5539_v33 = vpop.f32.mrb[94].mxu0  ;;  %v3816_v51 = vld [vmem:[#allocation5 + $0x530] sm:$0xff] }
 0x4e7   : > { %v3352_v18 = vadd.f32 %v5539_v33, %v8330_v31  ;;  %v3220_v4 = vpop.f32.mrb[95].mxu0  ;;  %5600 = vmatmul.mubr.f32.vlgmr.msra.gmra.mrb[92].mxu1 %v3372_v43  ;;  %v3448_v33 = vld [vmem:[#allocation5 + $0x468] sm:$0xff] }
 0x4e8   : > { %v3351_v14 = vadd.f32 %v8330_v31, %v3220_v4  ;;  %6173 = vmatpush3.bf16.msra.mxu1 %v6172_v52  ;;  %5602 = vmatprep.mubr.msk.f32.mxu1 %vm6403_vm12, %v8992_v26  ;;  %v3447_v52 = vld [vmem:[#allocation5 + $0x460] sm:$0xff] }
 0x4e9   : > { %v8346_v42 = vmax.f32 %v3352_v18, 0.0  ;;  %6174 = vmatprep.subr.bf16.mxu1 %v6402_v35 }
 0x4ea   : > { %v8349_v19 = vmax.f32 %v3351_v14, 0.0  ;;  %v5542_v37 = vpop.f32.mrb[96].mxu0  ;;  %v6190_v14 = vpack.c.bf16 %v3448_v33, %v3447_v52  ;;  %v3814_v52 = vld [vmem:[#allocation5 + $0x520] sm:$0xff]  ;;  %v3815_v33 = vld [vmem:[#allocation5 + $0x528] sm:$0xff] }
 0x4eb   : > { %v3354_v24 = vadd.f32 %v5542_v37, %v8330_v31  ;;  %v3230_v1 = vpop.f32.mrb[97].mxu0  ;;  %5867 = vmatmul.mubr.f32.vlgmr.msra.gmra.mrb[114].mxu0 %v8346_v42 }
 0x4ec   : > { %v3353_v16 = vadd.f32 %v8330_v31, %v3230_v1  ;;  %5603 = vmatmul.mubr.f32.gmra.mrb[94].mxu1 %v8349_v19  ;;  %5869 = vmatprep.mubr.msk.f32.mxu0 %vm6403_vm12, %v8992_v26  ;;  %v3450_v1 = vld [vmem:[#allocation5 + $0x478] sm:$0xff] }
 0x4ed   : > { %v8357_v41 = vmax.f32 %v3354_v24, 0.0  ;;  %5605 = vmatprep.mubr.msk.f32.mxu1 %vm6403_vm12, %v8992_v26  ;;  %6176 = vmatpush3.bf16.msra.mxu1 %v6175_v22  ;;  %v3449_v24 = vld [vmem:[#allocation5 + $0x470] sm:$0xff] }
 0x4ee   : > { %v8361_v44 = vmax.f32 %v3353_v16, 0.0  ;;  %v5545_v10 = vpop.f32.mrb[98].mxu0  ;;  %6177 = vmatprep.subr.bf16.mxu1 %v6402_v35 }
 0x4ef   : > { %v3356_v48 = vadd.f32 %v5545_v10, %v8330_v31  ;;  %v3240_v28 = vpop.f32.mrb[99].mxu0 }
 0x4f0   : > { %v3355_v62 = vadd.f32 %v8330_v31, %v3240_v28  ;;  %5606 = vmatmul.mubr.f32.gmra.mrb[96].mxu1 %v8346_v42  ;;  %5870 = vmatmul.mubr.f32.gmra.mrb[116].mxu0 %v8361_v44 }
 0x4f1   : > { %v8368_v36 = vmax.f32 %v3356_v48, 0.0  ;;  %5608 = vmatprep.mubr.msk.f32.mxu1 %vm6403_vm12, %v8992_v26  ;;  %5872 = vmatprep.mubr.msk.f32.mxu0 %vm6403_vm12, %v8992_v26 }
 0x4f2   : > { %v8374_v34 = vmax.f32 %v3355_v62, 0.0  ;;  %v5548_v9 = vpop.f32.mrb[100].mxu0  ;;  %6179 = vmatpush3.bf16.msra.mxu1 %v6178_v54  ;;  %v6193_v54 = vpack.c.bf16 %v3450_v1, %v3449_v24  ;;  %v3822_v1 = vld [vmem:[#allocation5 + $0x560] sm:$0xff] }
 0x4f3   : > { %v3358_v46 = vadd.f32 %v5548_v9, %v8330_v31  ;;  %v3250_v20 = vpop.f32.mrb[101].mxu0  ;;  %6180 = vmatprep.subr.bf16.mxu1 %v6402_v35 }
 0x4f4   : > { %v3357_v39 = vadd.f32 %v8330_v31, %v3250_v20  ;;  %5609 = vmatmul.mubr.f32.gmra.mrb[98].mxu1 %v8361_v44  ;;  %5873 = vmatmul.mubr.f32.gmra.mrb[118].mxu0 %v8357_v41 }
 0x4f5   : > { %v8381_v61 = vmax.f32 %v3358_v46, 0.0  ;;  %5611 = vmatprep.mubr.msk.f32.mxu1 %vm6403_vm12, %v8992_v26  ;;  %5875 = vmatprep.mubr.msk.f32.mxu0 %vm6403_vm12, %v8992_v26 }
 0x4f6   : > { %v8387_v45 = vmax.f32 %v3357_v39, 0.0  ;;  %v5551_v2 = vpop.f32.mrb[102].mxu0  ;;  %6182 = vmatpush3.bf16.msra.mxu1 %v6181_v56 }
 0x4f7   : > { %v3360_v27 = vadd.f32 %v5551_v2, %v8330_v31  ;;  %v3260_v38 = vpop.f32.mrb[103].mxu0  ;;  %6183 = vmatprep.subr.bf16.mxu1 %v6402_v35 }
 0x4f8   : > { %v3359_v12 = vadd.f32 %v8330_v31, %v3260_v38  ;;  %5612 = vmatmul.mubr.f32.gmra.mrb[100].mxu1 %v8357_v41  ;;  %5876 = vmatmul.mubr.f32.gmra.mrb[120].mxu0 %v8374_v34 }
 0x4f9   : > { %v8394_v60 = vmax.f32 %v3360_v27, 0.0  ;;  %5614 = vmatprep.mubr.msk.f32.mxu1 %vm6403_vm12, %v8992_v26  ;;  %5878 = vmatprep.mubr.msk.f32.mxu0 %vm6403_vm12, %v8992_v26 }
 0x4fa   : > { %v8400_v57 = vmax.f32 %v3359_v12, 0.0  ;;  %v5554_v0 = vpop.f32.mrb[104].mxu0  ;;  %6185 = vmatpush3.bf16.msra.mxu1 %v6184_v13 }
 0x4fb   : > { %v3362_v30 = vadd.f32 %v5554_v0, %v8330_v31  ;;  %v3270_v3 = vpop.f32.mrb[105].mxu0  ;;  %6186 = vmatprep.subr.bf16.mxu1 %v6402_v35 }
 0x4fc   : > { %v3361_v49 = vadd.f32 %v8330_v31, %v3270_v3  ;;  %5615 = vmatmul.mubr.f32.gmra.mrb[102].mxu1 %v8374_v34  ;;  %5879 = vmatmul.mubr.f32.gmra.mrb[122].mxu0 %v8368_v36 }
 0x4fd   : > { %v8407_v8 = vmax.f32 %v3362_v30, 0.0  ;;  %5617 = vmatprep.mubr.msk.f32.mxu1 %vm6403_vm12, %v8992_v26  ;;  %5881 = vmatprep.mubr.msk.f32.mxu0 %vm6403_vm12, %v8992_v26  ;;  %v3813_v30 = vld [vmem:[#allocation5 + $0x518] sm:$0xff] }
 0x4fe   : > { %v8413_v18 = vmax.f32 %v3361_v49, 0.0  ;;  %v5557_v4 = vpop.f32.mrb[106].mxu0  ;;  %6188 = vmatpush3.bf16.msra.mxu1 %v6187_v15  ;;  %v3812_v15 = vld [vmem:[#allocation5 + $0x510] sm:$0xff]  ;;  %v6202_v49 = vpack.c.bf16 %v3815_v33, %v3814_v52 }
 0x4ff   : > { %v3364_v22 = vadd.f32 %v5557_v4, %v8330_v31  ;;  %v3280_v37 = vpop.f32.mrb[107].mxu0  ;;  %6189 = vmatprep.subr.bf16.mxu1 %v6402_v35  ;;  %v6199_v3 = vpack.c.bf16 %v3813_v30, %v3812_v15 }
 0x500   : > { %v3363_v32 = vadd.f32 %v8330_v31, %v3280_v37  ;;  %5618 = vmatmul.mubr.f32.gmra.mrb[104].mxu1 %v8368_v36  ;;  %5882 = vmatmul.mubr.f32.gmra.mrb[124].mxu0 %v8387_v45  ;;  %v3821_v37 = vld [vmem:[#allocation5 + $0x558] sm:$0xff] }
 0x501   : > { %v8420_v23 = vmax.f32 %v3364_v22, 0.0  ;;  %5620 = vmatprep.mubr.msk.f32.mxu1 %vm6403_vm12, %v8992_v26  ;;  %5884 = vmatprep.mubr.msk.f32.mxu0 %vm6403_vm12, %v8992_v26  ;;  %v3820_v22 = vld [vmem:[#allocation5 + $0x550] sm:$0xff] }
 0x502   : > { %v8426_v16 = vmax.f32 %v3363_v32, 0.0  ;;  %v5560_v10 = vpop.f32.mrb[108].mxu0  ;;  %6191 = vmatpush3.bf16.msra.mxu1 %v6190_v14  ;;  %v6211_v24 = vpack.c.bf16 %v3821_v37, %v3820_v22  ;;  %v3823_v32 = vld [vmem:[#allocation5 + $0x568] sm:$0xff] }
 0x503   : > { %v3366_v48 = vadd.f32 %v5560_v10, %v8330_v31  ;;  %v3290_v28 = vpop.f32.mrb[109].mxu0  ;;  %6192 = vmatprep.subr.bf16.mxu1 %v6402_v35  ;;  %v6214_v10 = vpack.c.bf16 %v3823_v32, %v3822_v1 }
 0x504   : > { %v3365_v58 = vadd.f32 %v8330_v31, %v3290_v28  ;;  %5621 = vmatmul.mubr.f32.gmra.mrb[106].mxu1 %v8387_v45  ;;  %5885 = vmatmul.mubr.f32.gmra.mrb[126].mxu0 %v8381_v61 }
 0x505   : > { %v8433_v7 = vmax.f32 %v3366_v48, 0.0  ;;  %5623 = vmatprep.mubr.msk.f32.mxu1 %vm6403_vm12, %v8992_v26  ;;  %5887 = vmatprep.mubr.msk.f32.mxu0 %vm6403_vm12, %v8992_v26  ;;  %v3825_v48 = vld [vmem:[#allocation5 + $0x578] sm:$0xff] }
 0x506   : > { %v8439_v62 = vmax.f32 %v3365_v58, 0.0  ;;  %v5563_v9 = vpop.f32.mrb[110].mxu0  ;;  %6194 = vmatpush3.bf16.msra.mxu1 %v6193_v54  ;;  %v3824_v54 = vld [vmem:[#allocation5 + $0x570] sm:$0xff] }
 0x507   : > { %v3368_v56 = vadd.f32 %v5563_v9, %v8330_v31  ;;  %v3300_v46 = vpop.f32.mrb[111].mxu0  ;;  %6195 = vmatprep.subr.bf16.mxu1 %v6402_v35  ;;  %v6217_v28 = vpack.c.bf16 %v3825_v48, %v3824_v54 }
 0x508   : > { %v3367_v20 = vadd.f32 %v8330_v31, %v3300_v46  ;;  %5624 = vmatmul.mubr.f32.gmra.mrb[108].mxu1 %v8381_v61  ;;  %5888 = vmatmul.mubr.f32.gmra.mrb[128].mxu0 %v8400_v57 }
 0x509   : > { %v8446_v6 = vmax.f32 %v3368_v56, 0.0  ;;  %5626 = vmatprep.mubr.msk.f32.mxu1 %vm6403_vm12, %v8992_v26  ;;  %5890 = vmatprep.mubr.msk.f32.mxu0 %vm6403_vm12, %v8992_v26 }
 0x50a   : > { %v8452_v55 = vmax.f32 %v3367_v20, 0.0  ;;  %v5566_v39 = vpop.f32.mrb[112].mxu0 }
 0x50b   : > { %3412 = vst [vmem:[#allocation4 + $0x98] sm:$0xff] %v8446_v6  ;;  %v3370_v2 = vadd.f32 %v5566_v39, %v8330_v31  ;;  %v3310_v13 = vpop.f32.mrb[113].mxu0 }
 0x50c   : > { %3411 = vst [vmem:[#allocation4 + $0x90] sm:$0xff] %v8452_v55  ;;  %v8458_v27 = vadd.f32 %v8330_v31, %v3310_v13  ;;  %5627 = vmatmul.mubr.f32.gmra.mrb[110].mxu1 %v8400_v57  ;;  %5891 = vmatmul.mubr.f32.gmra.mrb[130].mxu0 %v8394_v60  ;;  %v3810_v31 = vld [vmem:[#allocation5 + $0x500] sm:$0xff] }
 0x50d   : > { %v3392_v38 = vmax.f32 %v3370_v2, 0.0  ;;  %5629 = vmatprep.mubr.msk.f32.mxu1 %vm6403_vm12, %v8992_v26  ;;  %5893 = vmatprep.mubr.msk.f32.mxu0 %vm6403_vm12, %v8992_v26  ;;  %v6196_v0 = vpack.c.bf16 %v3811_v11, %v3810_v31 }
 0x50e   : > { %v3391_v40 = vmax.f32 %v8458_v27, 0.0 }
 0x50f   : > { %3414 = vst [vmem:[#allocation4 + $0xa8] sm:$0x7] %v3392_v38 }
 0x510   : > { %3413 = vst [vmem:[#allocation4 + $0xa0] sm:$0xff] %v3391_v40  ;;  %5630 = vmatmul.mubr.f32.gmra.mrb[112].mxu1 %v8394_v60  ;;  %5894 = vmatmul.mubr.f32.gmra.mrb[132].mxu0 %v8413_v18 }
 0x511   : > { %5632 = vmatprep.mubr.msk.f32.mxu1 %vm6403_vm12, %v8992_v26  ;;  %5896 = vmatprep.mubr.msk.f32.mxu0 %vm6403_vm12, %v8992_v26 }
 0x512   : > { %v3452_v12 = vld [vmem:[#allocation4 + $0x98] sm:$0x7] }
 0x513   : > { %v3433_v58 = vld [vmem:[#allocation4 + $0x90] sm:$0x7] }
 0x514   : > { %5633 = vmatmul.mubr.f32.gmra.mrb[114].mxu1 %v8413_v18  ;;  %5897 = vmatmul.mubr.f32.gmra.mrb[134].mxu0 %v8407_v8 }
 0x515   : > { %5635 = vmatprep.mubr.msk.f32.mxu1 %vm6403_vm12, %v8992_v26  ;;  %5899 = vmatprep.mubr.msk.f32.mxu0 %vm6403_vm12, %v8992_v26 }
 0x516   : > { %v4023_v9 = vld [vmem:[#allocation4 + $0xa8] sm:$0x7] }
 0x518   : > { %5636 = vmatmul.mubr.f32.gmra.mrb[116].mxu1 %v8407_v8  ;;  %5900 = vmatmul.mubr.f32.gmra.mrb[136].mxu0 %v8426_v16 }
 0x519   : > { %5638 = vmatprep.mubr.msk.f32.mxu1 %vm6403_vm12, %v8992_v26  ;;  %5902 = vmatprep.mubr.msk.f32.mxu0 %vm6403_vm12, %v8992_v26 }
 0x51c   : > { %5639 = vmatmul.mubr.f32.gmra.mrb[118].mxu1 %v8426_v16  ;;  %5903 = vmatmul.mubr.f32.gmra.mrb[138].mxu0 %v8420_v23 }
 0x51d   : > { %5641 = vmatprep.mubr.msk.f32.mxu1 %vm6403_vm12, %v8992_v26  ;;  %5905 = vmatprep.mubr.msk.f32.mxu0 %vm6403_vm12, %v8992_v26 }
 0x520   : > { %5642 = vmatmul.mubr.f32.gmra.mrb[120].mxu1 %v8420_v23  ;;  %5906 = vmatmul.mubr.f32.gmra.mrb[140].mxu0 %v8439_v62 }
 0x521   : > { %5644 = vmatprep.mubr.msk.f32.mxu1 %vm6403_vm12, %v8992_v26  ;;  %5908 = vmatprep.mubr.msk.f32.mxu0 %vm6403_vm12, %v8992_v26 }
 0x524   : > { %5645 = vmatmul.mubr.f32.gmra.mrb[122].mxu1 %v8439_v62  ;;  %5909 = vmatmul.mubr.f32.gmra.mrb[142].mxu0 %v8433_v7 }
 0x525   : > { %5647 = vmatprep.mubr.msk.f32.mxu1 %vm6403_vm12, %v8992_v26  ;;  %5911 = vmatprep.mubr.msk.f32.mxu0 %vm6403_vm12, %v8992_v26 }
 0x528   : > { %5648 = vmatmul.mubr.f32.gmra.mrb[124].mxu1 %v8433_v7  ;;  %5912 = vmatmul.mubr.f32.gmra.mrb[144].mxu0 %v8452_v55 }
 0x529   : > { %5650 = vmatprep.mubr.msk.f32.mxu1 %vm6403_vm12, %v8992_v26 }
 0x52c   : > { %5651 = vmatmul.mubr.f32.gmra.mrb[126].mxu1 %v8452_v55 }
 0x52d   : > { %5653 = vmatprep.mubr.msk.f32.mxu1 %vm6403_vm12, %v8992_v26 }
 0x530   : > { %5654 = vmatmul.mubr.f32.gmra.mrb[128].mxu1 %v3452_v12 }
 0x531   : > { %5688 = vmatprep.mubr.msk.f32.mxu1 %vm6403_vm12, %v8992_v26 }
 0x534   : > { %5689 = vmatmul.mubr.f32.vlgmr.msra.gmra.mrb[130].mxu1 %v3371_v29  ;;  %v3817_v29 = vld [vmem:[#allocation5 + $0x538] sm:$0xff] }
 0x535   : > { %6197 = vmatpush3.bf16.msra.mxu1 %v6196_v0  ;;  %5691 = vmatprep.mubr.msk.f32.mxu1 %vm6403_vm12, %v8992_v26  ;;  %v6205_v4 = vpack.c.bf16 %v3817_v29, %v3816_v51 }
 0x536   : > { %6198 = vmatprep.subr.bf16.mxu1 %v6402_v35 }
 0x538   : > { %5692 = vmatmul.mubr.f32.gmra.mrb[132].mxu1 %v3372_v43  ;;  %v3819_v43 = vld [vmem:[#allocation5 + $0x548] sm:$0xff] }
 0x539   : > { %5694 = vmatprep.mubr.msk.f32.mxu1 %vm6403_vm12, %v8992_v26  ;;  %6200 = vmatpush3.bf16.msra.mxu1 %v6199_v3  ;;  %v6208_v14 = vpack.c.bf16 %v3819_v43, %v3818_v50 }
 0x53a   : > { %6201 = vmatprep.subr.bf16.mxu1 %v6402_v35 }
 0x53c   : > { %5695 = vmatmul.mubr.f32.gmra.mrb[134].mxu1 %v8349_v19 }
 0x53d   : > { %5697 = vmatprep.mubr.msk.f32.mxu1 %vm6403_vm12, %v8992_v26  ;;  %6203 = vmatpush3.bf16.msra.mxu1 %v6202_v49 }
 0x53e   : > { %6204 = vmatprep.subr.bf16.mxu1 %v6402_v35 }
 0x540   : > { %5698 = vmatmul.mubr.f32.gmra.mrb[136].mxu1 %v8346_v42 }
 0x541   : > { %5700 = vmatprep.mubr.msk.f32.mxu1 %vm6403_vm12, %v8992_v26  ;;  %6206 = vmatpush3.bf16.msra.mxu1 %v6205_v4 }
 0x542   : > { %6207 = vmatprep.subr.bf16.mxu1 %v6402_v35 }
 0x544   : > { %5701 = vmatmul.mubr.f32.gmra.mrb[138].mxu1 %v8361_v44 }
 0x545   : > { %5703 = vmatprep.mubr.msk.f32.mxu1 %vm6403_vm12, %v8992_v26  ;;  %6209 = vmatpush3.bf16.msra.mxu1 %v6208_v14 }
 0x546   : > { %6210 = vmatprep.subr.bf16.mxu1 %v6402_v35 }
 0x548   : > { %5704 = vmatmul.mubr.f32.gmra.mrb[140].mxu1 %v8357_v41 }
 0x549   : > { %5706 = vmatprep.mubr.msk.f32.mxu1 %vm6403_vm12, %v8992_v26  ;;  %6212 = vmatpush3.bf16.msra.mxu1 %v6211_v24 }
 0x54a   : > { %6213 = vmatprep.subr.bf16.mxu1 %v6402_v35 }
 0x54c   : > { %5707 = vmatmul.mubr.f32.gmra.mrb[142].mxu1 %v8374_v34 }
 0x54d   : > { %5709 = vmatprep.mubr.msk.f32.mxu1 %vm6403_vm12, %v8992_v26  ;;  %6215 = vmatpush3.bf16.msra.mxu1 %v6214_v10 }
 0x54e   : > { %6216 = vmatprep.subr.bf16.mxu1 %v6402_v35 }
 0x550   : > { %5710 = vmatmul.mubr.f32.gmra.mrb[144].mxu1 %v8368_v36 }
 0x551   : > { %5712 = vmatprep.mubr.msk.f32.mxu1 %vm6403_vm12, %v8992_v26  ;;  %6218 = vmatpush3.bf16.msra.mxu1 %v6217_v28 }
 0x552   : > { %6243 = vmatprep.subr.bf16.mxu1 %v6402_v35 }
 0x554   : > { %5713 = vmatmul.mubr.f32.gmra.mrb[146].mxu1 %v8387_v45 }
 0x555   : > { %5715 = vmatprep.mubr.msk.f32.mxu1 %vm6403_vm12, %v8992_v26 }
 0x558   : > { %5716 = vmatmul.mubr.f32.gmra.mrb[148].mxu1 %v8381_v61 }
 0x559   : > { %5718 = vmatprep.mubr.msk.f32.mxu1 %vm6403_vm12, %v8992_v26 }
 0x55c   : > { %5719 = vmatmul.mubr.f32.gmra.mrb[150].mxu1 %v8400_v57 }
 0x55d   : > { %5721 = vmatprep.mubr.msk.f32.mxu1 %vm6403_vm12, %v8992_v26 }
 0x560   : > { %5722 = vmatmul.mubr.f32.gmra.mrb[152].mxu1 %v8394_v60 }
 0x561   : > { %5724 = vmatprep.mubr.msk.f32.mxu1 %vm6403_vm12, %v8992_v26 }
 0x564   : > { %5725 = vmatmul.mubr.f32.gmra.mrb[154].mxu1 %v8413_v18 }
 0x565   : > { %5727 = vmatprep.mubr.msk.f32.mxu1 %vm6403_vm12, %v8992_v26 }
 0x568   : > { %5728 = vmatmul.mubr.f32.gmra.mrb[156].mxu1 %v8407_v8 }
 0x569   : > { %5730 = vmatprep.mubr.msk.f32.mxu1 %vm6403_vm12, %v8992_v26 }
 0x56c   : > { %5731 = vmatmul.mubr.f32.gmra.mrb[158].mxu1 %v8426_v16 }
 0x56d   : > { %5733 = vmatprep.mubr.msk.f32.mxu1 %vm6403_vm12, %v8992_v26 }
 0x570   : > { %5734 = vmatmul.mubr.f32.gmra.mrb[160].mxu1 %v8420_v23 }
 0x571   : > { %5736 = vmatprep.mubr.msk.f32.mxu1 %vm6403_vm12, %v8992_v26 }
 0x574   : > { %5737 = vmatmul.mubr.f32.gmra.mrb[162].mxu1 %v8439_v62 }
 0x575   : > { %5739 = vmatprep.mubr.msk.f32.mxu1 %vm6403_vm12, %v8992_v26 }
 0x578   : > { %5740 = vmatmul.mubr.f32.gmra.mrb[164].mxu1 %v8433_v7 }
 0x579   : > { %5742 = vmatprep.mubr.msk.f32.mxu1 %vm6403_vm12, %v8992_v26 }
 0x57c   : > { %5743 = vmatmul.mubr.f32.gmra.mrb[166].mxu1 %v3433_v58 }
 0x57d   : > { %5777 = vmatprep.mubr.msk.f32.mxu1 %vm6403_vm12, %v8992_v26 }
 0x580   : > { %5778 = vmatmul.mubr.f32.vlgmr.msra.gmra.mrb[168].mxu1 %v8349_v19 }
 0x581   : > { %6251 = vmatpush3.bf16.msra.mxu1 %v8274_v21  ;;  %5780 = vmatprep.mubr.msk.f32.mxu1 %vm6403_vm12, %v8992_v26 }
 0x582   : > { %6244 = vmatprep.subr.bf16.mxu1 %v6402_v35 }
 0x584   : > { %5781 = vmatmul.mubr.f32.gmra.mrb[170].mxu1 %v8346_v42 }
 0x585   : > { %5783 = vmatprep.mubr.msk.f32.mxu1 %vm6403_vm12, %v8992_v26  ;;  %6252 = vmatpush3.bf16.msra.mxu1 %v8279_v25 }
 0x586   : > { %6245 = vmatprep.subr.bf16.mxu1 %v6402_v35 }
 0x588   : > { %5784 = vmatmul.mubr.f32.gmra.mrb[172].mxu1 %v8361_v44  ;;  %v3808_v44 = vld [vmem:[#allocation4 + $0xa0] sm:$0x7] }
 0x589   : > { %5786 = vmatprep.mubr.msk.f32.mxu1 %vm6403_vm12, %v8992_v26  ;;  %6253 = vmatpush3.bf16.msra.mxu1 %v8285_v17 }
 0x58a   : > { %6246 = vmatprep.subr.bf16.mxu1 %v6402_v35 }
 0x58c   : > { %5787 = vmatmul.mubr.f32.gmra.mrb[174].mxu1 %v8357_v41 }
 0x58d   : > { %5789 = vmatprep.mubr.msk.f32.mxu1 %vm6403_vm12, %v8992_v26  ;;  %6254 = vmatpush3.bf16.msra.mxu1 %v8291_v53 }
 0x58e   : > { %6247 = vmatprep.subr.bf16.mxu1 %v6402_v35 }
 0x590   : > { %5790 = vmatmul.mubr.f32.gmra.mrb[176].mxu1 %v8374_v34 }
 0x591   : > { %5792 = vmatprep.mubr.msk.f32.mxu1 %vm6403_vm12, %v8992_v26  ;;  %6255 = vmatpush3.bf16.msra.mxu1 %v8311_v47 }
 0x592   : > { %6248 = vmatprep.subr.bf16.mxu1 %v6402_v35 }
 0x594   : > { %5793 = vmatmul.mubr.f32.gmra.mrb[178].mxu1 %v8368_v36 }
 0x595   : > { %5795 = vmatprep.mubr.msk.f32.mxu1 %vm6403_vm12, %v8992_v26  ;;  %6256 = vmatpush3.bf16.msra.mxu1 %v8315_v59 }
 0x596   : > { %6249 = vmatprep.subr.bf16.mxu1 %v6402_v35 }
 0x598   : > { %5796 = vmatmul.mubr.f32.gmra.mrb[180].mxu1 %v8387_v45 }
 0x599   : > { %5798 = vmatprep.mubr.msk.f32.mxu1 %vm6403_vm12, %v8992_v26  ;;  %6257 = vmatpush3.bf16.msra.mxu1 %v8320_v63 }
 0x59a   : > { %6250 = vmatprep.subr.bf16.mxu1 %v6402_v35 }
 0x59c   : > { %5799 = vmatmul.mubr.f32.gmra.mrb[182].mxu1 %v8381_v61 }
 0x59d   : > { %5801 = vmatprep.mubr.msk.f32.mxu1 %vm6403_vm12, %v8992_v26  ;;  %6258 = vmatpush3.bf16.msra.mxu1 %v8324_v5 }
 0x5a0   : > { %5802 = vmatmul.mubr.f32.gmra.mrb[184].mxu1 %v8400_v57 }
 0x5a1   : > { %5804 = vmatprep.mubr.msk.f32.mxu1 %vm6403_vm12, %v8992_v26 }
 0x5a4   : > { %5805 = vmatmul.mubr.f32.gmra.mrb[186].mxu1 %v8394_v60 }
 0x5a5   : > { %5807 = vmatprep.mubr.msk.f32.mxu1 %vm6403_vm12, %v8992_v26 }
 0x5a8   : > { %5808 = vmatmul.mubr.f32.gmra.mrb[188].mxu1 %v8413_v18 }
 0x5a9   : > { %5810 = vmatprep.mubr.msk.f32.mxu1 %vm6403_vm12, %v8992_v26 }
 0x5ac   : > { %5811 = vmatmul.mubr.f32.gmra.mrb[190].mxu1 %v8407_v8 }
 0x5ad   : > { %5813 = vmatprep.mubr.msk.f32.mxu1 %vm6403_vm12, %v8992_v26 }
 0x5b0   : > { %5814 = vmatmul.mubr.f32.gmra.mrb[192].mxu1 %v8426_v16 }
 0x5b1   : > { %5816 = vmatprep.mubr.msk.f32.mxu1 %vm6403_vm12, %v8992_v26 }
 0x5b4   : > { %5817 = vmatmul.mubr.f32.gmra.mrb[194].mxu1 %v8420_v23 }
 0x5b5   : > { %5819 = vmatprep.mubr.msk.f32.mxu1 %vm6403_vm12, %v8992_v26 }
 0x5b8   : > { %5820 = vmatmul.mubr.f32.gmra.mrb[196].mxu1 %v8439_v62 }
 0x5b9   : > { %5822 = vmatprep.mubr.msk.f32.mxu1 %vm6403_vm12, %v8992_v26 }
 0x5ba   : > { %v8640_v35 = vpop.f32.mrb[92].mxu1 }
 0x5bb   : > { %v5601_v21 = vpop.f32.mrb[93].mxu1 }
 0x5bc   : > { %5823 = vmatmul.mubr.f32.gmra.mrb[198].mxu1 %v8433_v7 }
 0x5bd   : > { %5825 = vmatprep.mubr.msk.f32.mxu1 %vm6403_vm12, %v8992_v26 }
 0x5be   : > { %v8645_v25 = vpop.f32.mrb[114].mxu0 }
 0x5bf   : > { %v8647_v17 = vpop.f32.mrb[94].mxu1  ;;  %v5868_v53 = vpop.f32.mrb[115].mxu0 }
 0x5c0   : > { %v5604_v47 = vpop.f32.mrb[95].mxu1  ;;  %5826 = vmatmul.mubr.f32.gmra.mrb[200].mxu1 %v8452_v55 }
 0x5c1   : > { %5828 = vmatprep.mubr.msk.f32.mxu1 %vm6403_vm12, %v8992_v26 }
 0x5c3   : > { %v8652_v59 = vpop.f32.mrb[96].mxu1  ;;  %v8654_v63 = vpop.f32.mrb[116].mxu0 }
 0x5c4   : > { %v5607_v5 = vpop.f32.mrb[97].mxu1  ;;  %5829 = vmatmul.mubr.f32.gmra.mrb[202].mxu1 %v8446_v6  ;;  %v5871_v42 = vpop.f32.mrb[117].mxu0 }
 0x5c5   : > { %5831 = vmatprep.mubr.msk.f32.mxu1 %vm6403_vm12, %v8992_v26 }
 0x5c7   : > { %v8659_v19 = vpop.f32.mrb[98].mxu1  ;;  %v8661_v41 = vpop.f32.mrb[118].mxu0 }
 0x5c8   : > { %v5610_v36 = vpop.f32.mrb[99].mxu1  ;;  %5832 = vmatmul.mubr.f32.gmra.mrb[204].mxu1 %v3808_v44  ;;  %v5874_v34 = vpop.f32.mrb[119].mxu0 }
 0x5c9   : > { %5914 = vmatprep.mubr.msk.f32.mxu1 %vm6403_vm12, %v8992_v26 }
 0x5cb   : > { %v8665_v61 = vpop.f32.mrb[100].mxu1  ;;  %v8667_v45 = vpop.f32.mrb[120].mxu0 }
 0x5cc   : > { %v5613_v60 = vpop.f32.mrb[101].mxu1  ;;  %v5877_v57 = vpop.f32.mrb[121].mxu0  ;;  %5915 = vmatmul.mubr.f32.vlgmr.msra.gmra.mrb[206].mxu1 %v8446_v6 }
 0x5cd   : > { %5917 = vmatprep.mubr.msk.f32.mxu1 %vm6403_vm12, %v8992_v26 }
 0x5cf   : > { %v8672_v8 = vpop.f32.mrb[102].mxu1  ;;  %v8674_v18 = vpop.f32.mrb[122].mxu0 }
 0x5d0   : > { %v5616_v23 = vpop.f32.mrb[103].mxu1  ;;  %v5880_v16 = vpop.f32.mrb[123].mxu0  ;;  %5918 = vmatmul.mubr.f32.gmra.mrb[208].mxu1 %v3391_v40 }
 0x5d1   : > { %5920 = vmatprep.mubr.msk.f32.mxu1 %vm6403_vm12, %v8992_v26 }
 0x5d3   : > { %v8680_v7 = vpop.f32.mrb[104].mxu1  ;;  %v8682_v62 = vpop.f32.mrb[124].mxu0 }
 0x5d4   : > { %v5619_v56 = vpop.f32.mrb[105].mxu1  ;;  %v5883_v46 = vpop.f32.mrb[125].mxu0  ;;  %5921 = vmatmul.mubr.f32.gmra.mrb[210].mxu1 %v4023_v9 }
 0x5d7   : > { %v8684_v20 = vpop.f32.mrb[106].mxu1  ;;  %v8686_v6 = vpop.f32.mrb[126].mxu0 }
 0x5d8   : > { %v5622_v55 = vpop.f32.mrb[107].mxu1  ;;  %v5886_v39 = vpop.f32.mrb[127].mxu0 }
 0x5db   : > { %v8688_v2 = vpop.f32.mrb[108].mxu1  ;;  %v8690_v13 = vpop.f32.mrb[128].mxu0 }
 0x5dc   : > { %v5625_v27 = vpop.f32.mrb[109].mxu1  ;;  %v5889_v26 = vpop.f32.mrb[129].mxu0 }
 0x5df   : > { %v8692_v38 = vpop.f32.mrb[110].mxu1  ;;  %v8694_v40 = vpop.f32.mrb[130].mxu0 }
 0x5e0   : > { %v5628_v31 = vpop.f32.mrb[111].mxu1  ;;  %v5892_v11 = vpop.f32.mrb[131].mxu0 }
 0x5e3   : > { %v8696_v12 = vpop.f32.mrb[112].mxu1  ;;  %v8698_v0 = vpop.f32.mrb[132].mxu0 }
 0x5e4   : > { %v5631_v15 = vpop.f32.mrb[113].mxu1  ;;  %v5895_v30 = vpop.f32.mrb[133].mxu0 }
 0x5e7   : > { %v3591_v3 = vpop.f32.mrb[114].mxu1  ;;  %v8700_v52 = vpop.f32.mrb[134].mxu0 }
 0x5e8   : > { %v5634_v33 = vpop.f32.mrb[115].mxu1  ;;  %v5898_v49 = vpop.f32.mrb[135].mxu0 }
 0x5eb   : > { %v3596_v51 = vpop.f32.mrb[116].mxu1  ;;  %v8702_v29 = vpop.f32.mrb[136].mxu0 }
 0x5ec   : > { %v5637_v4 = vpop.f32.mrb[117].mxu1  ;;  %v5901_v50 = vpop.f32.mrb[137].mxu0 }
 0x5ef   : > { %v3601_v43 = vpop.f32.mrb[118].mxu1  ;;  %v8704_v14 = vpop.f32.mrb[138].mxu0 }
 0x5f0   : > { %v5640_v22 = vpop.f32.mrb[119].mxu1  ;;  %v5904_v37 = vpop.f32.mrb[139].mxu0 }
 0x5f3   : > { %v3606_v24 = vpop.f32.mrb[120].mxu1  ;;  %v8706_v1 = vpop.f32.mrb[140].mxu0 }
 0x5f4   : > { %v5643_v32 = vpop.f32.mrb[121].mxu1  ;;  %v5907_v10 = vpop.f32.mrb[141].mxu0 }
 0x5f7   : > { %v3611_v54 = vpop.f32.mrb[122].mxu1  ;;  %v8708_v48 = vpop.f32.mrb[142].mxu0 }
 0x5f8   : > { %v5646_v28 = vpop.f32.mrb[123].mxu1  ;;  %v5910_v58 = vpop.f32.mrb[143].mxu0 }
 0x5fb   : > { %v3616_v21 = vpop.f32.mrb[124].mxu1  ;;  %v8710_v53 = vpop.f32.mrb[144].mxu0 }
 0x5fc   : > { %v5649_v47 = vpop.f32.mrb[125].mxu1  ;;  %v5913_v5 = vpop.f32.mrb[145].mxu0 }
 0x5ff   : > { %v3621_v42 = vpop.f32.mrb[126].mxu1 }
 0x600   : > { %v5652_v44 = vpop.f32.mrb[127].mxu1 }
 0x603   : > { %v3626_v36 = vpop.f32.mrb[128].mxu1 }
 0x604   : > { %v5655_v34 = vpop.f32.mrb[129].mxu1 }
 0x607   : > { %v3696_v60 = vpop.f32.mrb[130].mxu1 }
 0x608   : > { %v3697_v57 = vadd.f32 %v3696_v60, %v8640_v35  ;;  %v5690_v23 = vpop.f32.mrb[131].mxu1 }
 0x60b   : > { %v3701_v16 = vpop.f32.mrb[132].mxu1 }
 0x60c   : > { %v3702_v9 = vadd.f32 %v3701_v16, %v8647_v17  ;;  %v5693_v56 = vpop.f32.mrb[133].mxu1 }
 0x60f   : > { %v3706_v46 = vpop.f32.mrb[134].mxu1 }
 0x610   : > { %v8715_v55 = vadd.f32 %v3706_v46, %v8652_v59  ;;  %v5696_v39 = vpop.f32.mrb[135].mxu1 }
 0x613   : > { %v3711_v27 = vpop.f32.mrb[136].mxu1 }
 0x614   : > { %v8718_v26 = vadd.f32 %v3711_v27, %v8659_v19  ;;  %v5699_v31 = vpop.f32.mrb[137].mxu1 }
 0x617   : > { %v3716_v11 = vpop.f32.mrb[138].mxu1 }
 0x618   : > { %v8721_v15 = vadd.f32 %v3716_v11, %v8665_v61  ;;  %v5702_v35 = vpop.f32.mrb[139].mxu1 }
 0x61b   : > { %v3721_v30 = vpop.f32.mrb[140].mxu1 }
 0x61c   : > { %v8724_v33 = vadd.f32 %v3721_v30, %v8672_v8  ;;  %v5705_v17 = vpop.f32.mrb[141].mxu1 }
 0x61f   : > { %v3726_v49 = vpop.f32.mrb[142].mxu1 }
 0x620   : > { %v8727_v59 = vadd.f32 %v3726_v49, %v8680_v7  ;;  %v5708_v4 = vpop.f32.mrb[143].mxu1 }
 0x623   : > { %v3731_v50 = vpop.f32.mrb[144].mxu1 }
 0x624   : > { %v8730_v19 = vadd.f32 %v3731_v50, %v8684_v20  ;;  %v5711_v22 = vpop.f32.mrb[145].mxu1 }
 0x627   : > { %v3736_v37 = vpop.f32.mrb[146].mxu1 }
 0x628   : > { %v8733_v61 = vadd.f32 %v3736_v37, %v8688_v2  ;;  %v5714_v32 = vpop.f32.mrb[147].mxu1 }
 0x62b   : > { %v3741_v10 = vpop.f32.mrb[148].mxu1 }
 0x62c   : > { %v8736_v8 = vadd.f32 %v3741_v10, %v8692_v38  ;;  %v5717_v28 = vpop.f32.mrb[149].mxu1 }
 0x62f   : > { %v3746_v58 = vpop.f32.mrb[150].mxu1 }
 0x630   : > { %v8739_v7 = vadd.f32 %v3746_v58, %v8696_v12  ;;  %v5720_v47 = vpop.f32.mrb[151].mxu1 }
 0x633   : > { %v3751_v5 = vpop.f32.mrb[152].mxu1 }
 0x634   : > { %v8741_v44 = vadd.f32 %v3751_v5, %v3591_v3  ;;  %v5723_v20 = vpop.f32.mrb[153].mxu1 }
 0x637   : > { %v3756_v34 = vpop.f32.mrb[154].mxu1 }
 0x638   : > { %v8743_v60 = vadd.f32 %v3756_v34, %v3596_v51  ;;  %v5726_v2 = vpop.f32.mrb[155].mxu1 }
 0x63b   : > { %v3761_v23 = vpop.f32.mrb[156].mxu1 }
 0x63c   : > { %v8745_v16 = vadd.f32 %v3761_v23, %v3601_v43  ;;  %v5729_v56 = vpop.f32.mrb[157].mxu1 }
 0x63f   : > { %v3766_v38 = vpop.f32.mrb[158].mxu1 }
 0x640   : > { %v8747_v46 = vadd.f32 %v3766_v38, %v3606_v24  ;;  %v5732_v39 = vpop.f32.mrb[159].mxu1 }
 0x643   : > { %v3771_v27 = vpop.f32.mrb[160].mxu1 }
 0x644   : > { %v8749_v12 = vadd.f32 %v3771_v27, %v3611_v54  ;;  %v5735_v31 = vpop.f32.mrb[161].mxu1  ;;  %v8760_v54 = vld [vmem:[%s8886_s3 + $0x3] ss:$0 sm:$0xff] }
 0x647   : > { %v3776_v11 = vpop.f32.mrb[162].mxu1 }
 0x648   : > { %v8751_v3 = vadd.f32 %v3776_v11, %v3616_v21  ;;  %v5738_v35 = vpop.f32.mrb[163].mxu1 }
 0x64b   : > { %v3781_v30 = vpop.f32.mrb[164].mxu1 }
 0x64c   : > { %v8753_v51 = vadd.f32 %v3781_v30, %v3621_v42  ;;  %v5741_v17 = vpop.f32.mrb[165].mxu1 }
 0x64f   : > { %v3786_v49 = vpop.f32.mrb[166].mxu1 }
 0x650   : > { %v8755_v43 = vadd.f32 %v3786_v49, %v3626_v36  ;;  %v5744_v4 = vpop.f32.mrb[167].mxu1  ;;  %v4266_v36 = vld [vmem:[%s8887_s4] sm:$0xff] }
 0x653   : > { %v3892_v50 = vpop.f32.mrb[168].mxu1 }
 0x654   : > { %v3986_v24 = vadd.f32 %v3892_v50, %v3697_v57  ;;  %v5779_v22 = vpop.f32.mrb[169].mxu1 }
 0x656   : > { %v4201_v21 = vadd.f32 %v8645_v25, %v3986_v24  ;;  %v4267_v25 = vld [vmem:[%s8887_s4 + $0x8] sm:$0xff] }
 0x657   : > { %v3897_v37 = vpop.f32.mrb[170].mxu1 }
 0x658   : > { %v3987_v32 = vadd.f32 %v3897_v37, %v3702_v9  ;;  %v5782_v10 = vpop.f32.mrb[171].mxu1  ;;  %v4228_v42 = vadd.f32 %v8760_v54, %v4201_v21 }
 0x65a   : > { %v4202_v28 = vadd.f32 %v8654_v63, %v3987_v32  ;;  %v4247_v57 = vmax.f32 %v4228_v42, 0.0 }
 0x65b   : > { %v3902_v58 = vpop.f32.mrb[172].mxu1 }
 0x65c   : > { %v3988_v47 = vadd.f32 %v3902_v58, %v8715_v55  ;;  %v5785_v5 = vpop.f32.mrb[173].mxu1  ;;  %v4285_v20 = vmul.f32 %v4266_v36, %v4247_v57  ;;  %v4229_v34 = vadd.f32 %v8760_v54, %v4202_v28  ;;  %v4268_v55 = vld [vmem:[%s8887_s4 + $0x10] sm:$0xff] }
 0x65e   : > { %v4203_v9 = vadd.f32 %v8661_v41, %v3988_v47  ;;  %4304 = vadd.xlane.f32.xlu0 %v4285_v20  ;;  %v4248_v2 = vmax.f32 %v4229_v34, 0.0 }
 0x65f   : > { %v3907_v23 = vpop.f32.mrb[174].mxu1 }
 0x660   : > { %v3989_v56 = vadd.f32 %v3907_v23, %v8718_v26  ;;  %v5788_v63 = vpop.f32.mrb[175].mxu1  ;;  %v4286_v38 = vmul.f32 %v4267_v25, %v4248_v2  ;;  %v4230_v39 = vadd.f32 %v8760_v54, %v4203_v9  ;;  %v4269_v26 = vld [vmem:[%s8887_s4 + $0x18] sm:$0xff] }
 0x662   : > { %v4204_v27 = vadd.f32 %v8667_v45, %v3989_v56  ;;  %4306 = vadd.xlane.f32.xlu1 %v4286_v38  ;;  %v4249_v31 = vmax.f32 %v4230_v39, 0.0 }
 0x663   : > { %v3912_v11 = vpop.f32.mrb[176].mxu1 }
 0x664   : > { %v3990_v41 = vadd.f32 %v3912_v11, %v8721_v15  ;;  %v5791_v35 = vpop.f32.mrb[177].mxu1  ;;  %v4287_v30 = vmul.f32 %v4268_v55, %v4249_v31  ;;  %v4231_v17 = vadd.f32 %v8760_v54, %v4204_v27  ;;  %v4270_v15 = vld [vmem:[%s8887_s4 + $0x20] sm:$0xff] }
 0x666   : > { %v4205_v49 = vadd.f32 %v8674_v18, %v3990_v41  ;;  %4308 = vadd.xlane.f32.xlu0 %v4287_v30  ;;  %v4250_v4 = vmax.f32 %v4231_v17, 0.0 }
 0x667   : > { %v3917_v50 = vpop.f32.mrb[178].mxu1 }
 0x668   : > { %v3991_v45 = vadd.f32 %v3917_v50, %v8724_v33  ;;  %v5794_v24 = vpop.f32.mrb[179].mxu1  ;;  %v4288_v22 = vmul.f32 %v4269_v26, %v4250_v4  ;;  %v4232_v21 = vadd.f32 %v8760_v54, %v4205_v49  ;;  %v4271_v33 = vld [vmem:[%s8887_s4 + $0x28] sm:$0xff] }
 0x66a   : > { %v4206_v37 = vadd.f32 %v8682_v62, %v3991_v45  ;;  %4310 = vadd.xlane.f32.xlu0 %v4288_v22  ;;  %v4251_v32 = vmax.f32 %v4232_v21, 0.0 }
 0x66b   : > { %v3922_v10 = vpop.f32.mrb[180].mxu1 }
 0x66c   : > { %v3992_v18 = vadd.f32 %v3922_v10, %v8727_v59  ;;  %v5797_v42 = vpop.f32.mrb[181].mxu1  ;;  %v4289_v36 = vmul.f32 %v4270_v15, %v4251_v32  ;;  %v4233_v28 = vadd.f32 %v8760_v54, %v4206_v37  ;;  %v4272_v59 = vld [vmem:[%s8887_s4 + $0x30] sm:$0xff] }
 0x66e   : > { %v4207_v57 = vadd.f32 %v8686_v6, %v3992_v18  ;;  %4312 = vadd.xlane.f32.xlu1 %v4289_v36  ;;  %v4252_v58 = vmax.f32 %v4233_v28, 0.0 }
 0x66f   : > { %v3927_v47 = vpop.f32.mrb[182].mxu1 }
 0x670   : > { %v3993_v62 = vadd.f32 %v3927_v47, %v8730_v19  ;;  %v5800_v5 = vpop.f32.mrb[183].mxu1  ;;  %v4290_v20 = vmul.f32 %v4271_v33, %v4252_v58  ;;  %v4234_v34 = vadd.f32 %v8760_v54, %v4207_v57  ;;  %v4273_v19 = vld [vmem:[%s8887_s4 + $0x38] sm:$0xff] }
 0x672   : > { %v4208_v25 = vadd.f32 %v8690_v13, %v3993_v62  ;;  %4314 = vadd.xlane.f32.xlu0 %v4290_v20  ;;  %v4253_v9 = vmax.f32 %v4234_v34, 0.0 }
 0x673   : > { %v3932_v2 = vpop.f32.mrb[184].mxu1 }
 0x674   : > { %v3994_v6 = vadd.f32 %v3932_v2, %v8733_v61  ;;  %v5803_v23 = vpop.f32.mrb[185].mxu1  ;;  %v4291_v56 = vmul.f32 %v4272_v59, %v4253_v9  ;;  %v4235_v63 = vadd.f32 %v8760_v54, %v4208_v25  ;;  %v4274_v61 = vld [vmem:[%s8887_s4 + $0x40] sm:$0xff] }
 0x676   : > { %v4209_v38 = vadd.f32 %v8694_v40, %v3994_v6  ;;  %4316 = vadd.xlane.f32.xlu1 %v4291_v56  ;;  %v4254_v39 = vmax.f32 %v4235_v63, 0.0 }
 0x677   : > { %v3937_v55 = vpop.f32.mrb[186].mxu1 }
 0x678   : > { %v3995_v13 = vadd.f32 %v3937_v55, %v8736_v8  ;;  %v5806_v27 = vpop.f32.mrb[187].mxu1  ;;  %v4292_v31 = vmul.f32 %v4273_v19, %v4254_v39  ;;  %v4236_v11 = vadd.f32 %v8760_v54, %v4209_v38  ;;  %v4275_v8 = vld [vmem:[%s8887_s4 + $0x48] sm:$0xff] }
 0x67a   : > { %v4210_v41 = vadd.f32 %v8698_v0, %v3995_v13  ;;  %4318 = vadd.xlane.f32.xlu0 %v4292_v31  ;;  %v4255_v35 = vmax.f32 %v4236_v11, 0.0 }
 0x67b   : > { %v3942_v30 = vpop.f32.mrb[188].mxu1 }
 0x67c   : > { %v3996_v40 = vadd.f32 %v3942_v30, %v8739_v7  ;;  %v5809_v17 = vpop.f32.mrb[189].mxu1  ;;  %v4293_v26 = vmul.f32 %v4274_v61, %v4255_v35  ;;  %v4237_v49 = vadd.f32 %v8760_v54, %v4210_v41  ;;  %v4276_v7 = vld [vmem:[%s8887_s4 + $0x50] sm:$0xff] }
 0x67e   : > { %v4211_v4 = vadd.f32 %v8700_v52, %v3996_v40  ;;  %4320 = vadd.xlane.f32.xlu1 %v4293_v26  ;;  %v4256_v50 = vmax.f32 %v4237_v49, 0.0 }
 0x67f   : > { %v3947_v45 = vpop.f32.mrb[190].mxu1 }
 0x680   : > { %v3997_v0 = vadd.f32 %v3947_v45, %v8741_v44  ;;  %v5812_v24 = vpop.f32.mrb[191].mxu1  ;;  %v4294_v22 = vmul.f32 %v4275_v8, %v4256_v50  ;;  %v4238_v21 = vadd.f32 %v8760_v54, %v4211_v4  ;;  %v4277_v44 = vld [vmem:[%s8887_s4 + $0x58] sm:$0xff]  ;;  %v4282_v4 = vld [vmem:[%s8887_s4 + $0x80] sm:$0xff] }
 0x682   : > { %v4212_v15 = vadd.f32 %v8702_v29, %v3997_v0  ;;  %4322 = vadd.xlane.f32.xlu0 %v4294_v22  ;;  %v4257_v37 = vmax.f32 %v4238_v21, 0.0 }
 0x683   : > { %v3952_v32 = vpop.f32.mrb[192].mxu1 }
 0x684   : > { %v3998_v52 = vadd.f32 %v3952_v32, %v8743_v60  ;;  %v5815_v10 = vpop.f32.mrb[193].mxu1  ;;  %v4295_v18 = vmul.f32 %v4276_v7, %v4257_v37  ;;  %v4239_v42 = vadd.f32 %v8760_v54, %v4212_v15  ;;  %v4278_v60 = vld [vmem:[%s8887_s4 + $0x60] sm:$0xff] }
 0x686   : > { %v4213_v36 = vadd.f32 %v8704_v14, %v3998_v52  ;;  %4324 = vadd.xlane.f32.xlu1 %v4295_v18  ;;  %v4258_v28 = vmax.f32 %v4239_v42, 0.0  ;;  %v4284_v52 = vld [vmem:[%s8887_s4 + $0x90] sm:$0x7] }
 0x687   : > { %v3957_v33 = vpop.f32.mrb[194].mxu1 }
 0x688   : > { %v3999_v29 = vadd.f32 %v3957_v33, %v8745_v16  ;;  %v5818_v57 = vpop.f32.mrb[195].mxu1  ;;  %v4296_v58 = vmul.f32 %v4277_v44, %v4258_v28  ;;  %v4240_v47 = vadd.f32 %v8760_v54, %v4213_v36  ;;  %v4279_v16 = vld [vmem:[%s8887_s4 + $0x68] sm:$0xff] }
 0x68a   : > { %v4214_v62 = vadd.f32 %v8706_v1, %v3999_v29  ;;  %4326 = vadd.xlane.f32.xlu0 %v4296_v58  ;;  %v4259_v5 = vmax.f32 %v4240_v47, 0.0 }
 0x68b   : > { %v3962_v20 = vpop.f32.mrb[196].mxu1 }
 0x68c   : > { %v4000_v14 = vadd.f32 %v3962_v20, %v8747_v46  ;;  %v5821_v34 = vpop.f32.mrb[197].mxu1  ;;  %v4297_v59 = vmul.f32 %v4278_v60, %v4259_v5  ;;  %v4241_v25 = vadd.f32 %v8760_v54, %v4214_v62  ;;  %v4280_v46 = vld [vmem:[%s8887_s4 + $0x70] sm:$0xff] }
 0x68e   : > { %v4215_v9 = vadd.f32 %v8708_v48, %v4000_v14  ;;  %4328 = vadd.xlane.f32.xlu1 %v4297_v59  ;;  %v4260_v2 = vmax.f32 %v4241_v25, 0.0 }
 0x68f   : > { %v3967_v6 = vpop.f32.mrb[198].mxu1 }
 0x690   : > { %v4001_v1 = vadd.f32 %v3967_v6, %v8749_v12  ;;  %v5824_v23 = vpop.f32.mrb[199].mxu1  ;;  %v4298_v56 = vmul.f32 %v4279_v16, %v4260_v2  ;;  %v4242_v63 = vadd.f32 %v8760_v54, %v4215_v9  ;;  %v4281_v12 = vld [vmem:[%s8887_s4 + $0x78] sm:$0xff] }
 0x692   : > { %v4216_v19 = vadd.f32 %v8710_v53, %v4001_v1  ;;  %4330 = vadd.xlane.f32.xlu0 %v4298_v56  ;;  %v4261_v38 = vmax.f32 %v4242_v63, 0.0 }
 0x693   : > { %v3972_v39 = vpop.f32.mrb[200].mxu1 }
 0x694   : > { %v4002_v48 = vadd.f32 %v3972_v39, %v8751_v3  ;;  %v5827_v55 = vpop.f32.mrb[201].mxu1  ;;  %v4299_v13 = vmul.f32 %v4280_v46, %v4261_v38  ;;  %v4243_v27 = vadd.f32 %v8760_v54, %v4216_v19 }
 0x696   : > { %4332 = vadd.xlane.f32.xlu1 %v4299_v13  ;;  %v4262_v31 = vmax.f32 %v4243_v27, 0.0 }
 0x697   : > { %v3977_v11 = vpop.f32.mrb[202].mxu1 }
 0x698   : > { %v4003_v61 = vadd.f32 %v3977_v11, %v8753_v51  ;;  %v5830_v41 = vpop.f32.mrb[203].mxu1  ;;  %v4300_v53 = vmul.f32 %v4281_v12, %v4262_v31 }
 0x69a   : > { %4334 = vadd.xlane.f32.xlu0 %v4300_v53 }
 0x69b   : > { %v3982_v35 = vpop.f32.mrb[204].mxu1 }
 0x69c   : > { %v4004_v30 = vadd.f32 %v3982_v35, %v8755_v43  ;;  %v5833_v3 = vpop.f32.mrb[205].mxu1  ;;  %v4283_v43 = vld [vmem:[%s8887_s4 + $0x88] sm:$0xff] }
 0x69f   : > { %v4187_v40 = vpop.f32.mrb[206].mxu1 }
 0x6a0   : > { %v4217_v17 = vadd.f32 %v4187_v40, %v4002_v48  ;;  %v5916_v26 = vpop.f32.mrb[207].mxu1 }
 0x6a2   : > { %v4244_v49 = vadd.f32 %v8760_v54, %v4217_v17  ;;  %v4369_v17 = vld [vmem:[%s8888_s5] sm:$0x1] }
 0x6a3   : > { %v4192_v8 = vpop.f32.mrb[208].mxu1 }
 0x6a4   : > { %v4263_v50 = vmax.f32 %v4244_v49, 0.0  ;;  %v4218_v45 = vadd.f32 %v4192_v8, %v4003_v61  ;;  %v5919_v51 = vpop.f32.mrb[209].mxu1 }
 0x6a6   : > { %v4245_v0 = vadd.f32 %v8760_v54, %v4218_v45  ;;  %v4301_v24 = vmul.f32 %v4282_v4, %v4263_v50 }
 0x6a7   : > { %v4197_v22 = vpop.f32.mrb[210].mxu1 }
 0x6a8   : > { %v4264_v21 = vmax.f32 %v4245_v0, 0.0  ;;  %v4219_v7 = vadd.f32 %v4197_v22, %v4004_v30  ;;  %4336 = vadd.xlane.f32.xlu1 %v4301_v24  ;;  %v5922_v15 = vpop.f32.mrb[211].mxu1 }
 0x6aa   : > { %v4246_v37 = vadd.f32 %v8760_v54, %v4219_v7  ;;  %v4302_v32 = vmul.f32 %v4283_v43, %v4264_v21 }
 0x6ac   : > { %v4265_v10 = vmax.f32 %v4246_v37, 0.0  ;;  %4338 = vadd.xlane.f32.xlu0 %v4302_v32 }
 0x6ae   : > { %v4303_v18 = vmul.f32 %v4284_v52, %v4265_v10 }
 0x6b0   : > { %v4341_v42 = vsel %vm4340_vm13, %v4303_v18, 0.0 }
 0x6b1   : > { %4342 = vadd.xlane.f32.xlu1 %v4341_v42 }
 0x6eb   : > { %v4305_v44 = vpop.xlane.xlu0 %4304 }
 0x6ef   : > { %v4307_v28 = vpop.xlane.xlu1 %4306 }
 0x6f0   : > { %v4344_v33 = vadd.f32 %v4307_v28, %v4305_v44 }
 0x6f3   : > { %v4309_v36 = vpop.xlane.xlu0 %4308 }
 0x6f4   : > { %v4345_v57 = vadd.f32 %v4344_v33, %v4309_v36 }
 0x6f7   : > { %v4311_v29 = vpop.xlane.xlu0 %4310 }
 0x6f8   : > { %v4346_v54 = vadd.f32 %v4345_v57, %v4311_v29 }
 0x6fb   : > { %v4313_v58 = vpop.xlane.xlu1 %4312 }
 0x6fc   : > { %v4347_v60 = vadd.f32 %v4346_v54, %v4313_v58 }
 0x6ff   : > { %v4315_v47 = vpop.xlane.xlu0 %4314 }
 0x700   : > { %v4348_v5 = vadd.f32 %v4347_v60, %v4315_v47 }
 0x703   : > { %v4317_v62 = vpop.xlane.xlu1 %4316 }
 0x704   : > { %v4349_v14 = vadd.f32 %v4348_v5, %v4317_v62 }
 0x707   : > { %v4319_v20 = vpop.xlane.xlu0 %4318 }
 0x708   : > { %v4350_v59 = vadd.f32 %v4349_v14, %v4319_v20 }
 0x70b   : > { %v4321_v34 = vpop.xlane.xlu1 %4320 }
 0x70c   : > { %v4351_v16 = vadd.f32 %v4350_v59, %v4321_v34 }
 0x70f   : > { %v4323_v25 = vpop.xlane.xlu0 %4322 }
 0x710   : > { %v4352_v2 = vadd.f32 %v4351_v16, %v4323_v25 }
 0x713   : > { %v4325_v9 = vpop.xlane.xlu1 %4324 }
 0x714   : > { %v4353_v1 = vadd.f32 %v4352_v2, %v4325_v9 }
 0x717   : > { %v4327_v6 = vpop.xlane.xlu0 %4326 }
 0x718   : > { %v4354_v56 = vadd.f32 %v4353_v1, %v4327_v6 }
 0x71b   : > { %v4329_v23 = vpop.xlane.xlu1 %4328 }
 0x71c   : > { %v4355_v46 = vadd.f32 %v4354_v56, %v4329_v23 }
 0x71f   : > { %v4331_v63 = vpop.xlane.xlu0 %4330 }
 0x720   : > { %v4356_v38 = vadd.f32 %v4355_v46, %v4331_v63 }
 0x723   : > { %v4333_v19 = vpop.xlane.xlu1 %4332 }
 0x724   : > { %v4357_v48 = vadd.f32 %v4356_v38, %v4333_v19 }
 0x727   : > { %v4335_v39 = vpop.xlane.xlu0 %4334 }
 0x728   : > { %v4358_v13 = vadd.f32 %v4357_v48, %v4335_v39 }
 0x735   : > { %v4337_v55 = vpop.xlane.xlu1 %4336 }
 0x736   : > { %v4359_v12 = vadd.f32 %v4358_v13, %v4337_v55 }
 0x739   : > { %v4339_v27 = vpop.xlane.xlu0 %4338 }
 0x73a   : > { %v4360_v31 = vadd.f32 %v4359_v12, %v4339_v27 }
 0x73e   : > { %v4343_v11 = vpop.xlane.xlu1 %4342 }
 0x73f   : > { %v4361_v61 = vsel %vm4340_vm13, %v4343_v11, 0.0 }
 0x740   : > { %v4362_v41 = vadd.f32 %v4361_v61, %v4360_v31 }
 0x742   : > { %v4363_v53 = vrot.slane %v4362_v41, 4 }
 0x744   : > { %v4364_v35 = vadd.f32 %v4363_v53, %v4362_v41 }
 0x746   : > { %v4365_v30 = vrot.slane %v4364_v35, 2 }
 0x748   : > { %v4366_v3 = vadd.f32 %v4365_v30, %v4364_v35 }
 0x74a   : > { %v4367_v40 = vrot.slane %v4366_v3, 1 }
 0x74c   : > { %v4368_v26 = vadd.f32 %v4367_v40, %v4366_v3 }
 0x74e   : > { %v4370_v49 = vadd.f32 %v4369_v17, %v4368_v26 }
 0x750   : > { %4371 = vst [vmem:[%s262_s11] sm:$0x1] %v4370_v49 }
 0x751 PF: > { %s17_s21 = sadd.s32 1, %s6395_s21  }
 0x752   : > { %p14_p3 = scmp.ge.s32.totalorder %s17_s21, 6  }
 0x754   :  { %16 = sbr.rel (!%p14_p3) target bundleno = 1 (0x1), region = 96 }
 0x75b   :  { %4389 = vsyncpa [#allocation6], 1 }
 0x75c   :  { %4391 = vsyncpa [#allocation6 + $0x1], 1 }

</bundles_post_ra>
